<compile_context>
chip_gen: v5e
topology: v5e:2x2
jax: 0.10.0
libtpu: 0.0.40
codegen_flags: <defaults>
</compile_context>

<pallas_src>
import jax
import jax.numpy as jnp
from jax.experimental import pallas as pl
from jax.experimental.pallas import tpu as pltpu

IN_FEATURES = 244      # 244_features_noneaugmented.csv
N_COLS = 30            # 30 clinical scalar columns
H1, H2, H3 = 1000, 500, 100
OUT_FEATURES = 15      # num_durations = 15  (LogisticHazard label transform)
BN_EPS = 1e-5
WEIGHT_DTYPE = jnp.bfloat16   # matmul weights + inputs; biases / BN params stay f32

# Gridless kernel: the whole (B, .) activation chain lives in one VMEM window.
# Peak live f32 activations are ~16 KB per batch row; with bf16 weights (~1.7 MB)
# and the 16 MiB VMEM budget below, 512 rows leaves comfortable headroom on all
# of v5e / v6e / v7x.  Larger batches need a batch-tiled grid + two-pass BN.
MAX_BATCH = 512
VMEM_LIMIT_BYTES = 16 * 1024 * 1024


def _survnet2_kernel(
    x_ref, cols_ref,
    w1_ref, b1_ref, g1_ref, be1_ref,
    w2a_ref, w2b_ref, b2_ref, g2_ref, be2_ref,
    w3_ref, b3_ref, g3_ref, be3_ref,
    w4_ref, b4_ref,
    o_ref,
):
    def batchnorm(h, gamma, beta):
        # PyTorch BatchNorm1d training forward: batch mean, biased variance,
        # fused into a single scale/shift (f32 throughout).  Variance is clamped
        # at 0 to guard against single-pass cancellation going slightly negative.
        mean = jnp.mean(h, axis=0, keepdims=True)
        var = jnp.maximum(jnp.mean(h * h, axis=0, keepdims=True) - mean * mean, 0.0)
        scale = gamma * jax.lax.rsqrt(var + BN_EPS)   # rsqrt -> EUP slot
        shift = beta - mean * scale
        return h * scale + shift

    def mm(lhs, w_ref):
        # bf16 LHS x bf16 weights on the MXU, f32 accumulation.  (astype is a
        # no-op for the already-bf16 kernel inputs.)
        return jnp.dot(lhs.astype(WEIGHT_DTYPE), w_ref[...],
                       preferred_element_type=jnp.float32)

    x = x_ref[...]                      # (B, 244) bf16
    cols = cols_ref[...]                # (B, 30)  bf16

    # ---- block 1: fc1 -> relu -> BN1 -> (dropout = identity) ----
    x1 = mm(x, w1_ref) + b1_ref[...]
    x2 = jnp.maximum(x1, 0.0)
    x4 = batchnorm(x2, g1_ref[...], be1_ref[...])

    # ---- concat(x4, cols) @ W2  ==  x4 @ W2[:1000] + cols @ W2[1000:] ----
    x5 = mm(x4, w2a_ref) + mm(cols, w2b_ref) + b2_ref[...]
    x6 = jnp.maximum(x5, 0.0)
    x8 = batchnorm(x6, g2_ref[...], be2_ref[...])

    # ---- block 3: fc3 -> relu -> BN3 ----
    x9 = mm(x8, w3_ref) + b3_ref[...]
    x10 = jnp.maximum(x9, 0.0)
    x12 = batchnorm(x10, g3_ref[...], be3_ref[...])

    # ---- fc4 (logits over 15 discrete durations) ----
    x13 = mm(x12, w4_ref) + b4_ref[...]
    o_ref[...] = x13.astype(o_ref.dtype)


def _cost_estimate(batch):
    """Advisory cost hint so XLA overlaps this (DMA-bound) call with other work."""
    weight_elems = (IN_FEATURES * H1 + (H1 + N_COLS) * H2 + H2 * H3 + H3 * OUT_FEATURES)
    flops = 2 * batch * weight_elems
    transcendentals = H1 + H2 + H3                       # one rsqrt per BN feature
    bytes_accessed = (
        weight_elems * 2                                  # bf16 weights
        + batch * (IN_FEATURES + N_COLS) * 2              # bf16 inputs
        + batch * OUT_FEATURES * 4                        # f32 output
        + (H1 + H2 + H3 + OUT_FEATURES) * 4               # biases
        + 2 * (H1 + H2 + H3) * 4                          # BN gamma/beta
    )
    return pl.CostEstimate(flops=flops, transcendentals=transcendentals,
                           bytes_accessed=bytes_accessed)


@jax.jit
def survnet2_forward(imfeat, cols, params):
    """imfeat: (B, 244) f32; cols: (B, 30) f32 (pre-concatenated clinical columns)."""
    B = imfeat.shape[0]
    if B < 2:
        raise ValueError("training-mode BatchNorm1d requires batch >= 2")
    if B > MAX_BATCH:
        raise ValueError(
            f"batch {B} exceeds MAX_BATCH={MAX_BATCH} for the gridless kernel; "
            "a batch-tiled grid with two-pass BatchNorm is required for larger B")

    # Cast inputs to the MXU-native dtype in the wrapper (halves input DMA,
    # removes the in-kernel cast for the first matmul).
    imfeat_bf = imfeat.astype(WEIGHT_DTYPE)
    cols_bf = cols.astype(WEIGHT_DTYPE)

    args = (
        imfeat_bf, cols_bf,
        params["w1"], params["b1"], params["g1"], params["be1"],
        params["w2a"], params["w2b"], params["b2"], params["g2"], params["be2"],
        params["w3"], params["b3"], params["g3"], params["be3"],
        params["w4"], params["b4"],
    )
    vmem_spec = pl.BlockSpec(memory_space=pltpu.MemorySpace.VMEM)
    return pl.pallas_call(
        _survnet2_kernel,
        out_shape=jax.ShapeDtypeStruct((B, OUT_FEATURES), jnp.float32),
        in_specs=[vmem_spec] * len(args),
        out_specs=vmem_spec,
        # Real footprint is a few MB (bf16 weights ~1.7 MB + activations);
        # 16 MiB is safely under every generation's limits (v7x: 64 MiB
        # physical / 32 MiB scoped default).
        compiler_params=pltpu.CompilerParams(vmem_limit_bytes=VMEM_LIMIT_BYTES),
        cost_estimate=_cost_estimate(B),
    )(*args)


def concat_cols(col_list):
    """One-time glue outside the jitted hot path: 30 x (B,1) -> (B,30)."""
    return jnp.concatenate(col_list, axis=1)


def init_params(key):
    """Deterministic synthetic parameters with the shapes implied by __init__."""
    ks = jax.random.split(key, 4)

    def linear(k, fan_in, fan_out):
        # Kaiming-uniform-ish deterministic init; weight stored as (in, out).
        bound = 1.0 / jnp.sqrt(jnp.float32(fan_in))
        kw, kb = jax.random.split(k)
        w = jax.random.uniform(kw, (fan_in, fan_out), jnp.float32, -bound, bound)
        b = jax.random.uniform(kb, (1, fan_out), jnp.float32, -bound, bound)
        return w, b

    w1, b1 = linear(ks[0], IN_FEATURES, H1)
    w2, b2 = linear(ks[1], H1 + N_COLS, H2)
    w3, b3 = linear(ks[2], H2, H3)
    w4, b4 = linear(ks[3], H3, OUT_FEATURES)

    wd = WEIGHT_DTYPE
    params = {
        # matmul weights in bf16 (MXU-native, halves weight DMA)
        "w1": w1.astype(wd), "b1": b1,
        # split fc2 weight: rows [0:1000) multiply x4, rows [1000:1030) multiply cols
        "w2a": w2[:H1, :].astype(wd), "w2b": w2[H1:, :].astype(wd), "b2": b2,
        "w3": w3.astype(wd), "b3": b3,
        "w4": w4.astype(wd), "b4": b4,
        # BatchNorm affine params (default init: gamma=1, beta=0) — f32
        "g1": jnp.ones((1, H1), jnp.float32), "be1": jnp.zeros((1, H1), jnp.float32),
        "g2": jnp.ones((1, H2), jnp.float32), "be2": jnp.zeros((1, H2), jnp.float32),
        "g3": jnp.ones((1, H3), jnp.float32), "be3": jnp.zeros((1, H3), jnp.float32),
    }
    return params


if __name__ == "__main__":
    key = jax.random.PRNGKey(0)
    k_params, k_x, k_cols = jax.random.split(key, 3)

    B = 8
    params = init_params(k_params)
    imfeat = jax.random.normal(k_x, (B, IN_FEATURES), jnp.float32)
    col_block = jax.random.normal(k_cols, (B, N_COLS), jnp.float32)
    col_list = [col_block[:, i:i + 1] for i in range(N_COLS)]   # 30 x (B, 1), as in the module

    # Concatenate the 30 clinical columns ONCE, outside the jitted per-call path.
    cols = concat_cols(col_list)

    out = survnet2_forward(imfeat, cols, params)
    jax.block_until_ready(out)
    assert out.shape == (B, OUT_FEATURES) and out.dtype == jnp.float32
    assert bool(jnp.all(jnp.isfinite(out)))
    print("KERNEL_OK")
</pallas_src>

<mosaic_0001>
module attributes {stable_mosaic.version = 11 : i64} {
  func.func @_survnet2_kernel(%arg0: memref<8x244xbf16, #tpu.memory_space<vmem>>, %arg1: memref<8x30xbf16, #tpu.memory_space<vmem>>, %arg2: memref<244x1000xbf16, #tpu.memory_space<vmem>>, %arg3: memref<1x1000xf32, #tpu.memory_space<vmem>>, %arg4: memref<1x1000xf32, #tpu.memory_space<vmem>>, %arg5: memref<1x1000xf32, #tpu.memory_space<vmem>>, %arg6: memref<1000x500xbf16, #tpu.memory_space<vmem>>, %arg7: memref<30x500xbf16, #tpu.memory_space<vmem>>, %arg8: memref<1x500xf32, #tpu.memory_space<vmem>>, %arg9: memref<1x500xf32, #tpu.memory_space<vmem>>, %arg10: memref<1x500xf32, #tpu.memory_space<vmem>>, %arg11: memref<500x100xbf16, #tpu.memory_space<vmem>>, %arg12: memref<1x100xf32, #tpu.memory_space<vmem>>, %arg13: memref<1x100xf32, #tpu.memory_space<vmem>>, %arg14: memref<1x100xf32, #tpu.memory_space<vmem>>, %arg15: memref<100x15xbf16, #tpu.memory_space<vmem>>, %arg16: memref<1x15xf32, #tpu.memory_space<vmem>>, %arg17: memref<8x15xf32, #tpu.memory_space<vmem>>) attributes {dimension_semantics = [], scalar_prefetch = 0 : i64, scratch_operands = 0 : i64, tpu.core_type = #tpu.core_type<tc>} {
    %c0 = arith.constant 0 : index
    %c0_0 = arith.constant 0 : index
    %0 = vector.load %arg0[%c0, %c0_0] : memref<8x244xbf16, #tpu.memory_space<vmem>>, vector<8x244xbf16>
    %c0_1 = arith.constant 0 : index
    %c0_2 = arith.constant 0 : index
    %1 = vector.load %arg1[%c0_1, %c0_2] : memref<8x30xbf16, #tpu.memory_space<vmem>>, vector<8x30xbf16>
    %c0_3 = arith.constant 0 : index
    %c0_4 = arith.constant 0 : index
    %2 = vector.load %arg2[%c0_3, %c0_4] : memref<244x1000xbf16, #tpu.memory_space<vmem>>, vector<244x1000xbf16>
    %cst = arith.constant dense<0.000000e+00> : vector<8x1000xf32>
    %3 = tpu.matmul %0, %2, %cst {dimension_numbers = #tpu.dot_dimension_numbers<[1], [0], [0], [1], [0, 0, 1, 1], [], []>} : vector<8x244xbf16>, vector<244x1000xbf16>, vector<8x1000xf32> -> vector<8x1000xf32>
    %c0_5 = arith.constant 0 : index
    %c0_6 = arith.constant 0 : index
    %4 = vector.load %arg3[%c0_5, %c0_6] : memref<1x1000xf32, #tpu.memory_space<vmem>>, vector<1x1000xf32>
    %5 = vector.broadcast %4 : vector<1x1000xf32> to vector<8x1000xf32>
    %6 = arith.addf %3, %5 : vector<8x1000xf32>
    %cst_7 = arith.constant 0.000000e+00 : f32
    %7 = vector.broadcast %cst_7 : f32 to vector<8x1000xf32>
    %8 = arith.maximumf %6, %7 : vector<8x1000xf32>
    %c0_8 = arith.constant 0 : index
    %c0_9 = arith.constant 0 : index
    %9 = vector.load %arg4[%c0_8, %c0_9] : memref<1x1000xf32, #tpu.memory_space<vmem>>, vector<1x1000xf32>
    %c0_10 = arith.constant 0 : index
    %c0_11 = arith.constant 0 : index
    %10 = vector.load %arg5[%c0_10, %c0_11] : memref<1x1000xf32, #tpu.memory_space<vmem>>, vector<1x1000xf32>
    %cst_12 = arith.constant dense<0.000000e+00> : vector<1000xf32>
    %11 = vector.multi_reduction <add>, %8, %cst_12 [0] : vector<8x1000xf32> to vector<1000xf32>
    %12 = vector.shape_cast %11 : vector<1000xf32> to vector<1x1000xf32>
    %cst_13 = arith.constant 8.000000e+00 : f32
    %13 = vector.broadcast %cst_13 : f32 to vector<1x1000xf32>
    %14 = arith.divf %12, %13 : vector<1x1000xf32>
    %15 = arith.mulf %8, %8 : vector<8x1000xf32>
    %cst_14 = arith.constant dense<0.000000e+00> : vector<1000xf32>
    %16 = vector.multi_reduction <add>, %15, %cst_14 [0] : vector<8x1000xf32> to vector<1000xf32>
    %17 = vector.shape_cast %16 : vector<1000xf32> to vector<1x1000xf32>
    %cst_15 = arith.constant 8.000000e+00 : f32
    %18 = vector.broadcast %cst_15 : f32 to vector<1x1000xf32>
    %19 = arith.divf %17, %18 : vector<1x1000xf32>
    %20 = arith.mulf %14, %14 : vector<1x1000xf32>
    %21 = arith.subf %19, %20 : vector<1x1000xf32>
    %cst_16 = arith.constant 0.000000e+00 : f32
    %22 = vector.broadcast %cst_16 : f32 to vector<1x1000xf32>
    %23 = arith.maximumf %21, %22 : vector<1x1000xf32>
    %cst_17 = arith.constant 9.99999974E-6 : f32
    %24 = vector.broadcast %cst_17 : f32 to vector<1x1000xf32>
    %25 = arith.addf %23, %24 : vector<1x1000xf32>
    %26 = math.rsqrt %25 : vector<1x1000xf32>
    %27 = arith.mulf %9, %26 : vector<1x1000xf32>
    %28 = arith.mulf %14, %27 : vector<1x1000xf32>
    %29 = arith.subf %10, %28 : vector<1x1000xf32>
    %30 = vector.broadcast %27 : vector<1x1000xf32> to vector<8x1000xf32>
    %31 = arith.mulf %8, %30 : vector<8x1000xf32>
    %32 = vector.broadcast %29 : vector<1x1000xf32> to vector<8x1000xf32>
    %33 = arith.addf %31, %32 : vector<8x1000xf32>
    %34 = arith.truncf %33 : vector<8x1000xf32> to vector<8x1000xbf16>
    %c0_18 = arith.constant 0 : index
    %c0_19 = arith.constant 0 : index
    %35 = vector.load %arg6[%c0_18, %c0_19] : memref<1000x500xbf16, #tpu.memory_space<vmem>>, vector<1000x500xbf16>
    %cst_20 = arith.constant dense<0.000000e+00> : vector<8x500xf32>
    %36 = tpu.matmul %34, %35, %cst_20 {dimension_numbers = #tpu.dot_dimension_numbers<[1], [0], [0], [1], [0, 0, 1, 1], [], []>} : vector<8x1000xbf16>, vector<1000x500xbf16>, vector<8x500xf32> -> vector<8x500xf32>
    %c0_21 = arith.constant 0 : index
    %c0_22 = arith.constant 0 : index
    %37 = vector.load %arg7[%c0_21, %c0_22] : memref<30x500xbf16, #tpu.memory_space<vmem>>, vector<30x500xbf16>
    %cst_23 = arith.constant dense<0.000000e+00> : vector<8x500xf32>
    %38 = tpu.matmul %1, %37, %cst_23 {dimension_numbers = #tpu.dot_dimension_numbers<[1], [0], [0], [1], [0, 0, 1, 1], [], []>} : vector<8x30xbf16>, vector<30x500xbf16>, vector<8x500xf32> -> vector<8x500xf32>
    %39 = arith.addf %36, %38 : vector<8x500xf32>
    %c0_24 = arith.constant 0 : index
    %c0_25 = arith.constant 0 : index
    %40 = vector.load %arg8[%c0_24, %c0_25] : memref<1x500xf32, #tpu.memory_space<vmem>>, vector<1x500xf32>
    %41 = vector.broadcast %40 : vector<1x500xf32> to vector<8x500xf32>
    %42 = arith.addf %39, %41 : vector<8x500xf32>
    %cst_26 = arith.constant 0.000000e+00 : f32
    %43 = vector.broadcast %cst_26 : f32 to vector<8x500xf32>
    %44 = arith.maximumf %42, %43 : vector<8x500xf32>
    %c0_27 = arith.constant 0 : index
    %c0_28 = arith.constant 0 : index
    %45 = vector.load %arg9[%c0_27, %c0_28] : memref<1x500xf32, #tpu.memory_space<vmem>>, vector<1x500xf32>
    %c0_29 = arith.constant 0 : index
    %c0_30 = arith.constant 0 : index
    %46 = vector.load %arg10[%c0_29, %c0_30] : memref<1x500xf32, #tpu.memory_space<vmem>>, vector<1x500xf32>
    %cst_31 = arith.constant dense<0.000000e+00> : vector<500xf32>
    %47 = vector.multi_reduction <add>, %44, %cst_31 [0] : vector<8x500xf32> to vector<500xf32>
    %48 = vector.shape_cast %47 : vector<500xf32> to vector<1x500xf32>
    %cst_32 = arith.constant 8.000000e+00 : f32
    %49 = vector.broadcast %cst_32 : f32 to vector<1x500xf32>
    %50 = arith.divf %48, %49 : vector<1x500xf32>
    %51 = arith.mulf %44, %44 : vector<8x500xf32>
    %cst_33 = arith.constant dense<0.000000e+00> : vector<500xf32>
    %52 = vector.multi_reduction <add>, %51, %cst_33 [0] : vector<8x500xf32> to vector<500xf32>
    %53 = vector.shape_cast %52 : vector<500xf32> to vector<1x500xf32>
    %cst_34 = arith.constant 8.000000e+00 : f32
    %54 = vector.broadcast %cst_34 : f32 to vector<1x500xf32>
    %55 = arith.divf %53, %54 : vector<1x500xf32>
    %56 = arith.mulf %50, %50 : vector<1x500xf32>
    %57 = arith.subf %55, %56 : vector<1x500xf32>
    %cst_35 = arith.constant 0.000000e+00 : f32
    %58 = vector.broadcast %cst_35 : f32 to vector<1x500xf32>
    %59 = arith.maximumf %57, %58 : vector<1x500xf32>
    %cst_36 = arith.constant 9.99999974E-6 : f32
    %60 = vector.broadcast %cst_36 : f32 to vector<1x500xf32>
    %61 = arith.addf %59, %60 : vector<1x500xf32>
    %62 = math.rsqrt %61 : vector<1x500xf32>
    %63 = arith.mulf %45, %62 : vector<1x500xf32>
    %64 = arith.mulf %50, %63 : vector<1x500xf32>
    %65 = arith.subf %46, %64 : vector<1x500xf32>
    %66 = vector.broadcast %63 : vector<1x500xf32> to vector<8x500xf32>
    %67 = arith.mulf %44, %66 : vector<8x500xf32>
    %68 = vector.broadcast %65 : vector<1x500xf32> to vector<8x500xf32>
    %69 = arith.addf %67, %68 : vector<8x500xf32>
    %70 = arith.truncf %69 : vector<8x500xf32> to vector<8x500xbf16>
    %c0_37 = arith.constant 0 : index
    %c0_38 = arith.constant 0 : index
    %71 = vector.load %arg11[%c0_37, %c0_38] : memref<500x100xbf16, #tpu.memory_space<vmem>>, vector<500x100xbf16>
    %cst_39 = arith.constant dense<0.000000e+00> : vector<8x100xf32>
    %72 = tpu.matmul %70, %71, %cst_39 {dimension_numbers = #tpu.dot_dimension_numbers<[1], [0], [0], [1], [0, 0, 1, 1], [], []>} : vector<8x500xbf16>, vector<500x100xbf16>, vector<8x100xf32> -> vector<8x100xf32>
    %c0_40 = arith.constant 0 : index
    %c0_41 = arith.constant 0 : index
    %73 = vector.load %arg12[%c0_40, %c0_41] : memref<1x100xf32, #tpu.memory_space<vmem>>, vector<1x100xf32>
    %74 = vector.broadcast %73 : vector<1x100xf32> to vector<8x100xf32>
    %75 = arith.addf %72, %74 : vector<8x100xf32>
    %cst_42 = arith.constant 0.000000e+00 : f32
    %76 = vector.broadcast %cst_42 : f32 to vector<8x100xf32>
    %77 = arith.maximumf %75, %76 : vector<8x100xf32>
    %c0_43 = arith.constant 0 : index
    %c0_44 = arith.constant 0 : index
    %78 = vector.load %arg13[%c0_43, %c0_44] : memref<1x100xf32, #tpu.memory_space<vmem>>, vector<1x100xf32>
    %c0_45 = arith.constant 0 : index
    %c0_46 = arith.constant 0 : index
    %79 = vector.load %arg14[%c0_45, %c0_46] : memref<1x100xf32, #tpu.memory_space<vmem>>, vector<1x100xf32>
    %cst_47 = arith.constant dense<0.000000e+00> : vector<100xf32>
    %80 = vector.multi_reduction <add>, %77, %cst_47 [0] : vector<8x100xf32> to vector<100xf32>
    %81 = vector.shape_cast %80 : vector<100xf32> to vector<1x100xf32>
    %cst_48 = arith.constant 8.000000e+00 : f32
    %82 = vector.broadcast %cst_48 : f32 to vector<1x100xf32>
    %83 = arith.divf %81, %82 : vector<1x100xf32>
    %84 = arith.mulf %77, %77 : vector<8x100xf32>
    %cst_49 = arith.constant dense<0.000000e+00> : vector<100xf32>
    %85 = vector.multi_reduction <add>, %84, %cst_49 [0] : vector<8x100xf32> to vector<100xf32>
    %86 = vector.shape_cast %85 : vector<100xf32> to vector<1x100xf32>
    %cst_50 = arith.constant 8.000000e+00 : f32
    %87 = vector.broadcast %cst_50 : f32 to vector<1x100xf32>
    %88 = arith.divf %86, %87 : vector<1x100xf32>
    %89 = arith.mulf %83, %83 : vector<1x100xf32>
    %90 = arith.subf %88, %89 : vector<1x100xf32>
    %cst_51 = arith.constant 0.000000e+00 : f32
    %91 = vector.broadcast %cst_51 : f32 to vector<1x100xf32>
    %92 = arith.maximumf %90, %91 : vector<1x100xf32>
    %cst_52 = arith.constant 9.99999974E-6 : f32
    %93 = vector.broadcast %cst_52 : f32 to vector<1x100xf32>
    %94 = arith.addf %92, %93 : vector<1x100xf32>
    %95 = math.rsqrt %94 : vector<1x100xf32>
    %96 = arith.mulf %78, %95 : vector<1x100xf32>
    %97 = arith.mulf %83, %96 : vector<1x100xf32>
    %98 = arith.subf %79, %97 : vector<1x100xf32>
    %99 = vector.broadcast %96 : vector<1x100xf32> to vector<8x100xf32>
    %100 = arith.mulf %77, %99 : vector<8x100xf32>
    %101 = vector.broadcast %98 : vector<1x100xf32> to vector<8x100xf32>
    %102 = arith.addf %100, %101 : vector<8x100xf32>
    %103 = arith.truncf %102 : vector<8x100xf32> to vector<8x100xbf16>
    %c0_53 = arith.constant 0 : index
    %c0_54 = arith.constant 0 : index
    %104 = vector.load %arg15[%c0_53, %c0_54] : memref<100x15xbf16, #tpu.memory_space<vmem>>, vector<100x15xbf16>
    %cst_55 = arith.constant dense<0.000000e+00> : vector<8x15xf32>
    %105 = tpu.matmul %103, %104, %cst_55 {dimension_numbers = #tpu.dot_dimension_numbers<[1], [0], [0], [1], [0, 0, 1, 1], [], []>} : vector<8x100xbf16>, vector<100x15xbf16>, vector<8x15xf32> -> vector<8x15xf32>
    %c0_56 = arith.constant 0 : index
    %c0_57 = arith.constant 0 : index
    %106 = vector.load %arg16[%c0_56, %c0_57] : memref<1x15xf32, #tpu.memory_space<vmem>>, vector<1x15xf32>
    %107 = vector.broadcast %106 : vector<1x15xf32> to vector<8x15xf32>
    %108 = arith.addf %105, %107 : vector<8x15xf32>
    %c0_58 = arith.constant 0 : index
    %c0_59 = arith.constant 0 : index
    %109 = vector.load %arg17[%c0_58, %c0_59] : memref<8x15xf32, #tpu.memory_space<vmem>>, vector<8x15xf32>
    tpu.vector_store %arg17[%c0_58, %c0_59], %108 {strides = array<i32>} : memref<8x15xf32, #tpu.memory_space<vmem>>, vector<8x15xf32>,
    return
  }
}

</mosaic_0001>

<bundles_post_ra>
// kernel: survnet2_forward.1
= control target key start
LH: loop header
LB: loop body
LE: loop exit
PB: predicated region body
PF: predicated region fallthrough
CT: control target
= control target key end

     0   :  { %s7176_s0 = inlined_call_operand.vmem [shape: bf16[8,244], index: 0, kind: input, shape index: {}]   ;;  %s7177_s1 = inlined_call_operand.vmem [shape: bf16[8,30], index: 1, kind: input, shape index: {}]   ;;  %s7178_s2 = inlined_call_operand.hbm [shape: bf16[244,1000], index: 2, kind: input, shape index: {}]   ;;  %s7179_s3 = inlined_call_operand.vmem [shape: f32[1,1000], index: 3, kind: input, shape index: {}]   ;;  %s7180_s4 = inlined_call_operand.vmem [shape: f32[1,1000], index: 4, kind: input, shape index: {}]   ;;  %s7181_s5 = inlined_call_operand.vmem [shape: f32[1,1000], index: 5, kind: input, shape index: {}]   ;;  %s7182_s6 = inlined_call_operand.hbm [shape: bf16[1000,500], index: 6, kind: input, shape index: {}]   ;;  %s7183_s7 = inlined_call_operand.vmem [shape: bf16[30,500], index: 7, kind: input, shape index: {}]   ;;  %s7184_s8 = inlined_call_operand.vmem [shape: f32[1,500], index: 8, kind: input, shape index: {}]   ;;  %s7185_s9 = inlined_call_operand.vmem [shape: f32[1,500], index: 9, kind: input, shape index: {}]   ;;  %s7186_s10 = inlined_call_operand.vmem [shape: f32[1,500], index: 10, kind: input, shape index: {}]   ;;  %s7187_s11 = inlined_call_operand.vmem [shape: bf16[500,100], index: 11, kind: input, shape index: {}]   ;;  %s7188_s12 = inlined_call_operand.vmem [shape: f32[1,100], index: 12, kind: input, shape index: {}]   ;;  %s7189_s13 = inlined_call_operand.vmem [shape: f32[1,100], index: 13, kind: input, shape index: {}]   ;;  %s7190_s14 = inlined_call_operand.vmem [shape: f32[1,100], index: 14, kind: input, shape index: {}]   ;;  %s7191_s15 = inlined_call_operand.vmem [shape: bf16[100,15], index: 15, kind: input, shape index: {}]   ;;  %s7192_s16 = inlined_call_operand.vmem [shape: f32[1,15], index: 16, kind: input, shape index: {}]   ;;  %s7193_s17 = inlined_call_operand.hbm [shape: f32[8,15], index: 17, kind: output, shape index: {}]  }
   0x1   :  { %7194 = sst [smem:[#allocation11_spill]] %s7176_s0 }
   0x2   :  { %7195 = sst [smem:[#allocation12_spill]] %s7177_s1 }
   0x3   :  { %22 = vsyncpa [#allocation3], 0 }
   0x4   :  { %23 = vsyncpa [#allocation6], 0 }
   0x5   :  { %24 = vsyncpa [#allocation4], 0  ;;  %s33_s26 = sshll.u32 %s7178_s2, 4  ;;  %s6364_s27 = smov [#allocation2]   ;;  %s34_s26 = int_to_ptr.hbm [resolvable:$true] %s33_s26 }
   0x6   :  { %s35_s28 = sshll.u32 %s6364_s27, 4  ;;  %s52_s30 = sshll.u32 %s7182_s6, 4  ;;  %s36_s28 = int_to_ptr.vmem [resolvable:$true] %s35_s28  ;;  %s53_s30 = int_to_ptr.hbm [resolvable:$true] %s52_s30 }
   0x7   :  { %s6365_s18 = smov 512   ;;  %s6366_s19 = smov 32  }
   0x8   :  { %41 = dma.hbm_to_vmem [thread:$0]  %s34_s26, 15872, %s36_s28, [#allocation3], %s6365_s18, %s6365_s18, %s6366_s19  }
   0x9   :  { %s6367_s1 = smov [#allocation5]   ;;  %s6368_s21 = smov 256  }
   0xa   :  { %s54_s20 = sshll.u32 %s6367_s1, 4  ;;  %s6369_s22 = smov 16   ;;  %s55_s20 = int_to_ptr.vmem [resolvable:$true] %s54_s20 }
   0xb   :  { %60 = dma.hbm_to_vmem [thread:$0]  %s53_s30, 32000, %s55_s20, [#allocation6], %s6368_s21, %s6368_s21, %s6369_s22  }
   0xc   :  { %6358 = dma.done.wait [#allocation3], 15872  }
   0xd   :  { %6359 = vsyncadd [#allocation3], 4294951424 }
   0xe   :  { %6360 = dma.done.wait [#allocation6], 32000  }
   0xf   :  { %6361 = vsyncadd [#allocation6], 4294935296  ;;  %v4391_v0 = vld [vmem:[#allocation2 + $0x1c0] sm:$0xf]  ;;  %v5891_v2 = vld [vmem:[#allocation2 + $0x1c4] sm:$0xf] }
  0x10   :  { %v5895_v1 = vld [vmem:[#allocation2 + $0x1dc] sm:$0xf0]  ;;  %v4393_v4 = vld [vmem:[#allocation2 + $0x1e0] sm:$0xf0]  ;;  %vm864_vm0 = vcmask 1041408   ;;  %s7196_s23 = sld [smem:[#allocation11_spill]] }
  0x11   :  { %v4392_v3 = vor.u32 %v5895_v1, %v4391_v0  ;;  %v212_v5 = vld [vmem:[#allocation2 + $0x3c0] sm:$0x33]  ;;  %v4396_v7 = vor.u32 %v5891_v2, %v4393_v4  ;;  %vm860_vm1 = vcmask 949248   ;;  %vm1364_vm9 = vcmask 1040384   ;;  %s7203_s30 = sld [smem:[#allocation12_spill]] }
  0x12   :  { %v4359_v6 = vld [vmem:[#allocation2 + $0x180] sm:$0xf]  ;;  %v604_v8 = vunpack.c.l.b16 %v212_v5  ;;  %v605_v9 = vunpack.c.h.b16 %v212_v5  ;;  %v5883_v11 = vld [vmem:[#allocation2 + $0x184] sm:$0xf]  ;;  %vm1767_vm11 = vcmask 1046528   ;;  %vm1366_vm15 = vcmask 1042434  }
  0x13   :  { %v5887_v10 = vld [vmem:[#allocation2 + $0x19c] sm:$0xf0]  ;;  %v4361_v12 = vld [vmem:[#allocation2 + $0x1a0] sm:$0xf0]  ;;  %889 = vmatpush.bf16.msra.mxu0 %v4392_v3  ;;  %915 = vmatpush.bf16.msra.mxu2 %v4396_v7 }
  0x14   :  { %v4615_v13 = vld [vmem:[#allocation2 + $0x380] sm:$0xf]  ;;  %v732_v15 = vpack.c.b16 %v604_v8, %v604_v8  ;;  %v733_v16 = vpack.c.b16 %v605_v9, %v605_v9  ;;  %v4360_v17 = vor.u32 %v5887_v10, %v4359_v6  ;;  %v4364_v18 = vor.u32 %v5883_v11, %v4361_v12  ;;  %v5947_v19 = vld [vmem:[#allocation2 + $0x384] sm:$0xf]  ;;  %v213_v11 = vld [vmem:[#allocation2 + $0x3c8] sm:$0x33] }
  0x15   :  { %v5951_v14 = vld [vmem:[#allocation2 + $0x39c] sm:$0xf0]  ;;  %v4617_v20 = vld [vmem:[#allocation2 + $0x3a0] sm:$0xf0] }
  0x16   :  { %v4327_v21 = vld [vmem:[#allocation2 + $0x140] sm:$0xf]  ;;  %v5875_v23 = vld [vmem:[#allocation2 + $0x144] sm:$0xf]  ;;  %v866_v25 = vsel %vm864_vm0, %v732_v15, 0  ;;  %v869_v26 = vsel %vm864_vm0, %v733_v16, 0  ;;  %v4616_v27 = vor.u32 %v5951_v14, %v4615_v13  ;;  %v4620_v28 = vor.u32 %v5947_v19, %v4617_v20 }
  0x17   :  { %v5879_v22 = vld [vmem:[#allocation2 + $0x15c] sm:$0xf0]  ;;  %v4329_v24 = vld [vmem:[#allocation2 + $0x160] sm:$0xf0]  ;;  %902 = vmatpush.bf16.msra.mxu1 %v866_v25  ;;  %928 = vmatpush.bf16.msra.mxu3 %v869_v26  ;;  %v606_v25 = vunpack.c.l.b16 %v213_v11  ;;  %v607_v26 = vunpack.c.h.b16 %v213_v11  ;;  %v5868_v11 = vld [vmem:[#allocation2 + $0x10c] sm:$0xf] }
  0x18   :  { %v4583_v29 = vld [vmem:[#allocation2 + $0x340] sm:$0xf]  ;;  %890 = vmatpush.bf16.msra.mxu0 %v4360_v17  ;;  %916 = vmatpush.bf16.msra.mxu2 %v4364_v18  ;;  %v4328_v31 = vor.u32 %v5879_v22, %v4327_v21  ;;  %v4332_v32 = vor.u32 %v5875_v23, %v4329_v24  ;;  %v5939_v33 = vld [vmem:[#allocation2 + $0x344] sm:$0xf]  ;;  %v4399_v24 = vld [vmem:[#allocation2 + $0x1c8] sm:$0xf] }
  0x19   :  { %v5943_v30 = vld [vmem:[#allocation2 + $0x35c] sm:$0xf0]  ;;  %v4585_v34 = vld [vmem:[#allocation2 + $0x360] sm:$0xf0] }
  0x1a   :  { %v4295_v35 = vld [vmem:[#allocation2 + $0x100] sm:$0xf]  ;;  %v5867_v37 = vld [vmem:[#allocation2 + $0x104] sm:$0xf]  ;;  %v4584_v39 = vor.u32 %v5943_v30, %v4583_v29  ;;  %v4588_v40 = vor.u32 %v5939_v33, %v4585_v34  ;;  %v4401_v29 = vld [vmem:[#allocation2 + $0x1e8] sm:$0xf0] }
  0x1b   :  { %v5871_v36 = vld [vmem:[#allocation2 + $0x11c] sm:$0xf0]  ;;  %v4297_v38 = vld [vmem:[#allocation2 + $0x120] sm:$0xf0]  ;;  %903 = vmatpush.bf16.msra.mxu1 %v4616_v27  ;;  %929 = vmatpush.bf16.msra.mxu3 %v4620_v28  ;;  %v5896_v27 = vld [vmem:[#allocation2 + $0x1e4] sm:$0xf0] }
  0x1c   :  { %v4551_v41 = vld [vmem:[#allocation2 + $0x300] sm:$0xf]  ;;  %891 = vmatpush.bf16.msra.mxu0 %v4328_v31  ;;  %917 = vmatpush.bf16.msra.mxu2 %v4332_v32  ;;  %v4296_v43 = vor.u32 %v5871_v36, %v4295_v35  ;;  %v4300_v44 = vor.u32 %v5867_v37, %v4297_v38  ;;  %v5931_v45 = vld [vmem:[#allocation2 + $0x304] sm:$0xf]  ;;  %v5892_v28 = vld [vmem:[#allocation2 + $0x1cc] sm:$0xf] }
  0x1d   :  { %v5935_v42 = vld [vmem:[#allocation2 + $0x31c] sm:$0xf0]  ;;  %v4553_v46 = vld [vmem:[#allocation2 + $0x320] sm:$0xf0] }
  0x1e   :  { %v4263_v47 = vld [vmem:[#allocation2 + $0xc0] sm:$0xf]  ;;  %v5859_v49 = vld [vmem:[#allocation2 + $0xc4] sm:$0xf]  ;;  %v4552_v51 = vor.u32 %v5935_v42, %v4551_v41  ;;  %v4556_v52 = vor.u32 %v5931_v45, %v4553_v46  ;;  %v734_v41 = vpack.c.b16 %v606_v25, %v606_v25  ;;  %v735_v42 = vpack.c.b16 %v607_v26, %v607_v26  ;;  %v5884_v45 = vld [vmem:[#allocation2 + $0x18c] sm:$0xf] }
  0x1f   :  { %v5863_v48 = vld [vmem:[#allocation2 + $0xdc] sm:$0xf0]  ;;  %v4265_v50 = vld [vmem:[#allocation2 + $0xe0] sm:$0xf0]  ;;  %904 = vmatpush.bf16.msra.mxu1 %v4584_v39  ;;  %930 = vmatpush.bf16.msra.mxu3 %v4588_v40  ;;  %v4400_v39 = vor.u32 %v5896_v27, %v4399_v24  ;;  %v4404_v40 = vor.u32 %v5892_v28, %v4401_v29  ;;  %v4369_v46 = vld [vmem:[#allocation2 + $0x1a8] sm:$0xf0] }
  0x20   :  { %v4519_v53 = vld [vmem:[#allocation2 + $0x2c0] sm:$0xf]  ;;  %892 = vmatpush.bf16.msra.mxu0 %v4296_v43  ;;  %918 = vmatpush.bf16.msra.mxu2 %v4300_v44  ;;  %v4264_v55 = vor.u32 %v5863_v48, %v4263_v47  ;;  %v4268_v56 = vor.u32 %v5859_v49, %v4265_v50  ;;  %v5923_v57 = vld [vmem:[#allocation2 + $0x2c4] sm:$0xf]  ;;  %v4367_v43 = vld [vmem:[#allocation2 + $0x188] sm:$0xf] }
  0x21   :  { %v5927_v54 = vld [vmem:[#allocation2 + $0x2dc] sm:$0xf0]  ;;  %v4521_v58 = vld [vmem:[#allocation2 + $0x2e0] sm:$0xf0]  ;;  %v5888_v44 = vld [vmem:[#allocation2 + $0x1a4] sm:$0xf0] }
  0x22   :  { %v4231_v59 = vld [vmem:[#allocation2 + $0x80] sm:$0xf]  ;;  %v5851_v61 = vld [vmem:[#allocation2 + $0x84] sm:$0xf]  ;;  %v4520_v63 = vor.u32 %v5927_v54, %v4519_v53  ;;  %v4524_v0 = vor.u32 %v5923_v57, %v4521_v58  ;;  %v5948_v53 = vld [vmem:[#allocation2 + $0x38c] sm:$0xf]  ;;  %v4372_v57 = vor.u32 %v5884_v45, %v4369_v46 }
  0x23   :  { %v5855_v60 = vld [vmem:[#allocation2 + $0x9c] sm:$0xf0]  ;;  %v4233_v62 = vld [vmem:[#allocation2 + $0xa0] sm:$0xf0]  ;;  %905 = vmatpush.bf16.msra.mxu1 %v4552_v51  ;;  %931 = vmatpush.bf16.msra.mxu3 %v4556_v52  ;;  %v4623_v51 = vld [vmem:[#allocation2 + $0x388] sm:$0xf] }
  0x24   :  { %v4487_v1 = vld [vmem:[#allocation2 + $0x280] sm:$0xf]  ;;  %893 = vmatpush.bf16.msra.mxu0 %v4264_v55  ;;  %919 = vmatpush.bf16.msra.mxu2 %v4268_v56  ;;  %v4232_v3 = vor.u32 %v5855_v60, %v4231_v59  ;;  %v4236_v4 = vor.u32 %v5851_v61, %v4233_v62  ;;  %v5915_v5 = vld [vmem:[#allocation2 + $0x284] sm:$0xf]  ;;  %v5952_v52 = vld [vmem:[#allocation2 + $0x3a4] sm:$0xf0]  ;;  %v4368_v56 = vor.u32 %v5888_v44, %v4367_v43 }
  0x25   :  { %v5919_v2 = vld [vmem:[#allocation2 + $0x29c] sm:$0xf0]  ;;  %v4489_v6 = vld [vmem:[#allocation2 + $0x2a0] sm:$0xf0]  ;;  %v872_v54 = vsel %vm864_vm0, %v734_v41, 0  ;;  %v875_v55 = vsel %vm864_vm0, %v735_v42, 0 }
  0x26   :  { %v4199_v7 = vld [vmem:[#allocation2 + $0x40] sm:$0xf]  ;;  %v5843_v9 = vld [vmem:[#allocation2 + $0x44] sm:$0xf]  ;;  %v4488_v12 = vor.u32 %v5919_v2, %v4487_v1  ;;  %v4492_v13 = vor.u32 %v5915_v5, %v4489_v6  ;;  %v4625_v58 = vld [vmem:[#allocation2 + $0x3a8] sm:$0xf0]  ;;  %v4624_v1 = vor.u32 %v5952_v52, %v4623_v51 }
  0x27   :  { %v5847_v8 = vld [vmem:[#allocation2 + $0x5c] sm:$0xf0]  ;;  %v4201_v10 = vld [vmem:[#allocation2 + $0x60] sm:$0xf0]  ;;  %906 = vmatpush.bf16.msra.mxu1 %v4520_v63  ;;  %932 = vmatpush.bf16.msra.mxu3 %v4524_v0  ;;  %v4335_v59 = vld [vmem:[#allocation2 + $0x148] sm:$0xf]  ;;  %v4628_v2 = vor.u32 %v5948_v53, %v4625_v58 }
  0x28   :  { %v4455_v14 = vld [vmem:[#allocation2 + $0x240] sm:$0xf]  ;;  %v5907_v16 = vld [vmem:[#allocation2 + $0x244] sm:$0xf]  ;;  %894 = vmatpush.bf16.msra.mxu0 %v4232_v3  ;;  %920 = vmatpush.bf16.msra.mxu2 %v4236_v4  ;;  %v4200_v17 = vor.u32 %v5847_v8, %v4199_v7  ;;  %v4204_v18 = vor.u32 %v5843_v9, %v4201_v10  ;;  %v5880_v61 = vld [vmem:[#allocation2 + $0x164] sm:$0xf0] }
  0x29   :  { %v5911_v15 = vld [vmem:[#allocation2 + $0x25c] sm:$0xf0]  ;;  %v4457_v19 = vld [vmem:[#allocation2 + $0x260] sm:$0xf0]  ;;  %v5876_v62 = vld [vmem:[#allocation2 + $0x14c] sm:$0xf]  ;;  %v4336_v5 = vor.u32 %v5880_v61, %v4335_v59 }
  0x2a   :  { %v4167_v20 = vld [vmem:[#allocation2] sm:$0xf]  ;;  %v5835_v22 = vld [vmem:[#allocation2 + $0x4] sm:$0xf]  ;;  %v4456_v30 = vor.u32 %v5911_v15, %v4455_v14  ;;  %v4460_v31 = vor.u32 %v5907_v16, %v4457_v19  ;;  %v4337_v63 = vld [vmem:[#allocation2 + $0x168] sm:$0xf0] }
  0x2b   :  { %v5839_v21 = vld [vmem:[#allocation2 + $0x1c] sm:$0xf0]  ;;  %v4169_v23 = vld [vmem:[#allocation2 + $0x20] sm:$0xf0]  ;;  %907 = vmatpush.bf16.msra.mxu1 %v4488_v12  ;;  %933 = vmatpush.bf16.msra.mxu3 %v4492_v13  ;;  %v4591_v3 = vld [vmem:[#allocation2 + $0x348] sm:$0xf]  ;;  %v4340_v6 = vor.u32 %v5876_v62, %v4337_v63 }
  0x2c   :  { %v4423_v32 = vld [vmem:[#allocation2 + $0x200] sm:$0xf]  ;;  %895 = vmatpush.bf16.msra.mxu0 %v4200_v17  ;;  %921 = vmatpush.bf16.msra.mxu2 %v4204_v18  ;;  %v4168_v34 = vor.u32 %v5839_v21, %v4167_v20  ;;  %v4172_v35 = vor.u32 %v5835_v22, %v4169_v23  ;;  %v5899_v37 = vld [vmem:[#allocation2 + $0x204] sm:$0xf]  ;;  %v5944_v4 = vld [vmem:[#allocation2 + $0x364] sm:$0xf0] }
  0x2d   :  { %v90_v33 = vld [vmem:[%s7196_s23] sm:$0xff]  ;;  %v5940_v7 = vld [vmem:[#allocation2 + $0x34c] sm:$0xf]  ;;  %v4303_v9 = vld [vmem:[#allocation2 + $0x108] sm:$0xf]  ;;  %v4592_v13 = vor.u32 %v5944_v4, %v4591_v3 }
  0x2e   :  { %v5903_v36 = vld [vmem:[#allocation2 + $0x21c] sm:$0xf0]  ;;  %v4425_v38 = vld [vmem:[#allocation2 + $0x220] sm:$0xf0]  ;;  %v235_v47 = vunpack.c.l.b16 %v90_v33  ;;  %v236_v48 = vunpack.c.h.b16 %v90_v33  ;;  %v4593_v8 = vld [vmem:[#allocation2 + $0x368] sm:$0xf0] }
  0x2f   :  { %908 = vmatpush.bf16.msra.mxu1 %v4456_v30  ;;  %934 = vmatpush.bf16.msra.mxu3 %v4460_v31  ;;  %v4424_v49 = vor.u32 %v5903_v36, %v4423_v32  ;;  %v4428_v50 = vor.u32 %v5899_v37, %v4425_v38  ;;  %v5872_v10 = vld [vmem:[#allocation2 + $0x124] sm:$0xf0]  ;;  %v4305_v12 = vld [vmem:[#allocation2 + $0x128] sm:$0xf0]  ;;  %v4596_v14 = vor.u32 %v5940_v7, %v4593_v8  ;;  %v4407_v63 = vld [vmem:[#allocation2 + $0x1d0] sm:$0xf] }
  0x30   :  { %896 = vmatpush.bf16.msra.mxu0 %v4168_v34  ;;  %922 = vmatpush.bf16.msra.mxu2 %v4172_v35  ;;  %v6475_v60 = vpack.c.b16 %v235_v47, %v235_v47  ;;  %v6477_v0 = vpack.c.b16 %v236_v48, %v236_v48  ;;  %v4559_v15 = vld [vmem:[#allocation2 + $0x308] sm:$0xf]  ;;  %v4304_v17 = vor.u32 %v5872_v10, %v4303_v9  ;;  %v5932_v19 = vld [vmem:[#allocation2 + $0x30c] sm:$0xf]  ;;  %v5893_v3 = vld [vmem:[#allocation2 + $0x1d4] sm:$0xf] }
  0x31   :  { %v5936_v16 = vld [vmem:[#allocation2 + $0x324] sm:$0xf0]  ;;  %v4308_v18 = vor.u32 %v5868_v11, %v4305_v12  ;;  %v4561_v20 = vld [vmem:[#allocation2 + $0x328] sm:$0xf0]  ;;  %v4409_v4 = vld [vmem:[#allocation2 + $0x1f0] sm:$0xf0] }
  0x32   :  { %v4271_v21 = vld [vmem:[#allocation2 + $0xc8] sm:$0xf]  ;;  %v5860_v23 = vld [vmem:[#allocation2 + $0xcc] sm:$0xf]  ;;  %v4560_v25 = vor.u32 %v5936_v16, %v4559_v15  ;;  %v4564_v26 = vor.u32 %v5932_v19, %v4561_v20  ;;  %v4412_v15 = vor.u32 %v5893_v3, %v4409_v4  ;;  %v5889_v19 = vld [vmem:[#allocation2 + $0x1ac] sm:$0xf0] }
  0x33   :  { %909 = vmatpush.bf16.msra.mxu1 %v4424_v49  ;;  %935 = vmatpush.bf16.msra.mxu3 %v4428_v50  ;;  %v5864_v22 = vld [vmem:[#allocation2 + $0xe4] sm:$0xf0]  ;;  %v4273_v24 = vld [vmem:[#allocation2 + $0xe8] sm:$0xf0]  ;;  %v214_v49 = vld [vmem:[#allocation2 + $0x3d0] sm:$0x33] }
  0x34   :  { %941 = vmatpush.bf16.msrb.mxu0 %v4400_v39  ;;  %967 = vmatpush.bf16.msrb.mxu2 %v4404_v40  ;;  %v4527_v27 = vld [vmem:[#allocation2 + $0x2c8] sm:$0xf]  ;;  %v4272_v29 = vor.u32 %v5864_v22, %v4271_v21  ;;  %v4276_v30 = vor.u32 %v5860_v23, %v4273_v24  ;;  %v5924_v31 = vld [vmem:[#allocation2 + $0x2cc] sm:$0xf]  ;;  %v5885_v22 = vld [vmem:[#allocation2 + $0x194] sm:$0xf] }
  0x35   :  { %923 = vmatmul.bf16.vlgmr.msra.gmra.mxu2 %v6475_v60  ;;  %897 = vmatmul.bf16.vlgmr.msra.gmra.mxu0 %v6475_v60  ;;  %v5928_v28 = vld [vmem:[#allocation2 + $0x2e4] sm:$0xf0]  ;;  %v4529_v32 = vld [vmem:[#allocation2 + $0x2e8] sm:$0xf0]  ;;  %v4377_v23 = vld [vmem:[#allocation2 + $0x1b0] sm:$0xf0] }
  0x36   :  { %4646 = vmatmul.msk.bf16.vlgmr.msra.gmra.mxu3 %vm860_vm1, %v6477_v0  ;;  %4645 = vmatmul.msk.bf16.vlgmr.msra.gmra.mxu1 %vm860_vm1, %v6477_v0  ;;  %v4239_v33 = vld [vmem:[#allocation2 + $0x88] sm:$0xf]  ;;  %v5852_v35 = vld [vmem:[#allocation2 + $0x8c] sm:$0xf]  ;;  %v4528_v37 = vor.u32 %v5928_v28, %v4527_v27  ;;  %v4532_v38 = vor.u32 %v5924_v31, %v4529_v32  ;;  %v4631_v24 = vld [vmem:[#allocation2 + $0x390] sm:$0xf]  ;;  %v4380_v31 = vor.u32 %v5885_v22, %v4377_v23 }
  0x37   :  { %954 = vmatpush.bf16.msrb.mxu1 %v872_v54  ;;  %980 = vmatpush.bf16.msrb.mxu3 %v875_v55  ;;  %v5856_v34 = vld [vmem:[#allocation2 + $0xa4] sm:$0xf0]  ;;  %v4241_v36 = vld [vmem:[#allocation2 + $0xa8] sm:$0xf0]  ;;  %v5949_v28 = vld [vmem:[#allocation2 + $0x394] sm:$0xf] }
  0x38   :  { %942 = vmatpush.bf16.msrb.mxu0 %v4368_v56  ;;  %968 = vmatpush.bf16.msrb.mxu2 %v4372_v57  ;;  %v4495_v39 = vld [vmem:[#allocation2 + $0x288] sm:$0xf]  ;;  %v4240_v41 = vor.u32 %v5856_v34, %v4239_v33  ;;  %v4244_v42 = vor.u32 %v5852_v35, %v4241_v36  ;;  %v5916_v43 = vld [vmem:[#allocation2 + $0x28c] sm:$0xf]  ;;  %v4343_v32 = vld [vmem:[#allocation2 + $0x150] sm:$0xf] }
  0x39   :  { %v5920_v40 = vld [vmem:[#allocation2 + $0x2a4] sm:$0xf0]  ;;  %v4497_v44 = vld [vmem:[#allocation2 + $0x2a8] sm:$0xf0]  ;;  %v5881_v33 = vld [vmem:[#allocation2 + $0x16c] sm:$0xf0] }
  0x3a   :  { %v4207_v45 = vld [vmem:[#allocation2 + $0x48] sm:$0xf]  ;;  %v5844_v47 = vld [vmem:[#allocation2 + $0x4c] sm:$0xf]  ;;  %v4496_v50 = vor.u32 %v5920_v40, %v4495_v39  ;;  %v4500_v51 = vor.u32 %v5916_v43, %v4497_v44  ;;  %v5877_v34 = vld [vmem:[#allocation2 + $0x154] sm:$0xf] }
  0x3b   :  { %955 = vmatpush.bf16.msrb.mxu1 %v4624_v1  ;;  %981 = vmatpush.bf16.msrb.mxu3 %v4628_v2  ;;  %v5848_v46 = vld [vmem:[#allocation2 + $0x64] sm:$0xf0]  ;;  %v4209_v48 = vld [vmem:[#allocation2 + $0x68] sm:$0xf0]  ;;  %v608_v1 = vunpack.c.l.b16 %v214_v49  ;;  %v5897_v2 = vld [vmem:[#allocation2 + $0x1ec] sm:$0xf0] }
  0x3c   :  { %943 = vmatpush.bf16.msrb.mxu0 %v4336_v5  ;;  %969 = vmatpush.bf16.msrb.mxu2 %v4340_v6  ;;  %v4463_v52 = vld [vmem:[#allocation2 + $0x248] sm:$0xf]  ;;  %v5908_v54 = vld [vmem:[#allocation2 + $0x24c] sm:$0xf]  ;;  %v4208_v55 = vor.u32 %v5848_v46, %v4207_v45  ;;  %v4212_v56 = vor.u32 %v5844_v47, %v4209_v48  ;;  %v609_v5 = vunpack.c.h.b16 %v214_v49  ;;  %v4345_v35 = vld [vmem:[#allocation2 + $0x170] sm:$0xf0] }
  0x3d   :  { %v5912_v53 = vld [vmem:[#allocation2 + $0x264] sm:$0xf0]  ;;  %v4465_v57 = vld [vmem:[#allocation2 + $0x268] sm:$0xf0]  ;;  %v736_v16 = vpack.c.b16 %v608_v1, %v608_v1  ;;  %v4599_v39 = vld [vmem:[#allocation2 + $0x350] sm:$0xf] }
  0x3e   :  { %v4175_v58 = vld [vmem:[#allocation2 + $0x8] sm:$0xf]  ;;  %v5836_v61 = vld [vmem:[#allocation2 + $0xc] sm:$0xf]  ;;  %v4464_v6 = vor.u32 %v5912_v53, %v4463_v52  ;;  %v4468_v7 = vor.u32 %v5908_v54, %v4465_v57  ;;  %v5945_v40 = vld [vmem:[#allocation2 + $0x36c] sm:$0xf0] }
  0x3f   :  { %956 = vmatpush.bf16.msrb.mxu1 %v4592_v13  ;;  %982 = vmatpush.bf16.msrb.mxu3 %v4596_v14  ;;  %v5840_v59 = vld [vmem:[#allocation2 + $0x24] sm:$0xf0]  ;;  %v4177_v62 = vld [vmem:[#allocation2 + $0x28] sm:$0xf0]  ;;  %v4408_v14 = vor.u32 %v5897_v2, %v4407_v63  ;;  %v4601_v43 = vld [vmem:[#allocation2 + $0x370] sm:$0xf0]  ;;  %v4600_v48 = vor.u32 %v5945_v40, %v4599_v39 }
  0x40   :  { %944 = vmatpush.bf16.msrb.mxu0 %v4304_v17  ;;  %970 = vmatpush.bf16.msrb.mxu2 %v4308_v18  ;;  %v4431_v8 = vld [vmem:[#allocation2 + $0x208] sm:$0xf]  ;;  %v4176_v9 = vor.u32 %v5840_v59, %v4175_v58  ;;  %v4180_v10 = vor.u32 %v5836_v61, %v4177_v62  ;;  %v5900_v12 = vld [vmem:[#allocation2 + $0x20c] sm:$0xf]  ;;  %v737_v17 = vpack.c.b16 %v609_v5, %v609_v5  ;;  %v4375_v18 = vld [vmem:[#allocation2 + $0x190] sm:$0xf] }
  0x41   :  { %v5904_v11 = vld [vmem:[#allocation2 + $0x224] sm:$0xf0]  ;;  %v4433_v13 = vld [vmem:[#allocation2 + $0x228] sm:$0xf0]  ;;  %v4376_v27 = vor.u32 %v5889_v19, %v4375_v18  ;;  %v4311_v44 = vld [vmem:[#allocation2 + $0x110] sm:$0xf] }
  0x42   :  { %v4432_v20 = vor.u32 %v5904_v11, %v4431_v8  ;;  %v4436_v21 = vor.u32 %v5900_v12, %v4433_v13  ;;  %v5873_v45 = vld [vmem:[#allocation2 + $0x12c] sm:$0xf0]  ;;  %v5869_v46 = vld [vmem:[#allocation2 + $0x114] sm:$0xf]  ;;  %v5894_v40 = vld [vmem:[#allocation2 + $0x1dc] sm:$0xf] }
  0x43   :  { %957 = vmatpush.bf16.msrb.mxu1 %v4560_v25  ;;  %983 = vmatpush.bf16.msrb.mxu3 %v4564_v26  ;;  %v5953_v25 = vld [vmem:[#allocation2 + $0x3ac] sm:$0xf0]  ;;  %v878_v26 = vsel %vm864_vm0, %v736_v16, 0  ;;  %v4313_v47 = vld [vmem:[#allocation2 + $0x130] sm:$0xf0]  ;;  %v4312_v52 = vor.u32 %v5873_v45, %v4311_v44 }
  0x44   :  { %945 = vmatpush.bf16.msrb.mxu0 %v4272_v29  ;;  %971 = vmatpush.bf16.msrb.mxu2 %v4276_v30  ;;  %v4633_v29 = vld [vmem:[#allocation2 + $0x3b0] sm:$0xf0]  ;;  %v881_v30 = vsel %vm864_vm0, %v737_v17, 0  ;;  %v4632_v36 = vor.u32 %v5953_v25, %v4631_v24  ;;  %v4567_v49 = vld [vmem:[#allocation2 + $0x310] sm:$0xf] }
  0x45   :  { %v5933_v53 = vld [vmem:[#allocation2 + $0x314] sm:$0xf]  ;;  %v5865_v57 = vld [vmem:[#allocation2 + $0xec] sm:$0xf0]  ;;  %v215_v24 = vld [vmem:[#allocation2 + $0x3d8] sm:$0x33] }
  0x46   :  { %v4569_v54 = vld [vmem:[#allocation2 + $0x330] sm:$0xf0]  ;;  %v4535_v1 = vld [vmem:[#allocation2 + $0x2d0] sm:$0xf] }
  0x47   :  { %958 = vmatpush.bf16.msrb.mxu1 %v4528_v37  ;;  %984 = vmatpush.bf16.msrb.mxu3 %v4532_v38  ;;  %v4636_v37 = vor.u32 %v5949_v28, %v4633_v29  ;;  %v4344_v38 = vor.u32 %v5881_v33, %v4343_v32  ;;  %v5861_v58 = vld [vmem:[#allocation2 + $0xd4] sm:$0xf]  ;;  %v4572_v62 = vor.u32 %v5933_v53, %v4569_v54  ;;  %v5929_v2 = vld [vmem:[#allocation2 + $0x2ec] sm:$0xf0]  ;;  %v4383_v53 = vld [vmem:[#allocation2 + $0x198] sm:$0xf] }
  0x48   :  { %946 = vmatpush.bf16.msrb.mxu0 %v4240_v41  ;;  %972 = vmatpush.bf16.msrb.mxu2 %v4244_v42  ;;  %v5941_v41 = vld [vmem:[#allocation2 + $0x354] sm:$0xf]  ;;  %v4348_v42 = vor.u32 %v5877_v34, %v4345_v35  ;;  %v4503_v13 = vld [vmem:[#allocation2 + $0x290] sm:$0xf]  ;;  %v4415_v35 = vld [vmem:[#allocation2 + $0x1d8] sm:$0xf] }
  0x49   :  { %v4281_v59 = vld [vmem:[#allocation2 + $0xf0] sm:$0xf0]  ;;  %v4215_v18 = vld [vmem:[#allocation2 + $0x50] sm:$0xf] }
  0x4a   :  { %v5925_v3 = vld [vmem:[#allocation2 + $0x2d4] sm:$0xf]  ;;  %v4284_v4 = vor.u32 %v5861_v58, %v4281_v59  ;;  %v5849_v19 = vld [vmem:[#allocation2 + $0x6c] sm:$0xf0]  ;;  %v4639_v59 = vld [vmem:[#allocation2 + $0x398] sm:$0xf] }
  0x4b   :  { %959 = vmatpush.bf16.msrb.mxu1 %v4496_v50  ;;  %985 = vmatpush.bf16.msrb.mxu3 %v4500_v51  ;;  %v5937_v50 = vld [vmem:[#allocation2 + $0x32c] sm:$0xf0]  ;;  %v4604_v51 = vor.u32 %v5941_v41, %v4601_v43  ;;  %v4537_v5 = vld [vmem:[#allocation2 + $0x2f0] sm:$0xf0]  ;;  %v4417_v41 = vld [vmem:[#allocation2 + $0x1f8] sm:$0xf0] }
  0x4c   :  { %947 = vmatpush.bf16.msrb.mxu0 %v4208_v55  ;;  %973 = vmatpush.bf16.msrb.mxu2 %v4212_v56  ;;  %v4279_v55 = vld [vmem:[#allocation2 + $0xd0] sm:$0xf]  ;;  %v4316_v56 = vor.u32 %v5869_v46, %v4313_v47  ;;  %v4568_v61 = vor.u32 %v5937_v50, %v4567_v49  ;;  %v5853_v8 = vld [vmem:[#allocation2 + $0x94] sm:$0xf]  ;;  %v4540_v11 = vor.u32 %v5925_v3, %v4537_v5  ;;  %v4351_v5 = vld [vmem:[#allocation2 + $0x158] sm:$0xf] }
  0x4d   :  { %v4280_v63 = vor.u32 %v5865_v57, %v4279_v55  ;;  %v4505_v17 = vld [vmem:[#allocation2 + $0x2b0] sm:$0xf0]  ;;  %v4471_v23 = vld [vmem:[#allocation2 + $0x250] sm:$0xf]  ;;  %v4420_v50 = vor.u32 %v5894_v40, %v4417_v41  ;;  %v5890_v55 = vld [vmem:[#allocation2 + $0x1b4] sm:$0xf0] }
  0x4e   :  { %v5909_v28 = vld [vmem:[#allocation2 + $0x254] sm:$0xf]  ;;  %v5841_v32 = vld [vmem:[#allocation2 + $0x2c] sm:$0xf0]  ;;  %v4385_v57 = vld [vmem:[#allocation2 + $0x1b8] sm:$0xf0] }
  0x4f   :  { %960 = vmatpush.bf16.msrb.mxu1 %v4464_v6  ;;  %986 = vmatpush.bf16.msrb.mxu3 %v4468_v7  ;;  %v4247_v6 = vld [vmem:[#allocation2 + $0x90] sm:$0xf]  ;;  %v4473_v29 = vld [vmem:[#allocation2 + $0x270] sm:$0xf0]  ;;  %v4545_v40 = vld [vmem:[#allocation2 + $0x2f8] sm:$0xf0] }
  0x50   :  { %948 = vmatpush.bf16.msrb.mxu0 %v4176_v9  ;;  %974 = vmatpush.bf16.msrb.mxu2 %v4180_v10  ;;  %v5857_v7 = vld [vmem:[#allocation2 + $0xac] sm:$0xf0]  ;;  %v4249_v9 = vld [vmem:[#allocation2 + $0xb0] sm:$0xf0]  ;;  %v4536_v10 = vor.u32 %v5929_v2, %v4535_v1  ;;  %v4384_v2 = vor.u32 %v5890_v55, %v4383_v53  ;;  %v4255_v41 = vld [vmem:[#allocation2 + $0x98] sm:$0xf] }
  0x51   :  { %v4248_v12 = vor.u32 %v5857_v7, %v4247_v6  ;;  %v4252_v16 = vor.u32 %v5853_v8, %v4249_v9  ;;  %v5837_v33 = vld [vmem:[#allocation2 + $0x14] sm:$0xf]  ;;  %v4439_v44 = vld [vmem:[#allocation2 + $0x210] sm:$0xf]  ;;  %v5882_v6 = vld [vmem:[#allocation2 + $0x174] sm:$0xf0] }
  0x52   :  { %v4185_v34 = vld [vmem:[#allocation2 + $0x30] sm:$0xf0]  ;;  %v5905_v45 = vld [vmem:[#allocation2 + $0x22c] sm:$0xf0]  ;;  %v5878_v7 = vld [vmem:[#allocation2 + $0x15c] sm:$0xf] }
  0x53   :  { %961 = vmatpush.bf16.msrb.mxu1 %v4432_v20  ;;  %987 = vmatpush.bf16.msrb.mxu3 %v4436_v21  ;;  %v5845_v20 = vld [vmem:[#allocation2 + $0x54] sm:$0xf]  ;;  %v4188_v46 = vor.u32 %v5837_v33, %v4185_v34  ;;  %v4440_v54 = vor.u32 %v5905_v45, %v4439_v44  ;;  %v4353_v8 = vld [vmem:[#allocation2 + $0x178] sm:$0xf0]  ;;  %v4223_v53 = vld [vmem:[#allocation2 + $0x58] sm:$0xf] }
  0x54   :  { %993 = vmatpush.bf16.msra.mxu0 %v4408_v14  ;;  %1019 = vmatpush.bf16.msra.mxu2 %v4412_v15  ;;  %v5921_v14 = vld [vmem:[#allocation2 + $0x2ac] sm:$0xf0]  ;;  %v5917_v15 = vld [vmem:[#allocation2 + $0x294] sm:$0xf]  ;;  %v4257_v44 = vld [vmem:[#allocation2 + $0xb8] sm:$0xf0] }
  0x55   :  { %975 = vmatmul.bf16.vlgmr.msrb.gmra.mxu2 %v6475_v60  ;;  %949 = vmatmul.bf16.vlgmr.msrb.gmra.mxu0 %v6475_v60  ;;  %v4217_v21 = vld [vmem:[#allocation2 + $0x70] sm:$0xf0]  ;;  %v4504_v22 = vor.u32 %v5921_v14, %v4503_v13  ;;  %v4508_v25 = vor.u32 %v5917_v15, %v4505_v17  ;;  %v4352_v13 = vor.u32 %v5882_v6, %v4351_v5  ;;  %v5942_v15 = vld [vmem:[#allocation2 + $0x35c] sm:$0xf]  ;;  %v4319_v17 = vld [vmem:[#allocation2 + $0x118] sm:$0xf] }
  0x56   :  { %4648 = vmatmul.msk.bf16.vlgmr.msrb.gmra.mxu3 %vm860_vm1, %v6477_v0  ;;  %4647 = vmatmul.msk.bf16.vlgmr.msrb.gmra.mxu1 %vm860_vm1, %v6477_v0  ;;  %v4441_v49 = vld [vmem:[#allocation2 + $0x230] sm:$0xf0]  ;;  %v4356_v14 = vor.u32 %v5878_v7, %v4353_v8  ;;  %v5846_v55 = vld [vmem:[#allocation2 + $0x5c] sm:$0xf] }
  0x57   :  { %1006 = vmatpush.bf16.msra.mxu1 %v878_v26  ;;  %1032 = vmatpush.bf16.msra.mxu3 %v881_v30  ;;  %v4216_v26 = vor.u32 %v5849_v19, %v4215_v18  ;;  %v4220_v30 = vor.u32 %v5845_v20, %v4217_v21  ;;  %v5874_v18 = vld [vmem:[#allocation2 + $0x134] sm:$0xf0]  ;;  %v5870_v19 = vld [vmem:[#allocation2 + $0x11c] sm:$0xf] }
  0x58   :  { %994 = vmatpush.bf16.msra.mxu0 %v4376_v27  ;;  %1020 = vmatpush.bf16.msra.mxu2 %v4380_v31  ;;  %v5913_v27 = vld [vmem:[#allocation2 + $0x26c] sm:$0xf0]  ;;  %v4321_v20 = vld [vmem:[#allocation2 + $0x138] sm:$0xf0] }
  0x59   :  { %v4183_v31 = vld [vmem:[#allocation2 + $0x10] sm:$0xf]  ;;  %v4472_v39 = vor.u32 %v5913_v27, %v4471_v23  ;;  %v4575_v23 = vld [vmem:[#allocation2 + $0x318] sm:$0xf]  ;;  %v5934_v27 = vld [vmem:[#allocation2 + $0x31c] sm:$0xf] }
  0x5a   :  { %v4184_v43 = vor.u32 %v5841_v32, %v4183_v31  ;;  %v5862_v31 = vld [vmem:[#allocation2 + $0xdc] sm:$0xf] }
  0x5b   :  { %1007 = vmatpush.bf16.msra.mxu1 %v4632_v36  ;;  %1033 = vmatpush.bf16.msra.mxu3 %v4636_v37  ;;  %v5898_v36 = vld [vmem:[#allocation2 + $0x1f4] sm:$0xf0]  ;;  %v610_v37 = vunpack.c.l.b16 %v215_v24  ;;  %v4289_v32 = vld [vmem:[#allocation2 + $0xf8] sm:$0xf0] }
  0x5c   :  { %995 = vmatpush.bf16.msra.mxu0 %v4344_v38  ;;  %1021 = vmatpush.bf16.msra.mxu2 %v4348_v42  ;;  %v611_v38 = vunpack.c.h.b16 %v215_v24  ;;  %v4476_v42 = vor.u32 %v5909_v28, %v4473_v29  ;;  %v4416_v47 = vor.u32 %v5898_v36, %v4415_v35  ;;  %v5938_v24 = vld [vmem:[#allocation2 + $0x334] sm:$0xf0]  ;;  %v4577_v28 = vld [vmem:[#allocation2 + $0x338] sm:$0xf0] }
  0x5d   :  { %v4287_v29 = vld [vmem:[#allocation2 + $0xd8] sm:$0xf]  ;;  %v4576_v33 = vor.u32 %v5938_v24, %v4575_v23  ;;  %v4580_v34 = vor.u32 %v5934_v27, %v4577_v28  ;;  %v5838_v5 = vld [vmem:[#allocation2 + $0x1c] sm:$0xf] }
  0x5e   :  { %v4543_v35 = vld [vmem:[#allocation2 + $0x2d8] sm:$0xf]  ;;  %v4193_v6 = vld [vmem:[#allocation2 + $0x38] sm:$0xf0] }
  0x5f   :  { %1008 = vmatpush.bf16.msra.mxu1 %v4600_v48  ;;  %1034 = vmatpush.bf16.msra.mxu3 %v4604_v51  ;;  %v5901_v48 = vld [vmem:[#allocation2 + $0x214] sm:$0xf]  ;;  %v738_v51 = vpack.c.b16 %v610_v37, %v610_v37  ;;  %v5930_v36 = vld [vmem:[#allocation2 + $0x2f4] sm:$0xf0] }
  0x60   :  { %996 = vmatpush.bf16.msra.mxu0 %v4312_v52  ;;  %1022 = vmatpush.bf16.msra.mxu2 %v4316_v56  ;;  %v739_v52 = vpack.c.b16 %v611_v38, %v611_v38  ;;  %v5886_v56 = vld [vmem:[#allocation2 + $0x19c] sm:$0xf]  ;;  %v4444_v58 = vor.u32 %v5901_v48, %v4441_v49  ;;  %v4292_v38 = vor.u32 %v5862_v31, %v4289_v32  ;;  %v5922_v48 = vld [vmem:[#allocation2 + $0x2b4] sm:$0xf0] }
  0x61   :  { %v4388_v3 = vor.u32 %v5886_v56, %v4385_v57  ;;  %v4544_v45 = vor.u32 %v5930_v36, %v4543_v35  ;;  %v4225_v56 = vld [vmem:[#allocation2 + $0x78] sm:$0xf0] }
  0x62   :  { %v887_v1 = vsel %vm864_vm0, %v739_v52, 0  ;;  %v4513_v52 = vld [vmem:[#allocation2 + $0x2b8] sm:$0xf0] }
  0x63   :  { %1009 = vmatpush.bf16.msra.mxu1 %v4568_v61  ;;  %1035 = vmatpush.bf16.msra.mxu3 %v4572_v62  ;;  %v5954_v61 = vld [vmem:[#allocation2 + $0x3b4] sm:$0xf0]  ;;  %v5950_v62 = vld [vmem:[#allocation2 + $0x39c] sm:$0xf] }
  0x64   :  { %997 = vmatpush.bf16.msra.mxu0 %v4280_v63  ;;  %1023 = vmatpush.bf16.msra.mxu2 %v4284_v4  ;;  %v884_v63 = vsel %vm864_vm0, %v738_v51, 0  ;;  %v4641_v4 = vld [vmem:[#allocation2 + $0x3b8] sm:$0xf0]  ;;  %v4640_v9 = vor.u32 %v5954_v61, %v4639_v59  ;;  %v4479_v59 = vld [vmem:[#allocation2 + $0x258] sm:$0xf] }
  0x65   :  { %v5918_v51 = vld [vmem:[#allocation2 + $0x29c] sm:$0xf]  ;;  %v5914_v61 = vld [vmem:[#allocation2 + $0x274] sm:$0xf0] }
  0x66   :  { %v4480_v7 = vor.u32 %v5914_v61, %v4479_v59 }
  0x67   :  { %1010 = vmatpush.bf16.msra.mxu1 %v4536_v10  ;;  %1036 = vmatpush.bf16.msra.mxu3 %v4540_v11  ;;  %v4644_v10 = vor.u32 %v5950_v62, %v4641_v4  ;;  %v4607_v11 = vld [vmem:[#allocation2 + $0x358] sm:$0xf] }
  0x68   :  { %998 = vmatpush.bf16.msra.mxu0 %v4248_v12  ;;  %1024 = vmatpush.bf16.msra.mxu2 %v4252_v16  ;;  %v5946_v12 = vld [vmem:[#allocation2 + $0x374] sm:$0xf0]  ;;  %v4609_v16 = vld [vmem:[#allocation2 + $0x378] sm:$0xf0] }
  0x69   :  { %v4608_v21 = vor.u32 %v5946_v12, %v4607_v11  ;;  %v5842_v4 = vld [vmem:[#allocation2 + $0x34] sm:$0xf0] }
  0x6a   :  { %v4447_v11 = vld [vmem:[#allocation2 + $0x218] sm:$0xf] }
  0x6b   :  { %1011 = vmatpush.bf16.msra.mxu1 %v4504_v22  ;;  %1037 = vmatpush.bf16.msra.mxu3 %v4508_v25  ;;  %v4612_v22 = vor.u32 %v5942_v15, %v4609_v16  ;;  %v4320_v25 = vor.u32 %v5874_v18, %v4319_v17  ;;  %v5906_v12 = vld [vmem:[#allocation2 + $0x234] sm:$0xf0]  ;;  %v6370_v17 = vmov 8.0   ;;  %v6510_v18 = vld [vmem:[%s7179_s3] sm:$0xff] }
  0x6c   :  { %999 = vmatpush.bf16.msra.mxu0 %v4216_v26  ;;  %1025 = vmatpush.bf16.msra.mxu2 %v4220_v30  ;;  %v4324_v26 = vor.u32 %v5870_v19, %v4321_v20  ;;  %v5866_v30 = vld [vmem:[#allocation2 + $0xf4] sm:$0xf0]  ;;  %v4448_v15 = vor.u32 %v5906_v12, %v4447_v11  ;;  %6258 = vrcp.f32 %v6370_v17  ;;  %v218_v19 = vperm.slane %v6510_v18, 0 }
  0x6d   :  { %v4288_v37 = vor.u32 %v5866_v30, %v4287_v29  ;;  %v219_v23 = vperm.slane %v6510_v18, 1  ;;  %v220_v11 = vperm.slane %v6510_v18, 2 }
  0x6f   :  { %1012 = vmatpush.bf16.msra.mxu1 %v4472_v39  ;;  %1038 = vmatpush.bf16.msra.mxu3 %v4476_v42  ;;  %v5926_v39 = vld [vmem:[#allocation2 + $0x2dc] sm:$0xf]  ;;  %v5858_v42 = vld [vmem:[#allocation2 + $0xb4] sm:$0xf0] }
  0x70   :  { %1000 = vmatpush.bf16.msra.mxu0 %v4184_v43  ;;  %1026 = vmatpush.bf16.msra.mxu2 %v4188_v46  ;;  %v5854_v43 = vld [vmem:[#allocation2 + $0x9c] sm:$0xf]  ;;  %v4548_v46 = vor.u32 %v5926_v39, %v4545_v40  ;;  %v4256_v49 = vor.u32 %v5858_v42, %v4255_v41 }
  0x72   :  { %v6259_v20 = vpop.eup %6258 }
  0x73   :  { %1013 = vmatpush.bf16.msra.mxu1 %v4440_v54  ;;  %1001 = vmatmul.bf16.vlgmr.msra.gmra.mxu0 %v6475_v60  ;;  %v5850_v54 = vld [vmem:[#allocation2 + $0x74] sm:$0xf0]  ;;  %v1158_v24 = vmul.f32 8.0, %v6259_v20  ;;  %vm1162_vm2 = vweird.f32 %v6259_v20 }
  0x74   :  { %1045 = vmatpush.bf16.msrb.mxu0 %v4416_v47  ;;  %1071 = vmatpush.bf16.msrb.mxu2 %v4420_v50  ;;  %v4511_v47 = vld [vmem:[#allocation2 + $0x298] sm:$0xf]  ;;  %v4260_v50 = vor.u32 %v5854_v43, %v4257_v44  ;;  %v4224_v62 = vor.u32 %v5850_v54, %v4223_v53 }
  0x75   :  { %1039 = vmatpush.bf16.msra.mxu3 %v4444_v58  ;;  %1027 = vmatmul.bf16.vlgmr.msra.gmra.mxu2 %v6475_v60  ;;  %v4512_v57 = vor.u32 %v5922_v48, %v4511_v47  ;;  %v4516_v58 = vor.u32 %v5918_v51, %v4513_v52  ;;  %v1159_v29 = vsub.f32 1.0, %v1158_v24 }
  0x76   :  { %4649 = vmatmul.msk.bf16.vlgmr.msra.gmra.mxu1 %vm860_vm1, %v6477_v0 }
  0x77   :  { %1058 = vmatpush.bf16.msrb.mxu1 %v884_v63  ;;  %v4228_v63 = vor.u32 %v5846_v55, %v4225_v56 }
  0x78   :  { %1046 = vmatpush.bf16.msrb.mxu0 %v4384_v2  ;;  %1072 = vmatpush.bf16.msrb.mxu2 %v4388_v3  ;;  %v4481_v2 = vld [vmem:[#allocation2 + $0x278] sm:$0xf0]  ;;  %v4191_v3 = vld [vmem:[#allocation2 + $0x18] sm:$0xf] }
  0x79   :  { %1084 = vmatpush.bf16.msrb.mxu3 %v887_v1  ;;  %v5910_v1 = vld [vmem:[#allocation2 + $0x25c] sm:$0xf] }
  0x7a   :  { %4650 = vmatmul.msk.bf16.vlgmr.msra.gmra.mxu3 %vm860_vm1, %v6477_v0  ;;  %v4484_v8 = vor.u32 %v5910_v1, %v4481_v2 }
  0x7b   :  { %1059 = vmatpush.bf16.msrb.mxu1 %v4640_v9  ;;  %v4192_v9 = vor.u32 %v5842_v4, %v4191_v3 }
  0x7c   :  { %1047 = vmatpush.bf16.msrb.mxu0 %v4352_v13  ;;  %1073 = vmatpush.bf16.msrb.mxu2 %v4356_v14  ;;  %v5902_v13 = vld [vmem:[#allocation2 + $0x21c] sm:$0xf] }
  0x7d   :  { %1085 = vmatpush.bf16.msrb.mxu3 %v4644_v10  ;;  %v4196_v10 = vor.u32 %v5838_v5, %v4193_v6  ;;  %v4449_v14 = vld [vmem:[#allocation2 + $0x238] sm:$0xf0] }
  0x7e   :  { %v4452_v16 = vor.u32 %v5902_v13, %v4449_v14 }
  0x7f   :  { %1060 = vmatpush.bf16.msrb.mxu1 %v4608_v21 }
  0x80   :  { %1048 = vmatpush.bf16.msrb.mxu0 %v4320_v25  ;;  %1074 = vmatpush.bf16.msrb.mxu2 %v4324_v26 }
  0x81   :  { %1086 = vmatpush.bf16.msrb.mxu3 %v4612_v22 }
  0x83   :  { %1061 = vmatpush.bf16.msrb.mxu1 %v4576_v33 }
  0x84   :  { %1049 = vmatpush.bf16.msrb.mxu0 %v4288_v37  ;;  %1075 = vmatpush.bf16.msrb.mxu2 %v4292_v38  ;;  %v1160_v38 = vmul.f32 %v6259_v20, %v1159_v29 }
  0x85   :  { %1087 = vmatpush.bf16.msrb.mxu3 %v4580_v34 }
  0x86   :  { %v1161_v48 = vadd.f32 %v6259_v20, %v1160_v38 }
  0x87   :  { %1062 = vmatpush.bf16.msrb.mxu1 %v4544_v45 }
  0x88   :  { %1050 = vmatpush.bf16.msrb.mxu0 %v4256_v49  ;;  %1076 = vmatpush.bf16.msrb.mxu2 %v4260_v50 }
  0x89   :  { %1088 = vmatpush.bf16.msrb.mxu3 %v4548_v46 }
  0x8b   :  { %1063 = vmatpush.bf16.msrb.mxu1 %v4512_v57  ;;  %v6526_v57 = vsel %vm1162_vm2, %v6259_v20, %v1161_v48 }
  0x8c   :  { %1051 = vmatpush.bf16.msrb.mxu0 %v4224_v62  ;;  %1077 = vmatpush.bf16.msrb.mxu2 %v4228_v63 }
  0x8d   :  { %1089 = vmatpush.bf16.msrb.mxu3 %v4516_v58 }
  0x8f   :  { %1064 = vmatpush.bf16.msrb.mxu1 %v4480_v7 }
  0x90   :  { %1052 = vmatpush.bf16.msrb.mxu0 %v4192_v9  ;;  %1078 = vmatpush.bf16.msrb.mxu2 %v4196_v10 }
  0x91   :  { %1090 = vmatpush.bf16.msrb.mxu3 %v4484_v8 }
  0x93   :  { %1053 = vmatmul.bf16.vlgmr.msrb.gmra.mxu0 %v6475_v60  ;;  %1065 = vmatpush.bf16.msrb.mxu1 %v4448_v15  ;;  %v221_v15 = vperm.slane %v6510_v18, 3 }
  0x94   :  { %1079 = vmatmul.bf16.vlgmr.msrb.gmra.mxu2 %v6475_v60 }
  0x95   :  { %1091 = vmatpush.bf16.msrb.mxu3 %v4452_v16 }
  0x96   :  { %4651 = vmatmul.msk.bf16.vlgmr.msrb.gmra.mxu1 %vm860_vm1, %v6477_v0 }
  0x98   :  { %4652 = vmatmul.msk.bf16.vlgmr.msrb.gmra.mxu3 %vm860_vm1, %v6477_v0 }
  0xb2   :  { %v898_v21 = vpop.f32.mrf.mxu0 }
  0xb3   :  { %v911_v22 = vpop.f32.mrf.mxu1  ;;  %v899_v60 = vadd.f32 %v898_v21, %v218_v19 }
  0xb5   :  { %v912_v25 = vadd.f32 %v911_v22, %v899_v60 }
  0xb7   :  { %v6514_v0 = vmax.f32 %v912_v25, 0.0 }
  0xb8   :  { %v924_v26 = vpop.f32.mrf.mxu2 }
  0xb9   :  { %v937_v27 = vpop.f32.mrf.mxu3  ;;  %v925_v28 = vadd.f32 %v924_v26, %v219_v23  ;;  %v1107_v30 = vrot.slane %v6514_v0, 4  ;;  %v1172_v31 = vmul.f32 %v6514_v0, %v6514_v0 }
  0xba   :  { %v900_v33 = vpop.f32.mrf.mxu0 }
  0xbb   :  { %v938_v32 = vadd.f32 %v937_v27, %v925_v28  ;;  %v913_v34 = vpop.f32.mrf.mxu1  ;;  %v1108_v35 = vadd.f32 %v1107_v30, %v6514_v0  ;;  %v1180_v36 = vrot.slane %v1172_v31, 4 }
  0xbd   :  { %v6520_v37 = vmax.f32 %v938_v32, 0.0  ;;  %v1109_v39 = vrot.slane %v1108_v35, 2  ;;  %v1181_v40 = vadd.f32 %v1180_v36, %v1172_v31 }
  0xbf   :  { %v1113_v41 = vrot.slane %v6520_v37, 4  ;;  %v1173_v42 = vmul.f32 %v6520_v37, %v6520_v37  ;;  %v1110_v43 = vadd.f32 %v1109_v39, %v1108_v35  ;;  %v1182_v44 = vrot.slane %v1181_v40, 2 }
  0xc0   :  { %v926_v45 = vpop.f32.mrf.mxu2 }
  0xc1   :  { %v939_v46 = vpop.f32.mrf.mxu3  ;;  %v1114_v47 = vadd.f32 %v1113_v41, %v6520_v37  ;;  %v1186_v49 = vrot.slane %v1173_v42, 4  ;;  %v1111_v50 = vrot.slane %v1110_v43, 1  ;;  %v1183_v51 = vadd.f32 %v1182_v44, %v1181_v40 }
  0xc3   :  { %v1115_v52 = vrot.slane %v1114_v47, 2  ;;  %v1187_v53 = vadd.f32 %v1186_v49, %v1173_v42  ;;  %v1112_v54 = vadd.f32 %v1111_v50, %v1110_v43  ;;  %v1184_v55 = vrot.slane %v1183_v51, 1 }
  0xc5   :  { %v1116_v56 = vadd.f32 %v1115_v52, %v1114_v47  ;;  %v1188_v58 = vrot.slane %v1187_v53, 2  ;;  %v6529_v59 = vmul.f32 %v6526_v57, %v1112_v54  ;;  %v1185_v61 = vadd.f32 %v1184_v55, %v1183_v51 }
  0xc7   :  { %v1117_v62 = vrot.slane %v1116_v56, 1  ;;  %v1189_v63 = vadd.f32 %v1188_v58, %v1187_v53  ;;  %v1229_v1 = vmul.f32 %v1185_v61, %v6526_v57  ;;  %v1237_v2 = vmul.f32 %v6529_v59, %v6529_v59 }
  0xc9   :  { %v1118_v3 = vadd.f32 %v1117_v62, %v1116_v56  ;;  %v1190_v4 = vrot.slane %v1189_v63, 1  ;;  %v1245_v5 = vsub.f32 %v1229_v1, %v1237_v2 }
  0xcb   :  { %v6535_v6 = vmul.f32 %v6526_v57, %v1118_v3  ;;  %v1191_v7 = vadd.f32 %v1190_v4, %v1189_v63  ;;  %v1253_v8 = vmax.f32 %v1245_v5, 0.0 }
  0xcd   :  { %v1230_v9 = vmul.f32 %v1191_v7, %v6526_v57  ;;  %v1238_v10 = vmul.f32 %v6535_v6, %v6535_v6  ;;  %v1261_v12 = vadd.f32 1e-05, %v1253_v8 }
  0xcf   :  { %v1246_v13 = vsub.f32 %v1230_v9, %v1238_v10  ;;  %6260 = vrsqrt.f32 %v1261_v12  ;;  %vm1275_vm3 = vweird.f32 %v1261_v12 }
  0xd1   :  { %v1254_v17 = vmax.f32 %v1246_v13, 0.0 }
  0xd2   :  { %v950_v14 = vpop.f32.mrf.mxu0 }
  0xd3   :  { %v963_v16 = vpop.f32.mrf.mxu1  ;;  %v951_v19 = vadd.f32 %v950_v14, %v220_v11  ;;  %v1262_v20 = vadd.f32 1e-05, %v1254_v17  ;;  %v222_v14 = vperm.slane %v6510_v18, 4 }
  0xd5   :  { %v964_v22 = vadd.f32 %v963_v16, %v951_v19  ;;  %6262 = vrsqrt.f32 %v1262_v20  ;;  %v6544_v25 = vpop.eup %6260  ;;  %vm1285_vm4 = vweird.f32 %v1262_v20 }
  0xd6   :  { %v1270_v27 = vmul.f32 %v6544_v25, %v1261_v12  ;;  %vm1276_vm5 = vweird.f32 %v6544_v25 }
  0xd7   :  { %v6542_v23 = vmax.f32 %v964_v22, 0.0  ;;  %vm6561_vm7 = vmor %vm1275_vm3, %vm1276_vm5  ;;  %vm1149_vm5 = vcmask 850944  }
  0xd8   :  { %v976_v21 = vpop.f32.mrf.mxu2  ;;  %v1271_v33 = vmul.f32 %v6544_v25, %v1270_v27 }
  0xd9   :  { %v977_v60 = vadd.f32 %v976_v21, %v221_v15  ;;  %v989_v24 = vpop.f32.mrf.mxu3  ;;  %v1119_v28 = vrot.slane %v6542_v23, 4  ;;  %v1174_v29 = vmul.f32 %v6542_v23, %v6542_v23 }
  0xda   :  { %v952_v31 = vpop.f32.mrf.mxu0  ;;  %v1272_v40 = vmul.f32 0.5, %v1271_v33  ;;  %v223_v33 = vperm.slane %v6510_v18, 5 }
  0xdb   :  { %v990_v26 = vadd.f32 %v989_v24, %v977_v60  ;;  %v965_v32 = vpop.f32.mrf.mxu1  ;;  %v1120_v34 = vadd.f32 %v1119_v28, %v6542_v23  ;;  %v1192_v35 = vrot.slane %v1174_v29, 4  ;;  %v6263_v39 = vpop.eup %6262 }
  0xdc   :  { %v1280_v44 = vmul.f32 %v6263_v39, %v1262_v20  ;;  %v1273_v51 = vsub.f32 1.5, %v1272_v40  ;;  %vm1286_vm6 = vweird.f32 %v6263_v39 }
  0xdd   :  { %v6550_v30 = vmax.f32 %v990_v26, 0.0  ;;  %v1121_v41 = vrot.slane %v1120_v34, 2  ;;  %v1193_v42 = vadd.f32 %v1192_v35, %v1174_v29  ;;  %vm1287_vm8 = vmor %vm1285_vm4, %vm1286_vm6  ;;  %vm1763_vm4 = vcmask 244736  }
  0xde   :  { %v1281_v50 = vmul.f32 %v6263_v39, %v1280_v44  ;;  %v1274_v2 = vmul.f32 %v6544_v25, %v1273_v51  ;;  %vm1375_vm6 = vcmask 1043456  }
  0xdf   :  { %v1125_v36 = vrot.slane %v6550_v30, 4  ;;  %v1175_v38 = vmul.f32 %v6550_v30, %v6550_v30  ;;  %v1122_v47 = vadd.f32 %v1121_v41, %v1120_v34  ;;  %v1194_v48 = vrot.slane %v1193_v42, 2 }
  0xe0   :  { %v978_v43 = vpop.f32.mrf.mxu2  ;;  %v1282_v56 = vmul.f32 0.5, %v1281_v50  ;;  %v1278_v16 = vsel %vm6561_vm7, %v6544_v25, %v1274_v2 }
  0xe1   :  { %v1126_v45 = vadd.f32 %v1125_v36, %v6550_v30  ;;  %v1198_v46 = vrot.slane %v1175_v38, 4  ;;  %v991_v49 = vpop.f32.mrf.mxu3  ;;  %v1123_v54 = vrot.slane %v1122_v47, 1  ;;  %v1195_v55 = vadd.f32 %v1194_v48, %v1193_v42 }
  0xe2   :  { %v1283_v1 = vsub.f32 1.5, %v1282_v56 }
  0xe3   :  { %v1127_v52 = vrot.slane %v1126_v45, 2  ;;  %v1199_v53 = vadd.f32 %v1198_v46, %v1175_v38  ;;  %v1124_v62 = vadd.f32 %v1123_v54, %v1122_v47  ;;  %v1196_v63 = vrot.slane %v1195_v55, 1  ;;  %v6209_v46 = vld [vmem:[%s7183_s7 + $0x2c] sm:$0x70] }
  0xe4   :  { %v1284_v9 = vmul.f32 %v6263_v39, %v1283_v1 }
  0xe5   :  { %v1128_v58 = vadd.f32 %v1127_v52, %v1126_v45  ;;  %v1200_v61 = vrot.slane %v1199_v53, 2  ;;  %v6567_v7 = vmul.f32 %v6526_v57, %v1124_v62  ;;  %v1197_v8 = vadd.f32 %v1196_v63, %v1195_v55  ;;  %v4671_v45 = vld [vmem:[%s7183_s7 + $0x20] sm:$0xf] }
  0xe6   :  { %v1288_v15 = vsel %vm1287_vm8, %v6263_v39, %v1284_v9  ;;  %v4672_v52 = vor.u32 %v6209_v46, %v4671_v45 }
  0xe7   :  { %v1129_v4 = vrot.slane %v1128_v58, 1  ;;  %v1201_v5 = vadd.f32 %v1200_v61, %v1199_v53  ;;  %v1231_v13 = vmul.f32 %v1197_v8, %v6526_v57  ;;  %v1239_v12 = vmul.f32 %v6567_v7, %v6567_v7 }
  0xe8   :  { %v1357_v20 = vrot.slane %v1288_v15, 7  ;;  %v1769_v62 = vsel %vm1767_vm11, %v4672_v52, 0 }
  0xe9   :  { %v1130_v10 = vadd.f32 %v1129_v4, %v1128_v58  ;;  %v1202_v11 = vrot.slane %v1201_v5, 1  ;;  %v1247_v21 = vsub.f32 %v1231_v13, %v1239_v12  ;;  %1786 = vmatpush.bf16.msra.mxu1 %v1769_v62  ;;  %v4655_v4 = vld [vmem:[%s7183_s7] sm:$0xf]  ;;  %v6207_v13 = vld [vmem:[%s7183_s7 + $0x24] sm:$0xf] }
  0xea   :  { %v6583_v27 = vsel %vm1364_vm9, %v1278_v16, %v1357_v20  ;;  %v4673_v12 = vld [vmem:[%s7183_s7 + $0x30] sm:$0x70]  ;;  %v4679_v20 = vld [vmem:[%s7183_s7 + $0x28] sm:$0xf] }
  0xeb   :  { %v6577_v17 = vmul.f32 %v6526_v57, %v1130_v10  ;;  %v1203_v19 = vadd.f32 %v1202_v11, %v1201_v5  ;;  %v1255_v24 = vmax.f32 %v1247_v21, 0.0  ;;  %v6205_v5 = vld [vmem:[%s7183_s7 + $0xc] sm:$0xf0]  ;;  %v6210_v21 = vld [vmem:[%s7183_s7 + $0x34] sm:$0x70] }
  0xec   :  { %v4656_v11 = vor.u32 %v6205_v5, %v4655_v4 }
  0xed   :  { %v1232_v22 = vmul.f32 %v1203_v19, %v6526_v57  ;;  %v1240_v60 = vmul.f32 %v6577_v17, %v6577_v17  ;;  %v1263_v31 = vadd.f32 1e-05, %v1255_v24  ;;  %v4676_v19 = vor.u32 %v6207_v13, %v4673_v12 }
  0xee   :  { %1787 = vmatpush.bf16.msra.mxu1 %v4656_v11 }
  0xef   :  { %v1248_v28 = vsub.f32 %v1232_v22, %v1240_v60  ;;  %6264 = vrsqrt.f32 %v1263_v31  ;;  %vm1295_vm10 = vweird.f32 %v1263_v31  ;;  %v4665_v22 = vld [vmem:[%s7183_s7 + $0x18] sm:$0xf0] }
  0xf0   :  { %v1002_v26 = vpop.f32.mrf.mxu0 }
  0xf1   :  { %v1003_v29 = vadd.f32 %v1002_v26, %v222_v14  ;;  %v1256_v25 = vmax.f32 %v1248_v28, 0.0 }
  0xf3   :  { %v1015_v32 = vpop.f32.mrf.mxu1  ;;  %v6586_v34 = vadd.f32 1e-05, %v1256_v25 }
  0xf4   :  { %v1016_v35 = vadd.f32 %v1015_v32, %v1003_v29  ;;  %v4680_v29 = vor.u32 %v6210_v21, %v4679_v20 }
  0xf5   :  { %6266 = vrsqrt.f32 %v6586_v34  ;;  %v6594_v43 = vpop.eup %6264  ;;  %vm1305_vm12 = vweird.f32 %v6586_v34 }
  0xf6   :  { %v6589_v36 = vmax.f32 %v1016_v35, 0.0  ;;  %v1290_v47 = vmul.f32 %v6594_v43, %v1263_v31  ;;  %vm1296_vm13 = vweird.f32 %v6594_v43  ;;  %v1772_v35 = vsel %vm1767_vm11, %v4676_v19, 0  ;;  %v6208_v31 = vld [vmem:[%s7183_s7 + $0x2c] sm:$0xf] }
  0xf7   :  { %vm6640_vm2 = vmor %vm1295_vm10, %vm1296_vm13  ;;  %1799 = vmatpush.bf16.msrb.mxu1 %v1772_v35 }
  0xf8   :  { %v1028_v38 = vpop.f32.mrf.mxu2  ;;  %v1004_v40 = vpop.f32.mrf.mxu0  ;;  %v1131_v41 = vrot.slane %v6589_v36, 4  ;;  %v1176_v42 = vmul.f32 %v6589_v36, %v6589_v36  ;;  %v1291_v54 = vmul.f32 %v6594_v43, %v1290_v47 }
  0xf9   :  { %v1029_v39 = vadd.f32 %v1028_v38, %v223_v33  ;;  %v4681_v38 = vld [vmem:[%s7183_s7 + $0x38] sm:$0x70] }
  0xfa   :  { %v1132_v48 = vadd.f32 %v1131_v41, %v6589_v36  ;;  %v1204_v49 = vrot.slane %v1176_v42, 4  ;;  %v1292_v63 = vmul.f32 0.5, %v1291_v54  ;;  %v4663_v54 = vld [vmem:[%s7183_s7 + $0x8] sm:$0xf] }
  0xfb   :  { %v1017_v51 = vpop.f32.mrf.mxu1  ;;  %v6604_v53 = vpop.eup %6266 }
  0xfc   :  { %v1133_v55 = vrot.slane %v1132_v48, 2  ;;  %v1205_v56 = vadd.f32 %v1204_v49, %v1176_v42  ;;  %v1300_v58 = vmul.f32 %v6604_v53, %v6586_v34  ;;  %vm1306_vm14 = vweird.f32 %v6604_v53  ;;  %v6674_v49 = vld [vmem:[%s7203_s30] sm:$0xf] }
  0xfd   :  { %v1041_v44 = vpop.f32.mrf.mxu3  ;;  %v1293_v14 = vsub.f32 1.5, %v1292_v63  ;;  %v1775_v42 = vsel %vm1767_vm11, %v4680_v29, 0  ;;  %vm6664_vm3 = vmor %vm1305_vm12, %vm1306_vm14  ;;  %4685 = vmatmul.msk.bf16.vlgmr.msra.gmra.mxu1 %vm1763_vm4, %v6674_v49  ;;  %v4803_v63 = vld [vmem:[#allocation5 + $0xe0] sm:$0xf]  ;;  %v5981_v29 = vld [vmem:[#allocation5 + $0xcc] sm:$0xf0] }
  0xfe   :  { %v1042_v50 = vadd.f32 %v1041_v44, %v1029_v39  ;;  %v1134_v1 = vadd.f32 %v1133_v55, %v1132_v48  ;;  %v1206_v2 = vrot.slane %v1205_v56, 2  ;;  %v1301_v8 = vmul.f32 %v6604_v53, %v1300_v58  ;;  %v6203_v44 = vld [vmem:[%s7183_s7 + $0x4] sm:$0xf]  ;;  %1812 = vmatpush.bf16.msra.mxu2 %v1775_v42  ;;  %v6206_v55 = vld [vmem:[%s7183_s7 + $0x14] sm:$0xf0] }
  0xff   :  { %v1294_v25 = vmul.f32 %v6594_v43, %v1293_v14  ;;  %v4664_v62 = vor.u32 %v6206_v55, %v4663_v54  ;;  %v6009_v55 = vld [vmem:[#allocation5 + $0x1ac] sm:$0xf0] }
 0x100   :  { %v6611_v61 = vmax.f32 %v1042_v50, 0.0  ;;  %v1030_v3 = vpop.f32.mrf.mxu2  ;;  %v1135_v15 = vrot.slane %v1134_v1, 1  ;;  %v1207_v16 = vadd.f32 %v1206_v2, %v1205_v56  ;;  %v1302_v60 = vmul.f32 0.5, %v1301_v8  ;;  %v4931_v2 = vld [vmem:[#allocation5 + $0x1e0] sm:$0xf] }
 0x101   :  { %v1298_v45 = vsel %vm6640_vm2, %v6594_v43, %v1294_v25  ;;  %v4657_v43 = vld [vmem:[%s7183_s7 + $0x10] sm:$0xf0]  ;;  %v4684_v8 = vor.u32 %v6208_v31, %v4681_v38  ;;  %v4915_v25 = vld [vmem:[#allocation5 + $0x1c0] sm:$0xf]  ;;  %v6013_v31 = vld [vmem:[#allocation5 + $0x1cc] sm:$0xf0] }
 0x102   :  { %v1137_v9 = vrot.slane %v6611_v61, 4  ;;  %v1177_v10 = vmul.f32 %v6611_v61, %v6611_v61  ;;  %v1136_v32 = vadd.f32 %v1135_v15, %v1134_v1  ;;  %v1208_v33 = vrot.slane %v1207_v16, 1  ;;  %v5985_v1 = vld [vmem:[#allocation5 + $0xec] sm:$0xf0]  ;;  %1813 = vmatpush.bf16.msra.mxu2 %v4664_v62  ;;  %v5043_v38 = vld [vmem:[#allocation5 + $0x2c0] sm:$0xf] }
 0x103   :  { %v1303_v39 = vsub.f32 1.5, %v1302_v60  ;;  %v1358_v34 = vrot.slane %v1298_v45, 6  ;;  %v4660_v58 = vor.u32 %v6203_v44, %v4657_v43  ;;  %v4804_v12 = vor.u32 %v5985_v1, %v4803_v63  ;;  %v6049_v15 = vld [vmem:[#allocation5 + $0x2ec] sm:$0xf0]  ;;  %v4787_v60 = vld [vmem:[#allocation5 + $0xc0] sm:$0xf] }
 0x104   :  { %v1138_v24 = vadd.f32 %v1137_v9, %v6611_v61  ;;  %v1210_v26 = vrot.slane %v1177_v10, 4  ;;  %v6669_v47 = vmul.f32 %v6526_v57, %v1136_v32  ;;  %v1209_v48 = vadd.f32 %v1208_v33, %v1207_v16  ;;  %v6017_v9 = vld [vmem:[#allocation5 + $0x1ec] sm:$0xf0]  ;;  %v6204_v16 = vld [vmem:[%s7183_s7 + $0xc] sm:$0xf] }
 0x105   :  { %v1043_v28 = vpop.f32.mrf.mxu3  ;;  %v1304_v50 = vmul.f32 %v6604_v53, %v1303_v39  ;;  %1800 = vmatpush.bf16.msrb.mxu1 %v4660_v58  ;;  %v4932_v14 = vor.u32 %v6017_v9, %v4931_v2  ;;  %v1778_v20 = vsel %vm1767_vm11, %v4684_v8, 0  ;;  %3097 = vmatpush.bf16.msra.mxu0 %v4804_v12  ;;  %v6045_v39 = vld [vmem:[#allocation5 + $0x2cc] sm:$0xf0]  ;;  %v5187_v44 = vld [vmem:[#allocation5 + $0x3e0] sm:$0xf]  ;;  %v225_v12 = vperm.slane %v6510_v18, 7 }
 0x106   :  { %v1139_v40 = vrot.slane %v1138_v24, 2  ;;  %v1211_v41 = vadd.f32 %v1210_v26, %v1177_v10  ;;  %v6689_v56 = vmul.f32 %v1209_v48, %v6526_v57  ;;  %v5059_v10 = vld [vmem:[#allocation5 + $0x2e0] sm:$0xf]  ;;  %v1241_v13 = vmul.f32 %v6669_v47, %v6669_v47  ;;  %1825 = vmatpush.bf16.msra.mxu3 %v1778_v20  ;;  %v6081_v45 = vld [vmem:[#allocation5 + $0x3ec] sm:$0xf0]  ;;  %4687 = vmatmul.msk.bf16.vlgmr.msra.gmra.mxu2 %vm1763_vm4, %v6674_v49 }
 0x107   :  { %v1308_v3 = vsel %vm6664_vm3, %v6604_v53, %v1304_v50  ;;  %v5060_v21 = vor.u32 %v6049_v15, %v5059_v10  ;;  %v4668_v28 = vor.u32 %v6204_v16, %v4665_v22  ;;  %v5044_v42 = vor.u32 %v6045_v39, %v5043_v38  ;;  %v4899_v50 = vld [vmem:[#allocation5 + $0x1a0] sm:$0xf]  ;;  %v6041_v62 = vld [vmem:[#allocation5 + $0x2ac] sm:$0xf0] }
 0x108   :  { %v1140_v51 = vadd.f32 %v1139_v40, %v1138_v24  ;;  %v1212_v52 = vrot.slane %v1211_v41, 2  ;;  %v1359_v11 = vrot.slane %v1308_v3, 5  ;;  %v224_v24 = vperm.slane %v6510_v18, 6  ;;  %v5027_v58 = vld [vmem:[#allocation5 + $0x2a0] sm:$0xf] }
 0x109   :  { %3110 = vmatpush.bf16.msra.mxu1 %v4932_v14  ;;  %3123 = vmatpush.bf16.msrb.mxu2 %v5060_v21  ;;  %v4788_v40 = vor.u32 %v5981_v29, %v4787_v60  ;;  %v1249_v46 = vsub.f32 %v6689_v56, %v1241_v13  ;;  %v5188_v43 = vor.u32 %v6081_v45, %v5187_v44  ;;  %v5171_v2 = vld [vmem:[#allocation5 + $0x3c0] sm:$0xf]  ;;  %v6077_v3 = vld [vmem:[#allocation5 + $0x3cc] sm:$0xf0] }
 0x10a   :  { %v1141_v4 = vrot.slane %v1140_v51, 1  ;;  %v1213_v5 = vadd.f32 %v1212_v52, %v1211_v41  ;;  %v1367_v26 = vsel %vm1366_vm15, %v1358_v34, %v1359_v11  ;;  %v4916_v41 = vor.u32 %v6013_v31, %v4915_v25  ;;  %v4771_v34 = vld [vmem:[#allocation5 + $0xa0] sm:$0xf]  ;;  %1826 = vmatpush.bf16.msra.mxu3 %v4668_v28  ;;  %v5973_v9 = vld [vmem:[#allocation5 + $0x8c] sm:$0xf0] }
 0x10b   :  { %v6710_v35 = vsel %vm864_vm0, %v6583_v27, %v1367_v26  ;;  %v5977_v27 = vld [vmem:[#allocation5 + $0xac] sm:$0xf0]  ;;  %3098 = vmatpush.bf16.msra.mxu0 %v4788_v40  ;;  %v4900_v56 = vor.u32 %v6009_v55, %v4899_v50  ;;  %v5028_v1 = vor.u32 %v6041_v62, %v5027_v58  ;;  %v4755_v8 = vld [vmem:[#allocation5 + $0x80] sm:$0xf]  ;;  %v1257_v11 = vmax.f32 %v1249_v46, 0.0 }
 0x10c   :  { %v1142_v19 = vadd.f32 %v1141_v4, %v1140_v51  ;;  %v1214_v53 = vrot.slane %v1213_v5, 1  ;;  %v4772_v54 = vor.u32 %v5977_v27, %v4771_v34  ;;  %v4883_v10 = vld [vmem:[#allocation5 + $0x180] sm:$0xf]  ;;  %v6005_v14 = vld [vmem:[#allocation5 + $0x18c] sm:$0xf0]  ;;  %v4756_v16 = vor.u32 %v5973_v9, %v4755_v8 }
 0x10d   :  { %3111 = vmatpush.bf16.msra.mxu1 %v4916_v41  ;;  %3124 = vmatpush.bf16.msrb.mxu2 %v5044_v42  ;;  %v5011_v15 = vld [vmem:[#allocation5 + $0x280] sm:$0xf]  ;;  %v6073_v20 = vld [vmem:[#allocation5 + $0x3ac] sm:$0xf0]  ;;  %v4884_v60 = vor.u32 %v6005_v14, %v4883_v10  ;;  %v6729_v62 = vadd.f32 1e-05, %v1257_v11 }
 0x10e   :  { %v6706_v32 = vmul.f32 %v6526_v57, %v1142_v19  ;;  %v1215_v33 = vadd.f32 %v1214_v53, %v1213_v5  ;;  %3136 = vmatpush.bf16.msrb.mxu3 %v5188_v43  ;;  %v5172_v5 = vor.u32 %v6077_v3, %v5171_v2  ;;  %v6037_v19 = vld [vmem:[#allocation5 + $0x28c] sm:$0xf0]  ;;  %v5155_v53 = vld [vmem:[#allocation5 + $0x3a0] sm:$0xf]  ;;  %4686 = vmatmul.msk.bf16.vlgmr.msrb.gmra.mxu1 %vm1763_vm4, %v6674_v49 }
 0x10f   :  { %4688 = vmatmul.msk.bf16.vlgmr.msra.gmra.mxu3 %vm1763_vm4, %v6674_v49  ;;  %3099 = vmatpush.bf16.msra.mxu0 %v4772_v54  ;;  %v5156_v18 = vor.u32 %v6073_v20, %v5155_v53  ;;  %v4739_v28 = vld [vmem:[#allocation5 + $0x60] sm:$0xf]  ;;  %v5969_v29 = vld [vmem:[#allocation5 + $0x6c] sm:$0xf0]  ;;  %6268 = vrsqrt.f32 %v6729_v62  ;;  %vm1315_vm7 = vweird.f32 %v6729_v62 }
 0x110   :  { %v1054_v48 = vpop.f32.mrf.mxu0  ;;  %v1234_v51 = vmul.f32 %v1215_v33, %v6526_v57  ;;  %v1242_v63 = vmul.f32 %v6706_v32, %v6706_v32  ;;  %v4867_v25 = vld [vmem:[#allocation5 + $0x160] sm:$0xf]  ;;  %v6001_v31 = vld [vmem:[#allocation5 + $0x16c] sm:$0xf0]  ;;  %v4740_v44 = vor.u32 %v5969_v29, %v4739_v28 }
 0x111   :  { %v1055_v52 = vadd.f32 %v1054_v48, %v224_v24  ;;  %3112 = vmatpush.bf16.msra.mxu1 %v4900_v56  ;;  %3125 = vmatpush.bf16.msrb.mxu2 %v5028_v1  ;;  %v5012_v24 = vor.u32 %v6037_v19, %v5011_v15  ;;  %v4995_v38 = vld [vmem:[#allocation5 + $0x260] sm:$0xf]  ;;  %v6033_v39 = vld [vmem:[#allocation5 + $0x26c] sm:$0xf0]  ;;  %v4868_v34 = vor.u32 %v6001_v31, %v4867_v25 }
 0x112   :  { %v1250_v21 = vsub.f32 %v1234_v51, %v1242_v63  ;;  %3137 = vmatpush.bf16.msrb.mxu3 %v5172_v5  ;;  %v5139_v45 = vld [vmem:[#allocation5 + $0x380] sm:$0xf]  ;;  %v6069_v46 = vld [vmem:[#allocation5 + $0x38c] sm:$0xf0]  ;;  %v4996_v27 = vor.u32 %v6033_v39, %v4995_v38 }
 0x113   :  { %v1067_v4 = vpop.f32.mrf.mxu1  ;;  %3100 = vmatpush.bf16.msra.mxu0 %v4756_v16  ;;  %v5140_v54 = vor.u32 %v6069_v46, %v5139_v45  ;;  %v4723_v55 = vld [vmem:[#allocation5 + $0x40] sm:$0xf]  ;;  %v5965_v58 = vld [vmem:[#allocation5 + $0x4c] sm:$0xf0] }
 0x114   :  { %v1068_v13 = vadd.f32 %v1067_v4, %v1055_v52  ;;  %v1258_v48 = vmax.f32 %v1250_v21, 0.0  ;;  %v4851_v63 = vld [vmem:[#allocation5 + $0x140] sm:$0xf]  ;;  %v4724_v3 = vor.u32 %v5965_v58, %v4723_v55  ;;  %v5997_v4 = vld [vmem:[#allocation5 + $0x14c] sm:$0xf0] }
 0x115   :  { %3113 = vmatpush.bf16.msra.mxu1 %v4884_v60  ;;  %3126 = vmatpush.bf16.msrb.mxu2 %v5012_v24  ;;  %v4979_v5 = vld [vmem:[#allocation5 + $0x240] sm:$0xf]  ;;  %v4852_v9 = vor.u32 %v5997_v4, %v4851_v63  ;;  %v6029_v10 = vld [vmem:[#allocation5 + $0x24c] sm:$0xf0] }
 0x116   :  { %v6721_v22 = vmax.f32 %v1068_v13, 0.0  ;;  %3138 = vmatpush.bf16.msrb.mxu3 %v5156_v18  ;;  %v6733_v8 = vadd.f32 1e-05, %v1258_v48  ;;  %v5123_v13 = vld [vmem:[#allocation5 + $0x360] sm:$0xf]  ;;  %v4980_v20 = vor.u32 %v6029_v10, %v4979_v5 }
 0x117   :  { %v1080_v26 = vpop.f32.mrf.mxu2  ;;  %3101 = vmatpush.bf16.msra.mxu0 %v4740_v44  ;;  %v6065_v15 = vld [vmem:[#allocation5 + $0x36c] sm:$0xf0]  ;;  %v4707_v16 = vld [vmem:[#allocation5 + $0x20] sm:$0xf] }
 0x118   :  { %v1056_v33 = vpop.f32.mrf.mxu0  ;;  %v1143_v40 = vrot.slane %v6721_v22, 4  ;;  %v1178_v41 = vmul.f32 %v6721_v22, %v6721_v22  ;;  %v1081_v42 = vadd.f32 %v1080_v26, %v225_v12  ;;  %v5961_v21 = vld [vmem:[#allocation5 + $0x2c] sm:$0xf0]  ;;  %v4835_v60 = vld [vmem:[#allocation5 + $0x120] sm:$0xf]  ;;  %v5124_v31 = vor.u32 %v6065_v15, %v5123_v13 }
 0x119   :  { %3114 = vmatpush.bf16.msra.mxu1 %v4868_v34  ;;  %3127 = vmatpush.bf16.msrb.mxu2 %v4996_v27  ;;  %v5993_v28 = vld [vmem:[#allocation5 + $0x12c] sm:$0xf0]  ;;  %v4963_v29 = vld [vmem:[#allocation5 + $0x220] sm:$0xf]  ;;  %v4708_v38 = vor.u32 %v5961_v21, %v4707_v16  ;;  %6270 = vrsqrt.f32 %v6733_v8  ;;  %vm1325_vm11 = vweird.f32 %v6733_v8 }
 0x11a   :  { %v1144_v50 = vadd.f32 %v1143_v40, %v6721_v22  ;;  %v1216_v51 = vrot.slane %v1178_v41, 4  ;;  %3139 = vmatpush.bf16.msrb.mxu3 %v5140_v54  ;;  %v6025_v39 = vld [vmem:[#allocation5 + $0x22c] sm:$0xf0]  ;;  %v5107_v40 = vld [vmem:[#allocation5 + $0x340] sm:$0xf] }
 0x11b   :  { %v1093_v43 = vpop.f32.mrf.mxu3  ;;  %v1069_v52 = vpop.f32.mrf.mxu1  ;;  %3102 = vmatpush.bf16.msra.mxu0 %v4724_v3  ;;  %v6061_v45 = vld [vmem:[#allocation5 + $0x34c] sm:$0xf0]  ;;  %v4691_v46 = vld [vmem:[#allocation5] sm:$0xf]  ;;  %v4964_v34 = vor.u32 %v6025_v39, %v4963_v29 }
 0x11c   :  { %v1094_v49 = vadd.f32 %v1093_v43, %v1081_v42  ;;  %v1145_v56 = vrot.slane %v1144_v50, 2  ;;  %v1217_v1 = vadd.f32 %v1216_v51, %v1178_v41  ;;  %v4836_v43 = vor.u32 %v5993_v28, %v4835_v60  ;;  %v5957_v27 = vld [vmem:[#allocation5 + $0xc] sm:$0xf0]  ;;  %v4947_v55 = vld [vmem:[#allocation5 + $0x200] sm:$0xf] }
 0x11d   :  { %3115 = vmatpush.bf16.msra.mxu1 %v4852_v9  ;;  %3128 = vmatpush.bf16.msrb.mxu2 %v4980_v20  ;;  %v5989_v54 = vld [vmem:[#allocation5 + $0x10c] sm:$0xf0]  ;;  %v5108_v63 = vor.u32 %v6061_v45, %v5107_v40  ;;  %v5091_v3 = vld [vmem:[#allocation5 + $0x320] sm:$0xf] }
 0x11e   :  { %v6731_v2 = vmax.f32 %v1094_v49, 0.0  ;;  %v1146_v12 = vadd.f32 %v1145_v56, %v1144_v50  ;;  %v1218_v11 = vrot.slane %v1217_v1, 2  ;;  %3140 = vmatpush.bf16.msrb.mxu3 %v5124_v31  ;;  %v4819_v50 = vld [vmem:[#allocation5 + $0x100] sm:$0xf]  ;;  %v4692_v56 = vor.u32 %v5957_v27, %v4691_v46  ;;  %v6057_v4 = vld [vmem:[#allocation5 + $0x32c] sm:$0xf0] }
 0x11f   :  { %v1082_v14 = vpop.f32.mrf.mxu2  ;;  %3103 = vmatpush.bf16.msra.mxu0 %v4708_v38  ;;  %v5315_v13 = vld [vmem:[#allocation5 + $0x4e0] sm:$0xf]  ;;  %v4820_v15 = vor.u32 %v5989_v54, %v4819_v50  ;;  %v5092_v60 = vor.u32 %v6057_v4, %v5091_v3  ;;  %v6053_v29 = vld [vmem:[#allocation5 + $0x30c] sm:$0xf0] }
 0x120   :  { %v1150_v19 = vsel %vm1149_vm5, %v6731_v2, 0.0  ;;  %v1179_v53 = vmul.f32 %v6731_v2, %v6731_v2  ;;  %v1147_v24 = vrot.slane %v1146_v12, 1  ;;  %v1219_v26 = vadd.f32 %v1218_v11, %v1217_v1  ;;  %v6021_v1 = vld [vmem:[#allocation5 + $0x20c] sm:$0xf0]  ;;  %v5443_v11 = vld [vmem:[#allocation5 + $0x5e0] sm:$0xf] }
 0x121   :  { %v1151_v18 = vrot.slane %v1150_v19, 4  ;;  %3116 = vmatpush.bf16.msra.mxu1 %v4836_v43  ;;  %3129 = vmatpush.bf16.msrb.mxu2 %v4964_v34  ;;  %v4948_v16 = vor.u32 %v6021_v1, %v4947_v55  ;;  %v6141_v43 = vld [vmem:[#allocation5 + $0x5cc] sm:$0xf0]  ;;  %v5555_v34 = vld [vmem:[#allocation5 + $0x6c0] sm:$0xf] }
 0x122   :  { %v1222_v25 = vsel %vm1149_vm5, %v1179_v53, 0.0  ;;  %v1148_v41 = vadd.f32 %v1147_v24, %v1146_v12  ;;  %v1220_v42 = vrot.slane %v1219_v26, 1  ;;  %v6113_v12 = vld [vmem:[#allocation5 + $0x4ec] sm:$0xf0]  ;;  %3141 = vmatpush.bf16.msrb.mxu3 %v5108_v63  ;;  %v5571_v53 = vld [vmem:[#allocation5 + $0x6e0] sm:$0xf] }
 0x123   :  { %v1095_v33 = vpop.f32.mrf.mxu3  ;;  %v1152_v44 = vadd.f32 %v1151_v18, %v1150_v19  ;;  %v1223_v48 = vrot.slane %v1222_v25, 4  ;;  %v6145_v19 = vld [vmem:[#allocation5 + $0x5ec] sm:$0xf0]  ;;  %3104 = vmatpush.bf16.msra.mxu0 %v4692_v56  ;;  %v5316_v28 = vor.u32 %v6113_v12, %v5315_v13  ;;  %v5283_v55 = vld [vmem:[#allocation5 + $0x4a0] sm:$0xf] }
 0x124   :  { %v6742_v51 = vmul.f32 %v6526_v57, %v1148_v41  ;;  %v1221_v49 = vadd.f32 %v1220_v42, %v1219_v26  ;;  %v6177_v24 = vld [vmem:[#allocation5 + $0x6ec] sm:$0xf0]  ;;  %v5075_v26 = vld [vmem:[#allocation5 + $0x300] sm:$0xf]  ;;  %v6748_v33 = vpop.eup %6268  ;;  %v5444_v39 = vor.u32 %v6145_v19, %v5443_v11 }
 0x125   :  { %v1153_v52 = vrot.slane %v1152_v44, 2  ;;  %v1224_v58 = vadd.f32 %v1223_v48, %v1222_v25  ;;  %3117 = vmatpush.bf16.msra.mxu1 %v4820_v15  ;;  %3130 = vmatpush.bf16.msrb.mxu2 %v4948_v16  ;;  %v5299_v25 = vld [vmem:[#allocation5 + $0x4c0] sm:$0xf]  ;;  %v5572_v40 = vor.u32 %v6177_v24, %v5571_v53  ;;  %v6109_v41 = vld [vmem:[#allocation5 + $0x4cc] sm:$0xf0]  ;;  %v6752_v45 = vpop.eup %6270  ;;  %v5076_v48 = vor.u32 %v6053_v29, %v5075_v26 }
 0x126   :  { %v1235_v5 = vmul.f32 %v1221_v49, %v6526_v57  ;;  %v1243_v9 = vmul.f32 %v6742_v51, %v6742_v51  ;;  %v5427_v42 = vld [vmem:[#allocation5 + $0x5c0] sm:$0xf]  ;;  %3142 = vmatpush.bf16.msrb.mxu3 %v5092_v60  ;;  %v5300_v49 = vor.u32 %v6109_v41, %v5299_v25  ;;  %v6173_v54 = vld [vmem:[#allocation5 + $0x6cc] sm:$0xf0]  ;;  %vm1316_vm8 = vweird.f32 %v6748_v33 }
 0x127   :  { %v1154_v10 = vadd.f32 %v1153_v52, %v1152_v44  ;;  %v1225_v14 = vrot.slane %v1224_v58, 2  ;;  %v6750_v44 = vld [vmem:[#allocation5 + $0x7c0] sm:$0xff]  ;;  %3149 = vmatpush.bf16.msrb.mxu0 %v5316_v28  ;;  %v5428_v52 = vor.u32 %v6141_v43, %v5427_v42  ;;  %v5556_v56 = vor.u32 %v6173_v54, %v5555_v34  ;;  %v6105_v3 = vld [vmem:[#allocation5 + $0x4ac] sm:$0xf0]  ;;  %vm6792_vm10 = vmor %vm1315_vm7, %vm1316_vm8 }
 0x128   :  { %v1251_v20 = vsub.f32 %v1235_v5, %v1243_v9  ;;  %v2578_v1 = vunpack.c.l.b16 %v6750_v44  ;;  %v5411_v4 = vld [vmem:[#allocation5 + $0x5a0] sm:$0xf]  ;;  %v6137_v5 = vld [vmem:[#allocation5 + $0x5ac] sm:$0xf0]  ;;  %v1320_v9 = vmul.f32 %v6752_v45, %v6733_v8  ;;  %v5284_v15 = vor.u32 %v6105_v3, %v5283_v55 }
 0x129   :  { %v1155_v21 = vrot.slane %v1154_v10, 1  ;;  %v1226_v18 = vadd.f32 %v1225_v14, %v1224_v58  ;;  %3162 = vmatpush.bf16.msrb.mxu1 %v5444_v39  ;;  %3175 = vmatpush.bf16.msra.mxu2 %v5572_v40  ;;  %v1310_v58 = vmul.f32 %v6748_v33, %v6729_v62  ;;  %v5539_v13 = vld [vmem:[#allocation5 + $0x6a0] sm:$0xf]  ;;  %v6169_v12 = vld [vmem:[#allocation5 + $0x6ac] sm:$0xf0]  ;;  %vm1326_vm12 = vweird.f32 %v6752_v45 }
 0x12a   :  { %v1259_v31 = vmax.f32 %v1251_v20, 0.0  ;;  %3143 = vmatpush.bf16.msrb.mxu3 %v5076_v48  ;;  %v2830_v14 = vpack.c.b16 %v2578_v1, %v2578_v1  ;;  %v5667_v16 = vld [vmem:[#allocation5 + $0x7a0] sm:$0xf]  ;;  %v6201_v19 = vld [vmem:[#allocation5 + $0x7ac] sm:$0xf0]  ;;  %v5412_v20 = vor.u32 %v6137_v5, %v5411_v4  ;;  %v1321_v40 = vmul.f32 %v6752_v45, %v1320_v9  ;;  %vm6805_vm13 = vmor %vm1325_vm11, %vm1326_vm12 }
 0x12b   :  { %v1156_v38 = vadd.f32 %v1155_v21, %v1154_v10  ;;  %v1227_v46 = vrot.slane %v1226_v18, 1  ;;  %3150 = vmatpush.bf16.msrb.mxu0 %v5300_v49  ;;  %v5267_v53 = vld [vmem:[#allocation5 + $0x480] sm:$0xf]  ;;  %v5540_v21 = vor.u32 %v6169_v12, %v5539_v13  ;;  %v6101_v60 = vld [vmem:[#allocation5 + $0x48c] sm:$0xf0]  ;;  %vm1369_vm11 = vcmask 1044484  }
 0x12c   :  { %v6754_v27 = vadd.f32 1e-05, %v1259_v31  ;;  %v5395_v24 = vld [vmem:[#allocation5 + $0x580] sm:$0xf]  ;;  %v6133_v26 = vld [vmem:[#allocation5 + $0x58c] sm:$0xf0]  ;;  %v1311_v31 = vmul.f32 %v6748_v33, %v1310_v58  ;;  %v5268_v42 = vor.u32 %v6101_v60, %v5267_v53 }
 0x12d   :  { %v6757_v50 = vmul.f32 %v6526_v57, %v1156_v38  ;;  %v1228_v63 = vadd.f32 %v1227_v46, %v1226_v18  ;;  %3163 = vmatpush.bf16.msrb.mxu1 %v5428_v52  ;;  %3176 = vmatpush.bf16.msra.mxu2 %v5556_v56  ;;  %v3086_v28 = vsel %vm1375_vm6, %v2830_v14, 0  ;;  %v5523_v29 = vld [vmem:[#allocation5 + $0x680] sm:$0xf]  ;;  %v6165_v25 = vld [vmem:[#allocation5 + $0x68c] sm:$0xf0]  ;;  %v5668_v38 = vor.u32 %v6201_v19, %v5667_v16 }
 0x12e   :  { %6272 = vrsqrt.f32 %v6754_v27  ;;  %3189 = vmatpush.bf16.msra.mxu3 %v3086_v28  ;;  %v5651_v39 = vld [vmem:[#allocation5 + $0x780] sm:$0xf]  ;;  %v6197_v46 = vld [vmem:[#allocation5 + $0x78c] sm:$0xf0]  ;;  %v5396_v34 = vor.u32 %v6133_v26, %v5395_v24  ;;  %v5524_v49 = vor.u32 %v6165_v25, %v5523_v29  ;;  %v6777_v3 = vmul.f32 0.5, %v1311_v31 }
 0x12f   :  { %v1244_v10 = vmul.f32 %v6757_v50, %v6757_v50  ;;  %v1236_v11 = vmul.f32 %v1228_v63, %v6526_v57  ;;  %3151 = vmatpush.bf16.msrb.mxu0 %v5284_v15  ;;  %v5251_v48 = vld [vmem:[#allocation5 + $0x460] sm:$0xf]  ;;  %v6097_v52 = vld [vmem:[#allocation5 + $0x46c] sm:$0xf0]  ;;  %v5652_v4 = vor.u32 %v6197_v46, %v5651_v39  ;;  %v1322_v5 = vmul.f32 0.5, %v1321_v40 }
 0x130   :  { %v5379_v54 = vld [vmem:[#allocation5 + $0x560] sm:$0xf]  ;;  %v6129_v55 = vld [vmem:[#allocation5 + $0x56c] sm:$0xf0]  ;;  %v1313_v26 = vsub.f32 1.5, %v6777_v3  ;;  %vm1335_vm2 = vweird.f32 %v6754_v27  ;;  %vm1371_vm12 = vcmask 1046534  }
 0x131   :  { %v1252_v18 = vsub.f32 %v1236_v11, %v1244_v10  ;;  %3164 = vmatpush.bf16.msrb.mxu1 %v5412_v20  ;;  %3177 = vmatpush.bf16.msra.mxu2 %v5540_v21  ;;  %v5507_v56 = vld [vmem:[#allocation5 + $0x660] sm:$0xf]  ;;  %v6161_v1 = vld [vmem:[#allocation5 + $0x66c] sm:$0xf0]  ;;  %v5252_v10 = vor.u32 %v6097_v52, %v5251_v48  ;;  %v5380_v11 = vor.u32 %v6129_v55, %v5379_v54 }
 0x132   :  { %3190 = vmatpush.bf16.msra.mxu3 %v5668_v38  ;;  %v5635_v13 = vld [vmem:[#allocation5 + $0x760] sm:$0xf]  ;;  %v6193_v12 = vld [vmem:[#allocation5 + $0x76c] sm:$0xf0]  ;;  %v5508_v14 = vor.u32 %v6161_v1, %v5507_v56 }
 0x133   :  { %v1260_v41 = vmax.f32 %v1252_v18, 0.0  ;;  %3152 = vmatpush.bf16.msrb.mxu0 %v5268_v42  ;;  %v5235_v15 = vld [vmem:[#allocation5 + $0x440] sm:$0xf]  ;;  %v6093_v16 = vld [vmem:[#allocation5 + $0x44c] sm:$0xf0]  ;;  %v5636_v24 = vor.u32 %v6193_v12, %v5635_v13  ;;  %v1323_v18 = vsub.f32 1.5, %v1322_v5  ;;  %v1314_v12 = vmul.f32 %v6748_v33, %v1313_v26 }
 0x134   :  { %v6771_v43 = vpop.eup %6272  ;;  %v5363_v19 = vld [vmem:[#allocation5 + $0x540] sm:$0xf]  ;;  %v6125_v53 = vld [vmem:[#allocation5 + $0x54c] sm:$0xf0]  ;;  %v5236_v28 = vor.u32 %v6093_v16, %v5235_v15 }
 0x135   :  { %v1330_v58 = vmul.f32 %v6771_v43, %v6754_v27  ;;  %v6775_v63 = vadd.f32 1e-05, %v1260_v41  ;;  %3165 = vmatpush.bf16.msrb.mxu1 %v5396_v34  ;;  %3178 = vmatpush.bf16.msra.mxu2 %v5524_v49  ;;  %v5491_v20 = vld [vmem:[#allocation5 + $0x640] sm:$0xf]  ;;  %v6157_v21 = vld [vmem:[#allocation5 + $0x64c] sm:$0xf0]  ;;  %v5364_v31 = vor.u32 %v6125_v53, %v5363_v19  ;;  %vm1336_vm14 = vweird.f32 %v6771_v43 }
 0x136   :  { %3191 = vmatpush.bf16.msra.mxu3 %v5652_v4  ;;  %v5619_v29 = vld [vmem:[#allocation5 + $0x740] sm:$0xf]  ;;  %v6189_v25 = vld [vmem:[#allocation5 + $0x74c] sm:$0xf0]  ;;  %v5492_v38 = vor.u32 %v6157_v21, %v5491_v20  ;;  %vm1337_vm4 = vmor %vm1335_vm2, %vm1336_vm14 }
 0x137   :  { %v1331_v9 = vmul.f32 %v6771_v43, %v1330_v58  ;;  %6274 = vrsqrt.f32 %v6775_v63  ;;  %3153 = vmatpush.bf16.msrb.mxu0 %v5252_v10  ;;  %v5219_v39 = vld [vmem:[#allocation5 + $0x420] sm:$0xf]  ;;  %v6089_v40 = vld [vmem:[#allocation5 + $0x42c] sm:$0xf0]  ;;  %v5620_v54 = vor.u32 %v6189_v25, %v5619_v29  ;;  %v1324_v58 = vmul.f32 %v6752_v45, %v1323_v18 }
 0x138   :  { %v5347_v41 = vld [vmem:[#allocation5 + $0x520] sm:$0xf]  ;;  %v6121_v46 = vld [vmem:[#allocation5 + $0x52c] sm:$0xf0]  ;;  %v5220_v56 = vor.u32 %v6089_v40, %v5219_v39  ;;  %v1318_v29 = vsel %vm6792_vm10, %v6748_v33, %v1314_v12  ;;  %vm1345_vm7 = vweird.f32 %v6775_v63  ;;  %vm1373_vm10 = vcmask 1045508  }
 0x139   :  { %v1332_v60 = vmul.f32 0.5, %v1331_v9  ;;  %3166 = vmatpush.bf16.msrb.mxu1 %v5380_v11  ;;  %3179 = vmatpush.bf16.msra.mxu2 %v5508_v14  ;;  %v5475_v48 = vld [vmem:[#allocation5 + $0x620] sm:$0xf]  ;;  %v6153_v34 = vld [vmem:[#allocation5 + $0x62c] sm:$0xf0]  ;;  %v5348_v5 = vor.u32 %v6121_v46, %v5347_v41  ;;  %v1328_v21 = vsel %vm6805_vm13, %v6752_v45, %v1324_v58  ;;  %v1360_v33 = vrot.slane %v1318_v29, 4 }
 0x13a   :  { %3192 = vmatpush.bf16.msra.mxu3 %v5636_v24  ;;  %v5603_v1 = vld [vmem:[#allocation5 + $0x720] sm:$0xf]  ;;  %v6185_v3 = vld [vmem:[#allocation5 + $0x72c] sm:$0xf0]  ;;  %v5476_v62 = vor.u32 %v6153_v34, %v5475_v48 }
 0x13b   :  { %v1333_v49 = vsub.f32 1.5, %v1332_v60  ;;  %3154 = vmatpush.bf16.msrb.mxu0 %v5236_v28  ;;  %v5203_v9 = vld [vmem:[#allocation5 + $0x400] sm:$0xf]  ;;  %v6085_v10 = vld [vmem:[#allocation5 + $0x40c] sm:$0xf0]  ;;  %v5604_v20 = vor.u32 %v6185_v3, %v5603_v1 }
 0x13c   :  { %v5331_v13 = vld [vmem:[#allocation5 + $0x500] sm:$0xf]  ;;  %v6117_v11 = vld [vmem:[#allocation5 + $0x50c] sm:$0xf0]  ;;  %v5204_v60 = vor.u32 %v6085_v10, %v5203_v9 }
 0x13d   :  { %v6784_v42 = vpop.eup %6274  ;;  %3167 = vmatpush.bf16.msrb.mxu1 %v5364_v31  ;;  %3180 = vmatpush.bf16.msra.mxu2 %v5492_v38  ;;  %v5459_v14 = vld [vmem:[#allocation5 + $0x600] sm:$0xf]  ;;  %v6149_v15 = vld [vmem:[#allocation5 + $0x60c] sm:$0xf0]  ;;  %v1334_v19 = vmul.f32 %v6771_v43, %v1333_v49  ;;  %v5332_v18 = vor.u32 %v6117_v11, %v5331_v13  ;;  %v1361_v31 = vrot.slane %v1328_v21, 3 }
 0x13e   :  { %v1340_v52 = vmul.f32 %v6784_v42, %v6775_v63  ;;  %3193 = vmatpush.bf16.msra.mxu3 %v5620_v54  ;;  %v5587_v8 = vld [vmem:[#allocation5 + $0x700] sm:$0xf]  ;;  %v6181_v24 = vld [vmem:[#allocation5 + $0x70c] sm:$0xf0]  ;;  %vm1346_vm3 = vweird.f32 %v6784_v42  ;;  %v5460_v28 = vor.u32 %v6149_v15, %v5459_v14 }
 0x13f   :  { %3155 = vmatpush.bf16.msrb.mxu0 %v5220_v56  ;;  %v1338_v45 = vsel %vm1337_vm4, %v6771_v43, %v1334_v19  ;;  %v5588_v25 = vor.u32 %v6181_v24, %v5587_v8  ;;  %vm1347_vm8 = vmor %vm1345_vm7, %vm1346_vm3  ;;  %v1105_v43 = vld [vmem:[%s7180_s4] sm:$0xff]  ;;  %v1370_v63 = vsel %vm1369_vm11, %v1360_v33, %v1361_v31  ;;  %s6371_s4 = smov [#allocation7]  }
 0x140   :  { %v1341_v4 = vmul.f32 %v6784_v42, %v1340_v52  ;;  %v1362_v39 = vrot.slane %v1338_v45, 2  ;;  %v5983_v8 = vld [vmem:[#allocation5 + $0xe4] sm:$0xf]  ;;  %s4152_s3 = sshll.u32 %s6371_s4, 4  ;;  %s4153_s3 = int_to_ptr.vmem [resolvable:$true] %s4152_s3 }
 0x141   :  { %3168 = vmatpush.bf16.msrb.mxu1 %v5348_v5  ;;  %3181 = vmatpush.bf16.msra.mxu2 %v5476_v62 }
 0x142   :  { %v1342_v53 = vmul.f32 0.5, %v1341_v4  ;;  %3194 = vmatpush.bf16.msra.mxu3 %v5604_v20 }
 0x143   :  { %3156 = vmatpush.bf16.msrb.mxu0 %v5204_v60 }
 0x144   :  { %v1343_v26 = vsub.f32 1.5, %v1342_v53 }
 0x145   :  { %3169 = vmatpush.bf16.msrb.mxu1 %v5332_v18  ;;  %3182 = vmatpush.bf16.msra.mxu2 %v5460_v28  ;;  %v6015_v18 = vld [vmem:[#allocation5 + $0x1e4] sm:$0xf] }
 0x146   :  { %v1344_v27 = vmul.f32 %v6784_v42, %v1343_v26  ;;  %3195 = vmatpush.bf16.msra.mxu3 %v5588_v25 }
 0x148   :  { %v1348_v38 = vsel %vm1347_vm8, %v6784_v42, %v1344_v27 }
 0x149   :  { %v1363_v40 = vrot.slane %v1348_v38, 1  ;;  %v4933_v38 = vld [vmem:[#allocation5 + $0x1f0] sm:$0xf0] }
 0x14b   :  { %v1372_v41 = vsel %vm1371_vm12, %v1362_v39, %v1363_v40 }
 0x14c   :  { %v1374_v46 = vsel %vm1373_vm10, %v1370_v63, %v1372_v41 }
 0x14d   :  { %v1376_v42 = vsel %vm1375_vm6, %v6710_v35, %v1374_v46 }
 0x14e   :  { %v1378_v48 = vmul.f32 %v1376_v42, %v1105_v43 }
 0x150   :  { %v1380_v34 = vperm.slane %v1378_v48, 0  ;;  %v1381_v49 = vperm.slane %v1378_v48, 1  ;;  %v1382_v52 = vperm.slane %v1378_v48, 2  ;;  %v1383_v54 = vperm.slane %v1378_v48, 3 }
 0x151   :  { %v1384_v55 = vperm.slane %v1378_v48, 4  ;;  %v1385_v58 = vperm.slane %v1378_v48, 5  ;;  %v1386_v56 = vperm.slane %v1378_v48, 6  ;;  %v1387_v1 = vperm.slane %v1378_v48, 7  ;;  %v6079_v48 = vld [vmem:[#allocation5 + $0x3e4] sm:$0xf] }
 0x152   :  { %v1396_v3 = vmul.f32 %v1380_v34, %v6529_v59  ;;  %v1397_v4 = vmul.f32 %v1381_v49, %v6535_v6  ;;  %v1398_v5 = vmul.f32 %v1382_v52, %v6567_v7  ;;  %v1399_v62 = vmul.f32 %v1383_v54, %v6577_v17 }
 0x153   :  { %v1400_v9 = vmul.f32 %v1384_v55, %v6669_v47  ;;  %v1401_v35 = vmul.f32 %v1385_v58, %v6706_v32  ;;  %v1402_v10 = vmul.f32 %v1386_v56, %v6742_v51  ;;  %v1403_v13 = vmul.f32 %v1387_v1, %v6757_v50  ;;  %v1106_v51 = vld [vmem:[%s7181_s5] sm:$0xff] }
 0x154   :  { %v1412_v12 = vrot.slane %v1397_v4, 7  ;;  %v1413_v11 = vrot.slane %v1398_v5, 6  ;;  %v1414_v14 = vrot.slane %v1399_v62, 5  ;;  %v1435_v15 = vmul.f32 %v1387_v1, %v6731_v2  ;;  %v5979_v1 = vld [vmem:[#allocation5 + $0xc4] sm:$0xf] }
 0x155   :  { %v1415_v59 = vrot.slane %v1400_v9, 4  ;;  %v1416_v16 = vrot.slane %v1401_v35, 3  ;;  %v1417_v6 = vrot.slane %v1402_v10, 2  ;;  %v1418_v19 = vrot.slane %v1403_v13, 1  ;;  %v6011_v9 = vld [vmem:[#allocation5 + $0x1c4] sm:$0xf] }
 0x156   :  { %v1419_v7 = vsel %vm1364_vm9, %v1396_v3, %v1412_v12  ;;  %v1420_v17 = vsel %vm1366_vm15, %v1413_v11, %v1414_v14  ;;  %v1428_v47 = vmul.f32 %v1380_v34, %v6514_v0  ;;  %v1429_v32 = vmul.f32 %v1381_v49, %v6520_v37  ;;  %v4805_v0 = vld [vmem:[#allocation5 + $0xf0] sm:$0xf0]  ;;  %v6043_v10 = vld [vmem:[#allocation5 + $0x2c4] sm:$0xf] }
 0x157   :  { %v1421_v50 = vsel %vm864_vm0, %v1419_v7, %v1420_v17  ;;  %v1422_v2 = vsel %vm1369_vm11, %v1415_v59, %v1416_v16  ;;  %v1423_v53 = vsel %vm1371_vm12, %v1417_v6, %v1418_v19  ;;  %v1430_v20 = vmul.f32 %v1382_v52, %v6542_v23  ;;  %v4789_v3 = vld [vmem:[#allocation5 + $0xd0] sm:$0xf0]  ;;  %v6075_v12 = vld [vmem:[#allocation5 + $0x3c4] sm:$0xf] }
 0x158   :  { %v1424_v21 = vsel %vm1373_vm10, %v1422_v2, %v1423_v53  ;;  %v1431_v60 = vmul.f32 %v1383_v54, %v6550_v30  ;;  %v4808_v26 = vor.u32 %v5983_v8, %v4805_v0  ;;  %v1432_v28 = vmul.f32 %v1384_v55, %v6589_v36  ;;  %v6047_v30 = vld [vmem:[#allocation5 + $0x2e4] sm:$0xf]  ;;  %v5061_v36 = vld [vmem:[#allocation5 + $0x2f0] sm:$0xf0] }
 0x159   :  { %v1425_v37 = vsel %vm1375_vm6, %v1421_v50, %v1424_v21  ;;  %v1433_v29 = vmul.f32 %v1385_v58, %v6611_v61  ;;  %v1434_v45 = vmul.f32 %v1386_v56, %v6721_v22  ;;  %v5189_v61 = vld [vmem:[#allocation5 + $0x3f0] sm:$0xf0]  ;;  %v4936_v56 = vor.u32 %v6015_v18, %v4933_v38  ;;  %v5975_v59 = vld [vmem:[#allocation5 + $0xa4] sm:$0xf] }
 0x15a   :  { %v1427_v24 = vsub.f32 %v1106_v51, %v1425_v37  ;;  %v5064_v5 = vor.u32 %v6047_v30, %v5061_v36  ;;  %v5192_v62 = vor.u32 %v6079_v48, %v5189_v61  ;;  %v4917_v35 = vld [vmem:[#allocation5 + $0x1d0] sm:$0xf0]  ;;  %v4792_v14 = vor.u32 %v5979_v1, %v4789_v3  ;;  %v6007_v7 = vld [vmem:[#allocation5 + $0x1a4] sm:$0xf] }
 0x15b   :  { %v5045_v13 = vld [vmem:[#allocation5 + $0x2d0] sm:$0xf0]  ;;  %v6071_v51 = vld [vmem:[#allocation5 + $0x3a4] sm:$0xf] }
 0x15c   :  { %v1444_v27 = vperm.slane %v1427_v24, 7  ;;  %v1437_v25 = vperm.slane %v1427_v24, 0  ;;  %v1438_v23 = vperm.slane %v1427_v24, 1  ;;  %v1439_v31 = vperm.slane %v1427_v24, 2  ;;  %v5173_v11 = vld [vmem:[#allocation5 + $0x3d0] sm:$0xf0] }
 0x15d   :  { %v1440_v33 = vperm.slane %v1427_v24, 3  ;;  %v1441_v39 = vperm.slane %v1427_v24, 4  ;;  %v1442_v40 = vperm.slane %v1427_v24, 5  ;;  %v1443_v43 = vperm.slane %v1427_v24, 6  ;;  %v4773_v16 = vld [vmem:[#allocation5 + $0xb0] sm:$0xf0] }
 0x15e   :  { %v6859_v63 = vadd.f32 %v1444_v27, %v1435_v15  ;;  %v1453_v41 = vadd.f32 %v1437_v25, %v1428_v47  ;;  %v1454_v46 = vadd.f32 %v1438_v23, %v1429_v32  ;;  %v1455_v42 = vadd.f32 %v1439_v31, %v1430_v20  ;;  %v4901_v17 = vld [vmem:[#allocation5 + $0x1b0] sm:$0xf0]  ;;  %v6039_v47 = vld [vmem:[#allocation5 + $0x2a4] sm:$0xf] }
 0x15f   :  { %v1456_v34 = vadd.f32 %v1440_v33, %v1431_v60  ;;  %v6861_v22 = vadd.f32 %v1441_v39, %v1432_v28  ;;  %v6863_v49 = vadd.f32 %v1442_v40, %v1433_v29  ;;  %v6865_v52 = vadd.f32 %v1443_v43, %v1434_v45  ;;  %v5029_v32 = vld [vmem:[#allocation5 + $0x2b0] sm:$0xf0]  ;;  %v5971_v20 = vld [vmem:[#allocation5 + $0x84] sm:$0xf] }
 0x160   :  { %v6867_v54 = vpack.c.bf16 %v1453_v41, %v1453_v41  ;;  %v6869_v55 = vpack.c.bf16 %v1454_v46, %v1454_v46  ;;  %v6871_v58 = vpack.c.bf16 %v1455_v42, %v1455_v42  ;;  %v4920_v15 = vor.u32 %v6011_v9, %v4917_v35  ;;  %v5157_v50 = vld [vmem:[#allocation5 + $0x3b0] sm:$0xf0]  ;;  %v6003_v0 = vld [vmem:[#allocation5 + $0x184] sm:$0xf] }
 0x161   :  { %v6873_v4 = vpack.c.bf16 %v1456_v34, %v1456_v34  ;;  %v5048_v6 = vor.u32 %v6043_v10, %v5045_v13  ;;  %v5176_v19 = vor.u32 %v6075_v12, %v5173_v11  ;;  %v4776_v2 = vor.u32 %v5975_v59, %v4773_v16  ;;  %v4757_v21 = vld [vmem:[#allocation5 + $0x90] sm:$0xf0]  ;;  %v6035_v24 = vld [vmem:[#allocation5 + $0x284] sm:$0xf] }
 0x162   :  { %3105 = vmatmul.bf16.vlgmr.msra.gmra.mxu0 %v6867_v54  ;;  %3118 = vmatmul.bf16.vlgmr.msra.gmra.mxu1 %v6869_v55  ;;  %v4904_v53 = vor.u32 %v6007_v7, %v4901_v17  ;;  %v5032_v60 = vor.u32 %v6039_v47, %v5029_v32  ;;  %v5160_v8 = vor.u32 %v6071_v51, %v5157_v50  ;;  %v4885_v37 = vld [vmem:[#allocation5 + $0x190] sm:$0xf0]  ;;  %v6067_v18 = vld [vmem:[#allocation5 + $0x384] sm:$0xf]  ;;  %v2579_v50 = vunpack.c.h.b16 %v6750_v44 }
 0x163   :  { %3131 = vmatmul.bf16.vlgmr.msrb.gmra.mxu2 %v6871_v58  ;;  %3144 = vmatmul.bf16.vlgmr.msrb.gmra.mxu3 %v6873_v4  ;;  %v5141_v28 = vld [vmem:[#allocation5 + $0x390] sm:$0xf0]  ;;  %v5967_v29 = vld [vmem:[#allocation5 + $0x64] sm:$0xf]  ;;  %v4760_v45 = vor.u32 %v5971_v20, %v4757_v21  ;;  %v4888_v27 = vor.u32 %v6003_v0, %v4885_v37  ;;  %v6881_v42 = vpack.c.bf16 %v6861_v22, %v6861_v22 }
 0x164   :  { %3201 = vmatpush.bf16.msrb.mxu3 %v4808_v26  ;;  %3214 = vmatpush.bf16.msra.mxu0 %v4936_v56  ;;  %v5013_v26 = vld [vmem:[#allocation5 + $0x290] sm:$0xf0]  ;;  %v5999_v23 = vld [vmem:[#allocation5 + $0x164] sm:$0xf]  ;;  %v5144_v33 = vor.u32 %v6067_v18, %v5141_v28  ;;  %v6885_v36 = vpack.c.bf16 %v6863_v49, %v6863_v49  ;;  %v6889_v56 = vpack.c.bf16 %v6859_v63, %v6859_v63 }
 0x165   :  { %3227 = vmatpush.bf16.msra.mxu1 %v5064_v5  ;;  %3240 = vmatpush.bf16.msrb.mxu2 %v5192_v62  ;;  %v4741_v25 = vld [vmem:[#allocation5 + $0x70] sm:$0xf0]  ;;  %v5016_v38 = vor.u32 %v6035_v24, %v5013_v26  ;;  %v6031_v30 = vld [vmem:[#allocation5 + $0x264] sm:$0xf]  ;;  %v6893_v1 = vpack.c.bf16 %v6865_v52, %v6865_v52  ;;  %v2831_v44 = vpack.c.b16 %v2579_v50, %v2579_v50 }
 0x166   :  { %v4869_v31 = vld [vmem:[#allocation5 + $0x170] sm:$0xf0]  ;;  %v6063_v40 = vld [vmem:[#allocation5 + $0x364] sm:$0xf]  ;;  %v4744_v41 = vor.u32 %v5967_v29, %v4741_v25 }
 0x167   :  { %v4997_v39 = vld [vmem:[#allocation5 + $0x270] sm:$0xf0]  ;;  %v4872_v46 = vor.u32 %v5999_v23, %v4869_v31  ;;  %v5963_v61 = vld [vmem:[#allocation5 + $0x44] sm:$0xf] }
 0x168   :  { %3202 = vmatpush.bf16.msrb.mxu3 %v4792_v14  ;;  %3215 = vmatpush.bf16.msra.mxu0 %v4920_v15  ;;  %v5125_v43 = vld [vmem:[#allocation5 + $0x370] sm:$0xf0]  ;;  %v5000_v48 = vor.u32 %v6031_v30, %v4997_v39  ;;  %v5995_v22 = vld [vmem:[#allocation5 + $0x144] sm:$0xf] }
 0x169   :  { %3228 = vmatpush.bf16.msra.mxu1 %v5048_v6  ;;  %3241 = vmatpush.bf16.msrb.mxu2 %v5176_v19  ;;  %v4725_v34 = vld [vmem:[#allocation5 + $0x50] sm:$0xf0]  ;;  %v5128_v3 = vor.u32 %v6063_v40, %v5125_v43  ;;  %v6027_v62 = vld [vmem:[#allocation5 + $0x244] sm:$0xf] }
 0x16a   :  { %v4853_v5 = vld [vmem:[#allocation5 + $0x150] sm:$0xf0]  ;;  %v6059_v9 = vld [vmem:[#allocation5 + $0x344] sm:$0xf]  ;;  %v4728_v63 = vor.u32 %v5963_v61, %v4725_v34 }
 0x16b   :  { %v4981_v49 = vld [vmem:[#allocation5 + $0x250] sm:$0xf0]  ;;  %v4856_v52 = vor.u32 %v5995_v22, %v4853_v5  ;;  %v5959_v10 = vld [vmem:[#allocation5 + $0x24] sm:$0xf] }
 0x16c   :  { %3203 = vmatpush.bf16.msrb.mxu3 %v4776_v2  ;;  %3216 = vmatpush.bf16.msra.mxu0 %v4904_v53  ;;  %v5109_v35 = vld [vmem:[#allocation5 + $0x350] sm:$0xf0]  ;;  %v4984_v12 = vor.u32 %v6027_v62, %v4981_v49  ;;  %v5991_v14 = vld [vmem:[#allocation5 + $0x124] sm:$0xf] }
 0x16d   :  { %3229 = vmatpush.bf16.msra.mxu1 %v5032_v60  ;;  %3242 = vmatpush.bf16.msrb.mxu2 %v5160_v8  ;;  %v4709_v13 = vld [vmem:[#allocation5 + $0x30] sm:$0xf0]  ;;  %v5112_v11 = vor.u32 %v6059_v9, %v5109_v35  ;;  %v6023_v59 = vld [vmem:[#allocation5 + $0x224] sm:$0xf] }
 0x16e   :  { %v4837_v15 = vld [vmem:[#allocation5 + $0x130] sm:$0xf0]  ;;  %v6055_v6 = vld [vmem:[#allocation5 + $0x324] sm:$0xf]  ;;  %v4712_v7 = vor.u32 %v5959_v10, %v4709_v13 }
 0x16f   :  { %v4965_v16 = vld [vmem:[#allocation5 + $0x230] sm:$0xf0]  ;;  %v4840_v17 = vor.u32 %v5991_v14, %v4837_v15  ;;  %v5955_v47 = vld [vmem:[#allocation5 + $0x4] sm:$0xf] }
 0x170   :  { %3204 = vmatpush.bf16.msrb.mxu3 %v4760_v45  ;;  %3217 = vmatpush.bf16.msra.mxu0 %v4888_v27  ;;  %v5093_v19 = vld [vmem:[#allocation5 + $0x330] sm:$0xf0]  ;;  %v5987_v51 = vld [vmem:[#allocation5 + $0x104] sm:$0xf]  ;;  %v4968_v2 = vor.u32 %v6023_v59, %v4965_v16 }
 0x171   :  { %3230 = vmatpush.bf16.msra.mxu1 %v5016_v38  ;;  %3243 = vmatpush.bf16.msrb.mxu2 %v5144_v33  ;;  %v4693_v32 = vld [vmem:[#allocation5 + $0x10] sm:$0xf0]  ;;  %v5096_v53 = vor.u32 %v6055_v6, %v5093_v19  ;;  %v6019_v21 = vld [vmem:[#allocation5 + $0x204] sm:$0xf] }
 0x172   :  { %3157 = vmatmul.bf16.vlgmr.msrb.gmra.mxu0 %v6881_v42  ;;  %3170 = vmatmul.bf16.vlgmr.msrb.gmra.mxu1 %v6885_v36  ;;  %v4821_v20 = vld [vmem:[#allocation5 + $0x110] sm:$0xf0]  ;;  %v6051_v8 = vld [vmem:[#allocation5 + $0x304] sm:$0xf]  ;;  %v4696_v28 = vor.u32 %v5955_v47, %v4693_v32 }
 0x173   :  { %3183 = vmatmul.bf16.vlgmr.msra.gmra.mxu2 %v6893_v1  ;;  %5681 = vmatmul.msk.bf16.vlgmr.msra.gmra.mxu3 %vm1149_vm5, %v6889_v56  ;;  %v4949_v60 = vld [vmem:[#allocation5 + $0x210] sm:$0xf0]  ;;  %v6111_v37 = vld [vmem:[#allocation5 + $0x4e4] sm:$0xf]  ;;  %v4824_v29 = vor.u32 %v5987_v51, %v4821_v20 }
 0x174   :  { %3205 = vmatpush.bf16.msrb.mxu3 %v4744_v41  ;;  %3218 = vmatpush.bf16.msra.mxu0 %v4872_v46  ;;  %v5077_v0 = vld [vmem:[#allocation5 + $0x310] sm:$0xf0]  ;;  %v6143_v26 = vld [vmem:[#allocation5 + $0x5e4] sm:$0xf]  ;;  %v4952_v25 = vor.u32 %v6019_v21, %v4949_v60 }
 0x175   :  { %3231 = vmatpush.bf16.msra.mxu1 %v5000_v48  ;;  %3244 = vmatpush.bf16.msrb.mxu2 %v5128_v3  ;;  %v5317_v24 = vld [vmem:[#allocation5 + $0x4f0] sm:$0xf0]  ;;  %v6175_v45 = vld [vmem:[#allocation5 + $0x6e4] sm:$0xf]  ;;  %v5080_v23 = vor.u32 %v6051_v8, %v5077_v0  ;;  %v3089_v48 = vsel %vm1375_vm6, %v2831_v44, 0 }
 0x176   :  { %v5445_v18 = vld [vmem:[#allocation5 + $0x5f0] sm:$0xf0]  ;;  %v5320_v31 = vor.u32 %v6111_v37, %v5317_v24  ;;  %v6107_v33 = vld [vmem:[#allocation5 + $0x4c4] sm:$0xf] }
 0x177   :  { %v5573_v27 = vld [vmem:[#allocation5 + $0x6f0] sm:$0xf0]  ;;  %v5448_v38 = vor.u32 %v6143_v26, %v5445_v18  ;;  %v6139_v39 = vld [vmem:[#allocation5 + $0x5c4] sm:$0xf] }
 0x178   :  { %3206 = vmatpush.bf16.msrb.mxu3 %v4728_v63  ;;  %3219 = vmatpush.bf16.msra.mxu0 %v4856_v52  ;;  %v5301_v30 = vld [vmem:[#allocation5 + $0x4d0] sm:$0xf0]  ;;  %v5576_v40 = vor.u32 %v6175_v45, %v5573_v27  ;;  %v6171_v41 = vld [vmem:[#allocation5 + $0x6c4] sm:$0xf] }
 0x179   :  { %3232 = vmatpush.bf16.msra.mxu1 %v4984_v12  ;;  %3245 = vmatpush.bf16.msrb.mxu2 %v5112_v11  ;;  %v5429_v43 = vld [vmem:[#allocation5 + $0x5d0] sm:$0xf0]  ;;  %v6199_v61 = vld [vmem:[#allocation5 + $0x7a4] sm:$0xf]  ;;  %v5304_v3 = vor.u32 %v6107_v33, %v5301_v30 }
 0x17a   :  { %v5557_v46 = vld [vmem:[#allocation5 + $0x6d0] sm:$0xf0]  ;;  %v5432_v22 = vor.u32 %v6139_v39, %v5429_v43  ;;  %v6103_v5 = vld [vmem:[#allocation5 + $0x4a4] sm:$0xf]  ;;  %v6906_v11 = vpop.f32.mrf.mxu1 }
 0x17b   :  { %v5669_v34 = vld [vmem:[#allocation5 + $0x7b0] sm:$0xf0]  ;;  %v5560_v49 = vor.u32 %v6171_v41, %v5557_v46  ;;  %v6135_v35 = vld [vmem:[#allocation5 + $0x5a4] sm:$0xf] }
 0x17c   :  { %3207 = vmatpush.bf16.msrb.mxu3 %v4712_v7  ;;  %3220 = vmatpush.bf16.msra.mxu0 %v4840_v17  ;;  %v5285_v62 = vld [vmem:[#allocation5 + $0x4b0] sm:$0xf0]  ;;  %v5672_v9 = vor.u32 %v6199_v61, %v5669_v34  ;;  %v6167_v52 = vld [vmem:[#allocation5 + $0x6a4] sm:$0xf] }
 0x17d   :  { %3233 = vmatpush.bf16.msra.mxu1 %v4968_v2  ;;  %3246 = vmatpush.bf16.msrb.mxu2 %v5096_v53  ;;  %v5413_v63 = vld [vmem:[#allocation5 + $0x5b0] sm:$0xf0]  ;;  %v6195_v13 = vld [vmem:[#allocation5 + $0x784] sm:$0xf]  ;;  %v5288_v14 = vor.u32 %v6103_v5, %v5285_v62 }
 0x17e   :  { %v5541_v10 = vld [vmem:[#allocation5 + $0x6b0] sm:$0xf0]  ;;  %v5416_v15 = vor.u32 %v6135_v35, %v5413_v63  ;;  %v6099_v59 = vld [vmem:[#allocation5 + $0x484] sm:$0xf]  ;;  %v4811_v63 = vld [vmem:[#allocation5 + $0xe8] sm:$0xf] }
 0x17f   :  { %v5653_v12 = vld [vmem:[#allocation5 + $0x790] sm:$0xf0]  ;;  %v5544_v6 = vor.u32 %v6167_v52, %v5541_v10  ;;  %v6131_v7 = vld [vmem:[#allocation5 + $0x584] sm:$0xf]  ;;  %v5986_v52 = vld [vmem:[#allocation5 + $0xf4] sm:$0xf0] }
 0x180   :  { %3208 = vmatpush.bf16.msrb.mxu3 %v4696_v28  ;;  %3221 = vmatpush.bf16.msra.mxu0 %v4824_v29  ;;  %v5269_v16 = vld [vmem:[#allocation5 + $0x490] sm:$0xf0]  ;;  %v5656_v19 = vor.u32 %v6195_v13, %v5653_v12  ;;  %v6163_v47 = vld [vmem:[#allocation5 + $0x684] sm:$0xf] }
 0x181   :  { %3234 = vmatpush.bf16.msra.mxu1 %v4952_v25  ;;  %3247 = vmatpush.bf16.msrb.mxu2 %v5080_v23  ;;  %v5397_v17 = vld [vmem:[#allocation5 + $0x590] sm:$0xf0]  ;;  %v6191_v51 = vld [vmem:[#allocation5 + $0x764] sm:$0xf]  ;;  %v5272_v2 = vor.u32 %v6099_v59, %v5269_v16 }
 0x182   :  { %v5525_v32 = vld [vmem:[#allocation5 + $0x690] sm:$0xf0]  ;;  %v5400_v53 = vor.u32 %v6131_v7, %v5397_v17  ;;  %v6095_v20 = vld [vmem:[#allocation5 + $0x464] sm:$0xf]  ;;  %v1791_v29 = vpop.f32.mrf.mxu1  ;;  %v4812_v7 = vor.u32 %v5986_v52, %v4811_v63  ;;  %v4891_v52 = vld [vmem:[#allocation5 + $0x188] sm:$0xf] }
 0x183   :  { %3209 = vmatmul.bf16.vlgmr.msrb.gmra.mxu3 %v6867_v54  ;;  %3222 = vmatmul.bf16.vlgmr.msra.gmra.mxu0 %v6869_v55  ;;  %v5637_v50 = vld [vmem:[#allocation5 + $0x770] sm:$0xf0]  ;;  %v5528_v60 = vor.u32 %v6163_v47, %v5525_v32  ;;  %v6127_v0 = vld [vmem:[#allocation5 + $0x564] sm:$0xf]  ;;  %v4795_v47 = vld [vmem:[#allocation5 + $0xc8] sm:$0xf] }
 0x184   :  { %3253 = vmatpush.bf16.msra.mxu3 %v5320_v31  ;;  %3266 = vmatpush.bf16.msrb.mxu0 %v5448_v38  ;;  %v5253_v21 = vld [vmem:[#allocation5 + $0x470] sm:$0xf0]  ;;  %v5640_v8 = vor.u32 %v6191_v51, %v5637_v50  ;;  %v6159_v24 = vld [vmem:[#allocation5 + $0x664] sm:$0xf]  ;;  %v5982_v32 = vld [vmem:[#allocation5 + $0xd4] sm:$0xf0] }
 0x185   :  { %3279 = vmatpush.bf16.msrb.mxu1 %v5576_v40  ;;  %3293 = vmatpush.bf16.msra.mxu2 %v3089_v48  ;;  %v5381_v37 = vld [vmem:[#allocation5 + $0x570] sm:$0xf0]  ;;  %v6187_v18 = vld [vmem:[#allocation5 + $0x744] sm:$0xf]  ;;  %v5256_v45 = vor.u32 %v6095_v20, %v5253_v21  ;;  %v4939_v51 = vld [vmem:[#allocation5 + $0x1e8] sm:$0xf] }
 0x186   :  { %3235 = vmatmul.bf16.vlgmr.msra.gmra.mxu1 %v6871_v58  ;;  %3248 = vmatmul.bf16.vlgmr.msrb.gmra.mxu2 %v6873_v4  ;;  %v5509_v26 = vld [vmem:[#allocation5 + $0x670] sm:$0xf0]  ;;  %v5384_v27 = vor.u32 %v6127_v0, %v5381_v37  ;;  %v6091_v44 = vld [vmem:[#allocation5 + $0x444] sm:$0xf]  ;;  %v6018_v50 = vld [vmem:[#allocation5 + $0x1f4] sm:$0xf0]  ;;  %v4796_v37 = vor.u32 %v5982_v32, %v4795_v47 }
 0x187   :  { %v5621_v28 = vld [vmem:[#allocation5 + $0x750] sm:$0xf0]  ;;  %v5512_v23 = vor.u32 %v6159_v24, %v5509_v26  ;;  %v6123_v38 = vld [vmem:[#allocation5 + $0x544] sm:$0xf]  ;;  %v6050_v20 = vld [vmem:[#allocation5 + $0x2f4] sm:$0xf0]  ;;  %v4940_v24 = vor.u32 %v6018_v50, %v4939_v51 }
 0x188   :  { %3254 = vmatpush.bf16.msra.mxu3 %v5304_v3  ;;  %3267 = vmatpush.bf16.msrb.mxu0 %v5432_v22  ;;  %v5237_v25 = vld [vmem:[#allocation5 + $0x450] sm:$0xf0]  ;;  %v5624_v31 = vor.u32 %v6187_v18, %v5621_v28  ;;  %v6155_v30 = vld [vmem:[#allocation5 + $0x644] sm:$0xf]  ;;  %v5195_v21 = vld [vmem:[#allocation5 + $0x3e8] sm:$0xf] }
 0x189   :  { %3280 = vmatpush.bf16.msrb.mxu1 %v5560_v49  ;;  %3294 = vmatpush.bf16.msra.mxu2 %v5672_v9  ;;  %v5365_v33 = vld [vmem:[#allocation5 + $0x550] sm:$0xf0]  ;;  %v6183_v40 = vld [vmem:[#allocation5 + $0x724] sm:$0xf]  ;;  %v5240_v41 = vor.u32 %v6091_v44, %v5237_v25  ;;  %v4779_v26 = vld [vmem:[#allocation5 + $0xa8] sm:$0xf] }
 0x18a   :  { %v5493_v39 = vld [vmem:[#allocation5 + $0x650] sm:$0xf0]  ;;  %v5368_v46 = vor.u32 %v6123_v38, %v5365_v33  ;;  %v6087_v48 = vld [vmem:[#allocation5 + $0x424] sm:$0xf]  ;;  %v5978_v18 = vld [vmem:[#allocation5 + $0xb4] sm:$0xf0] }
 0x18b   :  { %v5605_v43 = vld [vmem:[#allocation5 + $0x730] sm:$0xf0]  ;;  %v5496_v34 = vor.u32 %v6155_v30, %v5493_v39  ;;  %v6119_v22 = vld [vmem:[#allocation5 + $0x524] sm:$0xf]  ;;  %v5051_v44 = vld [vmem:[#allocation5 + $0x2c8] sm:$0xf]  ;;  %v4780_v38 = vor.u32 %v5978_v18, %v4779_v26 }
 0x18c   :  { %3255 = vmatpush.bf16.msra.mxu3 %v5288_v14  ;;  %3268 = vmatpush.bf16.msrb.mxu0 %v5416_v15  ;;  %v5221_v61 = vld [vmem:[#allocation5 + $0x430] sm:$0xf0]  ;;  %v5608_v3 = vor.u32 %v6183_v40, %v5605_v43  ;;  %v6151_v62 = vld [vmem:[#allocation5 + $0x624] sm:$0xf]  ;;  %v6046_v25 = vld [vmem:[#allocation5 + $0x2d4] sm:$0xf0] }
 0x18d   :  { %3281 = vmatpush.bf16.msrb.mxu1 %v5544_v6  ;;  %3295 = vmatpush.bf16.msra.mxu2 %v5656_v19  ;;  %v5349_v5 = vld [vmem:[#allocation5 + $0x530] sm:$0xf0]  ;;  %v6179_v9 = vld [vmem:[#allocation5 + $0x704] sm:$0xf]  ;;  %v5224_v10 = vor.u32 %v6087_v48, %v5221_v61  ;;  %v4763_v30 = vld [vmem:[#allocation5 + $0x88] sm:$0xf]  ;;  %v5052_v40 = vor.u32 %v6046_v25, %v5051_v44 }
 0x18e   :  { %v5477_v49 = vld [vmem:[#allocation5 + $0x630] sm:$0xf0]  ;;  %v5352_v13 = vor.u32 %v6119_v22, %v5349_v5  ;;  %v6083_v12 = vld [vmem:[#allocation5 + $0x404] sm:$0xf]  ;;  %v5974_v39 = vld [vmem:[#allocation5 + $0x94] sm:$0xf0]  ;;  %v6913_v22 = vpop.f32.mrf.mxu1 }
 0x18f   :  { %v5589_v35 = vld [vmem:[#allocation5 + $0x710] sm:$0xf0]  ;;  %v5480_v15 = vor.u32 %v6151_v62, %v5477_v49  ;;  %v6115_v16 = vld [vmem:[#allocation5 + $0x504] sm:$0xf]  ;;  %v5035_v48 = vld [vmem:[#allocation5 + $0x2a8] sm:$0xf]  ;;  %v4764_v5 = vor.u32 %v5974_v39, %v4763_v30 }
 0x190   :  { %3256 = vmatpush.bf16.msra.mxu3 %v5272_v2  ;;  %3269 = vmatpush.bf16.msrb.mxu0 %v5400_v53  ;;  %v5205_v14 = vld [vmem:[#allocation5 + $0x410] sm:$0xf0]  ;;  %v5592_v59 = vor.u32 %v6179_v9, %v5589_v35  ;;  %v6147_v19 = vld [vmem:[#allocation5 + $0x604] sm:$0xf]  ;;  %v5067_v2 = vld [vmem:[#allocation5 + $0x2e8] sm:$0xf] }
 0x191   :  { %3282 = vmatpush.bf16.msrb.mxu1 %v5528_v60  ;;  %3296 = vmatpush.bf16.msra.mxu2 %v5640_v8  ;;  %v5333_v6 = vld [vmem:[#allocation5 + $0x510] sm:$0xf0]  ;;  %v5208_v53 = vor.u32 %v6083_v12, %v5205_v14  ;;  %v6082_v60 = vld [vmem:[#allocation5 + $0x3f4] sm:$0xf0]  ;;  %v5068_v28 = vor.u32 %v6050_v20, %v5067_v2  ;;  %v4747_v49 = vld [vmem:[#allocation5 + $0x68] sm:$0xf] }
 0x192   :  { %v5461_v17 = vld [vmem:[#allocation5 + $0x610] sm:$0xf0]  ;;  %v5336_v8 = vor.u32 %v6115_v16, %v5333_v6  ;;  %v5196_v29 = vor.u32 %v6082_v60, %v5195_v21  ;;  %v6042_v61 = vld [vmem:[#allocation5 + $0x2b4] sm:$0xf0]  ;;  %v5147_v14 = vld [vmem:[#allocation5 + $0x388] sm:$0xf]  ;;  %v6917_v16 = vpop.f32.mrf.mxu3 }
 0x193   :  { %v5464_v0 = vor.u32 %v6147_v19, %v5461_v17  ;;  %v5970_v9 = vld [vmem:[#allocation5 + $0x74] sm:$0xf0]  ;;  %v5036_v35 = vor.u32 %v6042_v61, %v5035_v48  ;;  %v4875_v51 = vld [vmem:[#allocation5 + $0x168] sm:$0xf] }
 0x194   :  { %3257 = vmatpush.bf16.msra.mxu3 %v5256_v45  ;;  %3270 = vmatpush.bf16.msrb.mxu0 %v5384_v27  ;;  %v4923_v45 = vld [vmem:[#allocation5 + $0x1c8] sm:$0xf]  ;;  %v6014_v27 = vld [vmem:[#allocation5 + $0x1d4] sm:$0xf0]  ;;  %v4748_v6 = vor.u32 %v5970_v9, %v4747_v49 }
 0x195   :  { %3283 = vmatpush.bf16.msrb.mxu1 %v5512_v23  ;;  %3297 = vmatpush.bf16.msra.mxu2 %v5624_v31  ;;  %v5179_v23 = vld [vmem:[#allocation5 + $0x3c8] sm:$0xf]  ;;  %v6078_v31 = vld [vmem:[#allocation5 + $0x3d4] sm:$0xf0]  ;;  %v4924_v33 = vor.u32 %v6014_v27, %v4923_v45 }
 0x196   :  { %v5180_v43 = vor.u32 %v6078_v31, %v5179_v23  ;;  %v6038_v12 = vld [vmem:[#allocation5 + $0x294] sm:$0xf0]  ;;  %v5003_v2 = vld [vmem:[#allocation5 + $0x268] sm:$0xf]  ;;  %v1804_v60 = vpop.f32.mrf.mxu1 }
 0x197   :  { %v5966_v17 = vld [vmem:[#allocation5 + $0x54] sm:$0xf0]  ;;  %v5131_v20 = vld [vmem:[#allocation5 + $0x368] sm:$0xf] }
 0x198   :  { %3258 = vmatpush.bf16.msra.mxu3 %v5240_v41  ;;  %3271 = vmatpush.bf16.msrb.mxu0 %v5368_v46  ;;  %v4907_v41 = vld [vmem:[#allocation5 + $0x1a8] sm:$0xf]  ;;  %v6010_v46 = vld [vmem:[#allocation5 + $0x1b4] sm:$0xf0] }
 0x199   :  { %3284 = vmatpush.bf16.msrb.mxu1 %v5496_v34  ;;  %3298 = vmatpush.bf16.msra.mxu2 %v5608_v3  ;;  %v5163_v34 = vld [vmem:[#allocation5 + $0x3a8] sm:$0xf]  ;;  %v6074_v3 = vld [vmem:[#allocation5 + $0x3b4] sm:$0xf0]  ;;  %v4908_v62 = vor.u32 %v6010_v46, %v4907_v41 }
 0x19a   :  { %v5164_v63 = vor.u32 %v6074_v3, %v5163_v34  ;;  %v6002_v50 = vld [vmem:[#allocation5 + $0x174] sm:$0xf0]  ;;  %v4987_v45 = vld [vmem:[#allocation5 + $0x248] sm:$0xf] }
 0x19b   :  { %v6066_v21 = vld [vmem:[#allocation5 + $0x374] sm:$0xf0]  ;;  %v5115_v44 = vld [vmem:[#allocation5 + $0x348] sm:$0xf] }
 0x19c   :  { %3259 = vmatpush.bf16.msra.mxu3 %v5224_v10  ;;  %3272 = vmatpush.bf16.msrb.mxu0 %v5352_v13  ;;  %v6006_v10 = vld [vmem:[#allocation5 + $0x194] sm:$0xf0]  ;;  %v5019_v13 = vld [vmem:[#allocation5 + $0x288] sm:$0xf]  ;;  %v5132_v18 = vor.u32 %v6066_v21, %v5131_v20 }
 0x19d   :  { %3285 = vmatpush.bf16.msrb.mxu1 %v5480_v15  ;;  %3299 = vmatpush.bf16.msra.mxu2 %v5592_v59  ;;  %v6070_v15 = vld [vmem:[#allocation5 + $0x394] sm:$0xf0]  ;;  %v6915_v59 = vpop.f32.mrf.mxu2  ;;  %v4892_v19 = vor.u32 %v6006_v10, %v4891_v52  ;;  %v5020_v47 = vor.u32 %v6038_v12, %v5019_v13  ;;  %v6919_v23 = vld [vmem:[#allocation5 + $0x7c8] sm:$0xff] }
 0x19e   :  { %v5148_v32 = vor.u32 %v6070_v15, %v5147_v14  ;;  %v6030_v27 = vld [vmem:[#allocation5 + $0x254] sm:$0xf0]  ;;  %v4699_v39 = vld [vmem:[#allocation5 + $0x8] sm:$0xf] }
 0x19f   :  { %v6062_v25 = vld [vmem:[#allocation5 + $0x354] sm:$0xf0]  ;;  %v4843_v46 = vld [vmem:[#allocation5 + $0x128] sm:$0xf] }
 0x1a0   :  { %5682 = vmatmul.msk.bf16.vlgmr.msra.gmra.mxu2 %vm1149_vm5, %v6889_v56  ;;  %3260 = vmatpush.bf16.msra.mxu3 %v5208_v53  ;;  %v6034_v53 = vld [vmem:[#allocation5 + $0x274] sm:$0xf0]  ;;  %v5116_v41 = vor.u32 %v6062_v25, %v5115_v44  ;;  %v4971_v61 = vld [vmem:[#allocation5 + $0x228] sm:$0xf] }
 0x1a1   :  { %3305 = vmatpush.bf16.msrb.mxu2 %v4812_v7  ;;  %3273 = vmatpush.bf16.msrb.mxu0 %v5336_v8  ;;  %v4731_v7 = vld [vmem:[#allocation5 + $0x48] sm:$0xf]  ;;  %v5004_v26 = vor.u32 %v6034_v53, %v5003_v2  ;;  %v5994_v48 = vld [vmem:[#allocation5 + $0x134] sm:$0xf0] }
 0x1a2   :  { %3286 = vmatpush.bf16.msrb.mxu1 %v5464_v0  ;;  %v4732_v8 = vor.u32 %v5966_v17, %v4731_v7  ;;  %v4876_v0 = vor.u32 %v6002_v50, %v4875_v51  ;;  %v6026_v34 = vld [vmem:[#allocation5 + $0x234] sm:$0xf0]  ;;  %v5099_v3 = vld [vmem:[#allocation5 + $0x328] sm:$0xf] }
 0x1a3   :  { %3261 = vmatmul.bf16.vlgmr.msra.gmra.mxu3 %v6881_v42  ;;  %v5323_v49 = vld [vmem:[#allocation5 + $0x4e8] sm:$0xf]  ;;  %v6114_v9 = vld [vmem:[#allocation5 + $0x4f4] sm:$0xf0]  ;;  %v4972_v10 = vor.u32 %v6026_v34, %v4971_v61 }
 0x1a4   :  { %3318 = vmatpush.bf16.msrb.mxu3 %v4940_v24  ;;  %3274 = vmatmul.bf16.vlgmr.msrb.gmra.mxu0 %v6885_v36  ;;  %v5962_v24 = vld [vmem:[#allocation5 + $0x34] sm:$0xf0]  ;;  %v4827_v52 = vld [vmem:[#allocation5 + $0x108] sm:$0xf] }
 0x1a5   :  { %3306 = vmatpush.bf16.msrb.mxu2 %v4796_v37  ;;  %3331 = vmatpush.bf16.msra.mxu0 %v5068_v28  ;;  %v4715_v37 = vld [vmem:[#allocation5 + $0x28] sm:$0xf]  ;;  %v1817_v31 = vpop.f32.mrf.mxu2  ;;  %v5990_v12 = vld [vmem:[#allocation5 + $0x114] sm:$0xf0] }
 0x1a6   :  { %3344 = vmatpush.bf16.msra.mxu1 %v5196_v29  ;;  %v4859_v28 = vld [vmem:[#allocation5 + $0x148] sm:$0xf]  ;;  %v5998_v29 = vld [vmem:[#allocation5 + $0x154] sm:$0xf0]  ;;  %v4828_v2 = vor.u32 %v5990_v12, %v4827_v52 }
 0x1a7   :  { %3287 = vmatmul.bf16.vlgmr.msrb.gmra.mxu1 %v6893_v1  ;;  %v4860_v30 = vor.u32 %v5998_v29, %v4859_v28  ;;  %v4955_v14 = vld [vmem:[#allocation5 + $0x208] sm:$0xf]  ;;  %v6022_v15 = vld [vmem:[#allocation5 + $0x214] sm:$0xf0] }
 0x1a8   :  { %3319 = vmatpush.bf16.msrb.mxu3 %v4924_v33  ;;  %v4716_v33 = vor.u32 %v5962_v24, %v4715_v37  ;;  %v6054_v7 = vld [vmem:[#allocation5 + $0x314] sm:$0xf0]  ;;  %v5307_v17 = vld [vmem:[#allocation5 + $0x4c8] sm:$0xf]  ;;  %v4956_v21 = vor.u32 %v6022_v15, %v4955_v14 }
 0x1a9   :  { %3307 = vmatpush.bf16.msrb.mxu2 %v4780_v38  ;;  %3332 = vmatpush.bf16.msra.mxu0 %v5052_v40  ;;  %v1830_v38 = vpop.f32.mrf.mxu3  ;;  %v5958_v40 = vld [vmem:[#allocation5 + $0x14] sm:$0xf0]  ;;  %v5451_v51 = vld [vmem:[#allocation5 + $0x5e8] sm:$0xf] }
 0x1aa   :  { %3345 = vmatpush.bf16.msra.mxu1 %v5180_v43  ;;  %v4988_v43 = vor.u32 %v6030_v27, %v4987_v45  ;;  %v6146_v50 = vld [vmem:[#allocation5 + $0x5f4] sm:$0xf0]  ;;  %v5579_v53 = vld [vmem:[#allocation5 + $0x6e8] sm:$0xf] }
 0x1ab   :  { %v6178_v20 = vld [vmem:[#allocation5 + $0x6f4] sm:$0xf0]  ;;  %v5291_v24 = vld [vmem:[#allocation5 + $0x4a8] sm:$0xf] }
 0x1ac   :  { %3320 = vmatpush.bf16.msrb.mxu3 %v4908_v62  ;;  %v2580_v62 = vunpack.c.l.b16 %v6919_v23  ;;  %v5435_v28 = vld [vmem:[#allocation5 + $0x5c8] sm:$0xf]  ;;  %v6142_v29 = vld [vmem:[#allocation5 + $0x5d4] sm:$0xf0] }
 0x1ad   :  { %3308 = vmatpush.bf16.msrb.mxu2 %v4764_v5  ;;  %3333 = vmatpush.bf16.msra.mxu0 %v5036_v35  ;;  %v6058_v5 = vld [vmem:[#allocation5 + $0x334] sm:$0xf0]  ;;  %v4700_v35 = vor.u32 %v5958_v40, %v4699_v39  ;;  %v5563_v45 = vld [vmem:[#allocation5 + $0x6c8] sm:$0xf]  ;;  %v5436_v38 = vor.u32 %v6142_v29, %v5435_v28 }
 0x1ae   :  { %3346 = vmatpush.bf16.msra.mxu1 %v5164_v63  ;;  %v4844_v63 = vor.u32 %v5994_v48, %v4843_v46  ;;  %v5100_v13 = vor.u32 %v6058_v5, %v5099_v3  ;;  %v6174_v27 = vld [vmem:[#allocation5 + $0x6d4] sm:$0xf0]  ;;  %v5675_v44 = vld [vmem:[#allocation5 + $0x7a8] sm:$0xf] }
 0x1af   :  { %v6202_v25 = vld [vmem:[#allocation5 + $0x7b4] sm:$0xf0]  ;;  %v5564_v39 = vor.u32 %v6174_v27, %v5563_v45  ;;  %v5547_v46 = vld [vmem:[#allocation5 + $0x6a8] sm:$0xf] }
 0x1b0   :  { %3321 = vmatpush.bf16.msrb.mxu3 %v4892_v19  ;;  %v5083_v19 = vld [vmem:[#allocation5 + $0x308] sm:$0xf]  ;;  %v5676_v40 = vor.u32 %v6202_v25, %v5675_v44  ;;  %v6170_v48 = vld [vmem:[#allocation5 + $0x6b4] sm:$0xf0] }
 0x1b1   :  { %3309 = vmatpush.bf16.msrb.mxu2 %v4748_v6  ;;  %3334 = vmatpush.bf16.msra.mxu0 %v5020_v47  ;;  %v5324_v6 = vor.u32 %v6114_v9, %v5323_v49  ;;  %v2832_v47 = vpack.c.b16 %v2580_v62, %v2580_v62  ;;  %v5084_v60 = vor.u32 %v6054_v7, %v5083_v19  ;;  %v5659_v61 = vld [vmem:[#allocation5 + $0x788] sm:$0xf]  ;;  %v6198_v34 = vld [vmem:[#allocation5 + $0x794] sm:$0xf0] }
 0x1b2   :  { %3347 = vmatpush.bf16.msra.mxu1 %v5148_v32  ;;  %v6110_v32 = vld [vmem:[#allocation5 + $0x4d4] sm:$0xf0]  ;;  %v5259_v62 = vld [vmem:[#allocation5 + $0x468] sm:$0xf]  ;;  %v5548_v9 = vor.u32 %v6170_v48, %v5547_v46 }
 0x1b3   :  { %v3092_v37 = vsel %vm1375_vm6, %v2832_v47, 0  ;;  %v6098_v49 = vld [vmem:[#allocation5 + $0x474] sm:$0xf0]  ;;  %v5643_v12 = vld [vmem:[#allocation5 + $0x768] sm:$0xf] }
 0x1b4   :  { %3322 = vmatpush.bf16.msrb.mxu3 %v4876_v0  ;;  %v5452_v0 = vor.u32 %v6146_v50, %v5451_v51  ;;  %v6134_v52 = vld [vmem:[#allocation5 + $0x594] sm:$0xf0]  ;;  %v5260_v15 = vor.u32 %v6098_v49, %v5259_v62  ;;  %v5243_v19 = vld [vmem:[#allocation5 + $0x448] sm:$0xf] }
 0x1b5   :  { %3310 = vmatpush.bf16.msrb.mxu2 %v4732_v8  ;;  %3335 = vmatpush.bf16.msra.mxu0 %v5004_v26  ;;  %v5308_v8 = vor.u32 %v6110_v32, %v5307_v17  ;;  %v6106_v26 = vld [vmem:[#allocation5 + $0x4b4] sm:$0xf0]  ;;  %v5387_v32 = vld [vmem:[#allocation5 + $0x568] sm:$0xf] }
 0x1b6   :  { %3348 = vmatpush.bf16.msra.mxu1 %v5132_v18  ;;  %v5580_v18 = vor.u32 %v6178_v20, %v5579_v53  ;;  %v5292_v31 = vor.u32 %v6106_v26, %v5291_v24  ;;  %v6194_v14 = vld [vmem:[#allocation5 + $0x774] sm:$0xf0]  ;;  %v5515_v50 = vld [vmem:[#allocation5 + $0x668] sm:$0xf] }
 0x1b7   :  { %v6094_v7 = vld [vmem:[#allocation5 + $0x454] sm:$0xf0]  ;;  %v5644_v47 = vor.u32 %v6194_v14, %v5643_v12  ;;  %v5627_v53 = vld [vmem:[#allocation5 + $0x748] sm:$0xf] }
 0x1b8   :  { %3323 = vmatpush.bf16.msrb.mxu3 %v4860_v30  ;;  %v6102_v30 = vld [vmem:[#allocation5 + $0x494] sm:$0xf0]  ;;  %v5371_v26 = vld [vmem:[#allocation5 + $0x548] sm:$0xf] }
 0x1b9   :  { %3311 = vmatpush.bf16.msrb.mxu2 %v4716_v33  ;;  %3336 = vmatpush.bf16.msra.mxu0 %v4988_v43  ;;  %v5275_v33 = vld [vmem:[#allocation5 + $0x488] sm:$0xf]  ;;  %v6130_v51 = vld [vmem:[#allocation5 + $0x574] sm:$0xf0] }
 0x1ba   :  { %3349 = vmatpush.bf16.msra.mxu1 %v5116_v41  ;;  %v5419_v43 = vld [vmem:[#allocation5 + $0x5a8] sm:$0xf]  ;;  %v6138_v41 = vld [vmem:[#allocation5 + $0x5b4] sm:$0xf0]  ;;  %v5276_v3 = vor.u32 %v6102_v30, %v5275_v33 }
 0x1bb   :  { %v5420_v5 = vor.u32 %v6138_v41, %v5419_v43  ;;  %v6190_v20 = vld [vmem:[#allocation5 + $0x754] sm:$0xf0]  ;;  %v5499_v28 = vld [vmem:[#allocation5 + $0x648] sm:$0xf] }
 0x1bc   :  { %3324 = vmatpush.bf16.msrb.mxu3 %v4844_v63  ;;  %v5403_v63 = vld [vmem:[#allocation5 + $0x588] sm:$0xf]  ;;  %v5628_v24 = vor.u32 %v6190_v20, %v5627_v53  ;;  %v6158_v29 = vld [vmem:[#allocation5 + $0x654] sm:$0xf0] }
 0x1bd   :  { %3312 = vmatpush.bf16.msrb.mxu2 %v4700_v35  ;;  %3337 = vmatpush.bf16.msra.mxu0 %v4972_v10  ;;  %v5660_v35 = vor.u32 %v6198_v34, %v5659_v61  ;;  %v5531_v10 = vld [vmem:[#allocation5 + $0x688] sm:$0xf]  ;;  %v6186_v27 = vld [vmem:[#allocation5 + $0x734] sm:$0xf0]  ;;  %v5500_v30 = vor.u32 %v6158_v29, %v5499_v28  ;;  %v5984_v61 = vld [vmem:[#allocation5 + $0xec] sm:$0xf] }
 0x1be   :  { %3350 = vmatpush.bf16.msra.mxu1 %v5100_v13  ;;  %v6166_v13 = vld [vmem:[#allocation5 + $0x694] sm:$0xf0]  ;;  %v5611_v45 = vld [vmem:[#allocation5 + $0x728] sm:$0xf]  ;;  %v4813_v34 = vld [vmem:[#allocation5 + $0xf8] sm:$0xf0] }
 0x1bf   :  { %v5532_v17 = vor.u32 %v6166_v13, %v5531_v10  ;;  %v5355_v33 = vld [vmem:[#allocation5 + $0x528] sm:$0xf]  ;;  %v6154_v41 = vld [vmem:[#allocation5 + $0x634] sm:$0xf0]  ;;  %v4816_v12 = vor.u32 %v5984_v61, %v4813_v34  ;;  %v6076_v28 = vld [vmem:[#allocation5 + $0x3cc] sm:$0xf] }
 0x1c0   :  { %3313 = vmatmul.bf16.vlgmr.msrb.gmra.mxu2 %v6867_v54  ;;  %3325 = vmatpush.bf16.msrb.mxu3 %v4828_v2  ;;  %v6162_v2 = vld [vmem:[#allocation5 + $0x674] sm:$0xf0]  ;;  %v5483_v43 = vld [vmem:[#allocation5 + $0x628] sm:$0xf]  ;;  %v5181_v29 = vld [vmem:[#allocation5 + $0x3d8] sm:$0xf0] }
 0x1c1   :  { %3357 = vmatpush.bf16.msra.mxu2 %v5324_v6  ;;  %3338 = vmatpush.bf16.msra.mxu0 %v4956_v21  ;;  %v5404_v6 = vor.u32 %v6134_v52, %v5403_v63  ;;  %v5244_v21 = vor.u32 %v6094_v7, %v5243_v19  ;;  %v5595_v46 = vld [vmem:[#allocation5 + $0x708] sm:$0xf]  ;;  %v6182_v48 = vld [vmem:[#allocation5 + $0x714] sm:$0xf0]  ;;  %v5069_v19 = vld [vmem:[#allocation5 + $0x2f8] sm:$0xf0] }
 0x1c2   :  { %3351 = vmatpush.bf16.msra.mxu1 %v5084_v60  ;;  %v5388_v60 = vor.u32 %v6130_v51, %v5387_v32  ;;  %v5596_v63 = vor.u32 %v6182_v48, %v5595_v46  ;;  %v6118_v52 = vld [vmem:[#allocation5 + $0x514] sm:$0xf0]  ;;  %v5467_v10 = vld [vmem:[#allocation5 + $0x608] sm:$0xf]  ;;  %v4797_v7 = vld [vmem:[#allocation5 + $0xd8] sm:$0xf0] }
 0x1c3   :  { %3326 = vmatmul.bf16.vlgmr.msrb.gmra.mxu3 %v6869_v55  ;;  %v6150_v13 = vld [vmem:[#allocation5 + $0x614] sm:$0xf0]  ;;  %v6080_v51 = vld [vmem:[#allocation5 + $0x3ec] sm:$0xf] }
 0x1c4   :  { %3370 = vmatpush.bf16.msra.mxu3 %v5452_v0  ;;  %3339 = vmatmul.bf16.vlgmr.msra.gmra.mxu0 %v6871_v58  ;;  %v6090_v0 = vld [vmem:[#allocation5 + $0x434] sm:$0xf0] }
 0x1c5   :  { %3358 = vmatpush.bf16.msra.mxu2 %v5308_v8  ;;  %3383 = vmatpush.bf16.msrb.mxu0 %v5580_v18  ;;  %v5227_v8 = vld [vmem:[#allocation5 + $0x428] sm:$0xf]  ;;  %v6126_v18 = vld [vmem:[#allocation5 + $0x554] sm:$0xf0] }
 0x1c6   :  { %3397 = vmatpush.bf16.msrb.mxu1 %v3092_v37  ;;  %v5516_v37 = vor.u32 %v6162_v2, %v5515_v50  ;;  %v5228_v44 = vor.u32 %v6090_v0, %v5227_v8  ;;  %v5372_v25 = vor.u32 %v6126_v18, %v5371_v26  ;;  %v5197_v50 = vld [vmem:[#allocation5 + $0x3f8] sm:$0xf0]  ;;  %v5468_v2 = vor.u32 %v6150_v13, %v5467_v10  ;;  %v6044_v8 = vld [vmem:[#allocation5 + $0x2cc] sm:$0xf] }
 0x1c7   :  { %3352 = vmatmul.bf16.vlgmr.msra.gmra.mxu1 %v6873_v4  ;;  %v5053_v0 = vld [vmem:[#allocation5 + $0x2d8] sm:$0xf0]  ;;  %v6008_v26 = vld [vmem:[#allocation5 + $0x1ac] sm:$0xf] }
 0x1c8   :  { %3371 = vmatpush.bf16.msra.mxu3 %v5436_v38  ;;  %v6086_v38 = vld [vmem:[#allocation5 + $0x414] sm:$0xf0]  ;;  %v4909_v18 = vld [vmem:[#allocation5 + $0x1b8] sm:$0xf0] }
 0x1c9   :  { %3359 = vmatpush.bf16.msra.mxu2 %v5292_v31  ;;  %3384 = vmatpush.bf16.msrb.mxu0 %v5564_v39  ;;  %v5211_v31 = vld [vmem:[#allocation5 + $0x408] sm:$0xf]  ;;  %v5612_v39 = vor.u32 %v6186_v27, %v5611_v45  ;;  %v5056_v45 = vor.u32 %v6044_v8, %v5053_v0  ;;  %v4877_v10 = vld [vmem:[#allocation5 + $0x178] sm:$0xf0] }
 0x1ca   :  { %3398 = vmatpush.bf16.msrb.mxu1 %v5676_v40  ;;  %v6122_v40 = vld [vmem:[#allocation5 + $0x534] sm:$0xf0]  ;;  %v5212_v62 = vor.u32 %v6086_v38, %v5211_v31  ;;  %v6040_v31 = vld [vmem:[#allocation5 + $0x2ac] sm:$0xf]  ;;  %v5037_v38 = vld [vmem:[#allocation5 + $0x2b8] sm:$0xf0] }
 0x1cb   :  { %v5356_v49 = vor.u32 %v6122_v40, %v5355_v33  ;;  %v5184_v33 = vor.u32 %v6076_v28, %v5181_v29  ;;  %v4893_v40 = vld [vmem:[#allocation5 + $0x198] sm:$0xf0]  ;;  %v5040_v46 = vor.u32 %v6040_v31, %v5037_v38  ;;  %v6028_v28 = vld [vmem:[#allocation5 + $0x24c] sm:$0xf] }
 0x1cc   :  { %3372 = vmatpush.bf16.msra.mxu3 %v5420_v5  ;;  %v4941_v5 = vld [vmem:[#allocation5 + $0x1f8] sm:$0xf0]  ;;  %v6060_v38 = vld [vmem:[#allocation5 + $0x34c] sm:$0xf] }
 0x1cd   :  { %3360 = vmatpush.bf16.msra.mxu2 %v5276_v3  ;;  %3385 = vmatpush.bf16.msrb.mxu0 %v5548_v9  ;;  %v6016_v3 = vld [vmem:[#allocation5 + $0x1ec] sm:$0xf]  ;;  %v5339_v9 = vld [vmem:[#allocation5 + $0x508] sm:$0xf]  ;;  %v4989_v29 = vld [vmem:[#allocation5 + $0x258] sm:$0xf0] }
 0x1ce   :  { %3399 = vmatpush.bf16.msrb.mxu1 %v5660_v35  ;;  %v5484_v35 = vor.u32 %v6154_v41, %v5483_v43  ;;  %v4944_v14 = vor.u32 %v6016_v3, %v4941_v5  ;;  %v5340_v32 = vor.u32 %v6118_v52, %v5339_v9  ;;  %v6072_v43 = vld [vmem:[#allocation5 + $0x3ac] sm:$0xf]  ;;  %v5165_v41 = vld [vmem:[#allocation5 + $0x3b8] sm:$0xf0] }
 0x1cf   :  { %v5021_v9 = vld [vmem:[#allocation5 + $0x298] sm:$0xf0]  ;;  %v6000_v52 = vld [vmem:[#allocation5 + $0x16c] sm:$0xf] }
 0x1d0   :  { %3373 = vmatpush.bf16.msra.mxu3 %v5404_v6  ;;  %v6048_v6 = vld [vmem:[#allocation5 + $0x2ec] sm:$0xf]  ;;  %v4845_v31 = vld [vmem:[#allocation5 + $0x138] sm:$0xf0] }
 0x1d1   :  { %3361 = vmatpush.bf16.msra.mxu2 %v5260_v15  ;;  %3386 = vmatpush.bf16.msrb.mxu0 %v5532_v17  ;;  %v5980_v15 = vld [vmem:[#allocation5 + $0xcc] sm:$0xf]  ;;  %v5072_v53 = vor.u32 %v6048_v6, %v5069_v19  ;;  %v4880_v19 = vor.u32 %v6000_v52, %v4877_v10 }
 0x1d2   :  { %3400 = vmatpush.bf16.msrb.mxu1 %v5644_v47  ;;  %v6012_v17 = vld [vmem:[#allocation5 + $0x1cc] sm:$0xf]  ;;  %v4925_v47 = vld [vmem:[#allocation5 + $0x1d8] sm:$0xf0]  ;;  %v4800_v20 = vor.u32 %v5980_v15, %v4797_v7 }
 0x1d3   :  { %v5964_v7 = vld [vmem:[#allocation5 + $0x4c] sm:$0xf] }
 0x1d4   :  { %3374 = vmatpush.bf16.msra.mxu3 %v5388_v60  ;;  %v5976_v60 = vld [vmem:[#allocation5 + $0xac] sm:$0xf] }
 0x1d5   :  { %3362 = vmatpush.bf16.msra.mxu2 %v5244_v21  ;;  %3387 = vmatpush.bf16.msrb.mxu0 %v5516_v37  ;;  %v4928_v21 = vor.u32 %v6012_v17, %v4925_v47  ;;  %v5200_v37 = vor.u32 %v6080_v51, %v5197_v50  ;;  %v6032_v17 = vld [vmem:[#allocation5 + $0x26c] sm:$0xf]  ;;  %v4861_v50 = vld [vmem:[#allocation5 + $0x158] sm:$0xf0] }
 0x1d6   :  { %3401 = vmatpush.bf16.msrb.mxu1 %v5628_v24  ;;  %v4781_v24 = vld [vmem:[#allocation5 + $0xb8] sm:$0xf0]  ;;  %v5996_v51 = vld [vmem:[#allocation5 + $0x14c] sm:$0xf] }
 0x1d7   :  { %v4784_v27 = vor.u32 %v5976_v60, %v4781_v24 }
 0x1d8   :  { %3375 = vmatpush.bf16.msra.mxu3 %v5372_v25  ;;  %v5972_v25 = vld [vmem:[#allocation5 + $0x8c] sm:$0xf] }
 0x1d9   :  { %3363 = vmatpush.bf16.msra.mxu2 %v5228_v44  ;;  %3388 = vmatpush.bf16.msrb.mxu0 %v5500_v30  ;;  %v4912_v44 = vor.u32 %v6008_v26, %v4909_v18  ;;  %v4765_v30 = vld [vmem:[#allocation5 + $0x98] sm:$0xf0]  ;;  %v4864_v26 = vor.u32 %v5996_v51, %v4861_v50  ;;  %v5960_v18 = vld [vmem:[#allocation5 + $0x2c] sm:$0xf] }
 0x1da   :  { %3402 = vmatpush.bf16.msrb.mxu1 %v5612_v39  ;;  %v6004_v39 = vld [vmem:[#allocation5 + $0x18c] sm:$0xf]  ;;  %v4768_v34 = vor.u32 %v5972_v25, %v4765_v30  ;;  %v4992_v30 = vor.u32 %v6028_v28, %v4989_v29  ;;  %v5085_v50 = vld [vmem:[#allocation5 + $0x318] sm:$0xf0] }
 0x1db   :  { %v4896_v3 = vor.u32 %v6004_v39, %v4893_v40  ;;  %v5992_v25 = vld [vmem:[#allocation5 + $0x12c] sm:$0xf] }
 0x1dc   :  { %3376 = vmatpush.bf16.msra.mxu3 %v5356_v49  ;;  %v6036_v49 = vld [vmem:[#allocation5 + $0x28c] sm:$0xf] }
 0x1dd   :  { %3364 = vmatpush.bf16.msra.mxu2 %v5212_v62  ;;  %3389 = vmatpush.bf16.msrb.mxu0 %v5484_v35  ;;  %v5968_v62 = vld [vmem:[#allocation5 + $0x6c] sm:$0xf]  ;;  %v5168_v35 = vor.u32 %v6072_v43, %v5165_v41  ;;  %v5024_v15 = vor.u32 %v6036_v49, %v5021_v9  ;;  %v4848_v43 = vor.u32 %v5992_v25, %v4845_v31  ;;  %v4701_v41 = vld [vmem:[#allocation5 + $0x18] sm:$0xf0] }
 0x1de   :  { %3403 = vmatpush.bf16.msrb.mxu1 %v5596_v63  ;;  %v4749_v63 = vld [vmem:[#allocation5 + $0x78] sm:$0xf0]  ;;  %v5956_v39 = vld [vmem:[#allocation5 + $0xc] sm:$0xf] }
 0x1df   :  { %v3106_v48 = vpop.f32.mrf.mxu0  ;;  %v3119_v61 = vpop.f32.mrf.mxu1  ;;  %v4752_v6 = vor.u32 %v5968_v62, %v4749_v63  ;;  %v5101_v9 = vld [vmem:[#allocation5 + $0x338] sm:$0xf0]  ;;  %v6052_v51 = vld [vmem:[#allocation5 + $0x30c] sm:$0xf] }
 0x1e0   :  { %3365 = vmatmul.bf16.vlgmr.msra.gmra.mxu2 %v6881_v42  ;;  %3377 = vmatpush.bf16.msra.mxu3 %v5340_v32  ;;  %v3107_v5 = vadd.f32 %v3106_v48, %v6906_v11  ;;  %v5005_v11 = vld [vmem:[#allocation5 + $0x278] sm:$0xf0]  ;;  %v6136_v31 = vld [vmem:[#allocation5 + $0x5ac] sm:$0xf] }
 0x1e1   :  { %3422 = vmatpush.bf16.msrb.mxu2 %v4944_v14  ;;  %5683 = vmatmul.msk.bf16.vlgmr.msrb.gmra.mxu1 %vm1149_vm5, %v6889_v56  ;;  %v5149_v14 = vld [vmem:[#allocation5 + $0x398] sm:$0xf0]  ;;  %v5008_v8 = vor.u32 %v6032_v17, %v5005_v11  ;;  %v2581_v17 = vunpack.c.h.b16 %v6919_v23  ;;  %v5088_v23 = vor.u32 %v6052_v51, %v5085_v50  ;;  %v6192_v51 = vld [vmem:[#allocation5 + $0x76c] sm:$0xf]  ;;  %v6944_v50 = vld [vmem:[%s7184_s8] sm:$0xf] }
 0x1e2   :  { %3409 = vmatpush.bf16.msra.mxu1 %v4816_v12  ;;  %3390 = vmatpush.bf16.msrb.mxu0 %v5468_v2  ;;  %v3120_v13 = vadd.f32 %v3119_v61, %v3107_v5  ;;  %v6068_v12 = vld [vmem:[#allocation5 + $0x38c] sm:$0xf]  ;;  %v4733_v32 = vld [vmem:[#allocation5 + $0x58] sm:$0xf0] }
 0x1e3   :  { %3378 = vmatmul.bf16.vlgmr.msra.gmra.mxu3 %v6885_v36  ;;  %v5152_v47 = vor.u32 %v6068_v12, %v5149_v14  ;;  %v4736_v24 = vor.u32 %v5964_v7, %v4733_v32  ;;  %v4973_v48 = vld [vmem:[#allocation5 + $0x238] sm:$0xf0]  ;;  %v6056_v5 = vld [vmem:[#allocation5 + $0x32c] sm:$0xf] }
 0x1e4   :  { %3435 = vmatpush.bf16.msrb.mxu3 %v5072_v53  ;;  %v5325_v63 = vld [vmem:[#allocation5 + $0x4f8] sm:$0xf0]  ;;  %v6144_v12 = vld [vmem:[#allocation5 + $0x5ec] sm:$0xf]  ;;  %v5104_v11 = vor.u32 %v6056_v5, %v5101_v9 }
 0x1e5   :  { %3423 = vmatpush.bf16.msrb.mxu2 %v4928_v21  ;;  %3391 = vmatmul.bf16.vlgmr.msrb.gmra.mxu0 %v6893_v1  ;;  %v5133_v21 = vld [vmem:[#allocation5 + $0x378] sm:$0xf0]  ;;  %v6020_v7 = vld [vmem:[#allocation5 + $0x20c] sm:$0xf] }
 0x1e6   :  { %3410 = vmatpush.bf16.msra.mxu1 %v4800_v20  ;;  %3448 = vmatpush.bf16.msra.mxu0 %v5200_v37  ;;  %v3132_v2 = vpop.f32.mrf.mxu2  ;;  %v3145_v53 = vpop.f32.mrf.mxu3  ;;  %v6064_v20 = vld [vmem:[#allocation5 + $0x36c] sm:$0xf]  ;;  %v5453_v14 = vld [vmem:[#allocation5 + $0x5f8] sm:$0xf0] }
 0x1e7   :  { %v3133_v60 = vadd.f32 %v3132_v2, %v3120_v13  ;;  %v3108_v0 = vpop.f32.mrf.mxu0  ;;  %v3121_v37 = vpop.f32.mrf.mxu1  ;;  %v4957_v32 = vld [vmem:[#allocation5 + $0x218] sm:$0xf0] }
 0x1e8   :  { %3436 = vmatpush.bf16.msrb.mxu3 %v5056_v45  ;;  %v6176_v0 = vld [vmem:[#allocation5 + $0x6ec] sm:$0xf]  ;;  %v5581_v37 = vld [vmem:[#allocation5 + $0x6f8] sm:$0xf0] }
 0x1e9   :  { %3424 = vmatpush.bf16.msrb.mxu2 %v4912_v44  ;;  %v3146_v45 = vadd.f32 %v3145_v53, %v3133_v60  ;;  %v4717_v44 = vld [vmem:[#allocation5 + $0x38] sm:$0xf0]  ;;  %v5456_v53 = vor.u32 %v6144_v12, %v5453_v14  ;;  %v6140_v60 = vld [vmem:[#allocation5 + $0x5cc] sm:$0xf]  ;;  %v5584_v29 = vor.u32 %v6176_v0, %v5581_v37 }
 0x1ea   :  { %3411 = vmatpush.bf16.msra.mxu1 %v4784_v27  ;;  %3449 = vmatpush.bf16.msra.mxu0 %v5184_v33  ;;  %v5136_v27 = vor.u32 %v6064_v20, %v5133_v21  ;;  %v5117_v33 = vld [vmem:[#allocation5 + $0x358] sm:$0xf0]  ;;  %v4720_v40 = vor.u32 %v5960_v18, %v4717_v44  ;;  %v6108_v20 = vld [vmem:[#allocation5 + $0x4cc] sm:$0xf] }
 0x1eb   :  { %v5120_v61 = vor.u32 %v6060_v38, %v5117_v33  ;;  %v5309_v21 = vld [vmem:[#allocation5 + $0x4d8] sm:$0xf0]  ;;  %v6104_v44 = vld [vmem:[#allocation5 + $0x4ac] sm:$0xf] }
 0x1ec   :  { %3437 = vmatpush.bf16.msrb.mxu3 %v5040_v46  ;;  %v6024_v46 = vld [vmem:[#allocation5 + $0x22c] sm:$0xf]  ;;  %v5312_v18 = vor.u32 %v6108_v20, %v5309_v21  ;;  %v5293_v25 = vld [vmem:[#allocation5 + $0x4b8] sm:$0xf0] }
 0x1ed   :  { %3425 = vmatpush.bf16.msrb.mxu2 %v4896_v3  ;;  %v4829_v3 = vld [vmem:[#allocation5 + $0x118] sm:$0xf0]  ;;  %v4976_v52 = vor.u32 %v6024_v46, %v4973_v48  ;;  %v6200_v46 = vld [vmem:[#allocation5 + $0x7ac] sm:$0xf] }
 0x1ee   :  { %3412 = vmatpush.bf16.msra.mxu1 %v4768_v34  ;;  %3450 = vmatpush.bf16.msra.mxu0 %v5168_v35  ;;  %v5988_v34 = vld [vmem:[#allocation5 + $0x10c] sm:$0xf]  ;;  %v3134_v62 = vpop.f32.mrf.mxu2  ;;  %v3147_v49 = vpop.f32.mrf.mxu3  ;;  %v5677_v48 = vld [vmem:[#allocation5 + $0x7b8] sm:$0xf0] }
 0x1ef   :  { %v6112_v35 = vld [vmem:[#allocation5 + $0x4ec] sm:$0xf]  ;;  %v3158_v10 = vpop.f32.mrf.mxu0  ;;  %v3171_v13 = vpop.f32.mrf.mxu1  ;;  %v5277_v5 = vld [vmem:[#allocation5 + $0x498] sm:$0xf0]  ;;  %v5680_v49 = vor.u32 %v6200_v46, %v5677_v48 }
 0x1f0   :  { %3438 = vmatpush.bf16.msrb.mxu3 %v5024_v15  ;;  %v4704_v15 = vor.u32 %v5956_v39, %v4701_v41  ;;  %v5421_v39 = vld [vmem:[#allocation5 + $0x5b8] sm:$0xf0]  ;;  %v6132_v62 = vld [vmem:[#allocation5 + $0x58c] sm:$0xf] }
 0x1f1   :  { %3426 = vmatpush.bf16.msrb.mxu2 %v4880_v19  ;;  %v3159_v19 = vadd.f32 %v3158_v10, %v3146_v45  ;;  %v5405_v9 = vld [vmem:[#allocation5 + $0x598] sm:$0xf0]  ;;  %v6124_v37 = vld [vmem:[#allocation5 + $0x54c] sm:$0xf] }
 0x1f2   :  { %3413 = vmatpush.bf16.msra.mxu1 %v4752_v6  ;;  %3451 = vmatpush.bf16.msra.mxu0 %v5152_v47  ;;  %v4832_v6 = vor.u32 %v5988_v34, %v4829_v3  ;;  %v5328_v47 = vor.u32 %v6112_v35, %v5325_v63  ;;  %v5296_v34 = vor.u32 %v6104_v44, %v5293_v25  ;;  %v6100_v3 = vld [vmem:[#allocation5 + $0x48c] sm:$0xf]  ;;  %v5549_v63 = vld [vmem:[#allocation5 + $0x6b8] sm:$0xf0] }
 0x1f3   :  { %v3172_v2 = vadd.f32 %v3171_v13, %v3159_v19  ;;  %v6168_v35 = vld [vmem:[#allocation5 + $0x6ac] sm:$0xf]  ;;  %v5661_v10 = vld [vmem:[#allocation5 + $0x798] sm:$0xf0]  ;;  %v5280_v13 = vor.u32 %v6100_v3, %v5277_v5  ;;  %v5408_v12 = vor.u32 %v6132_v62, %v5405_v9 }
 0x1f4   :  { %3439 = vmatpush.bf16.msrb.mxu3 %v5008_v8  ;;  %v5437_v8 = vld [vmem:[#allocation5 + $0x5d8] sm:$0xf0]  ;;  %v5552_v14 = vor.u32 %v6168_v35, %v5549_v63  ;;  %v6096_v19 = vld [vmem:[#allocation5 + $0x46c] sm:$0xf] }
 0x1f5   :  { %3427 = vmatpush.bf16.msrb.mxu2 %v4864_v26  ;;  %v2833_v26 = vpack.c.b16 %v2581_v17, %v2581_v17  ;;  %v5440_v28 = vor.u32 %v6140_v60, %v5437_v8  ;;  %v6128_v17 = vld [vmem:[#allocation5 + $0x56c] sm:$0xf]  ;;  %v5245_v0 = vld [vmem:[#allocation5 + $0x458] sm:$0xf0] }
 0x1f6   :  { %3414 = vmatpush.bf16.msra.mxu1 %v4736_v24  ;;  %3452 = vmatpush.bf16.msra.mxu0 %v5136_v27  ;;  %v4960_v24 = vor.u32 %v6020_v7, %v4957_v32  ;;  %v3184_v45 = vpop.f32.mrf.mxu2  ;;  %v3197_v27 = vpop.f32.mrf.mxu3  ;;  %v5261_v7 = vld [vmem:[#allocation5 + $0x478] sm:$0xf0]  ;;  %v6092_v8 = vld [vmem:[#allocation5 + $0x44c] sm:$0xf] }
 0x1f7   :  { %v3185_v38 = vadd.f32 %v3184_v45, %v3172_v2  ;;  %v3160_v33 = vpop.f32.mrf.mxu0  ;;  %v3095_v41 = vsel %vm1375_vm6, %v2833_v26, 0  ;;  %v5533_v32 = vld [vmem:[#allocation5 + $0x698] sm:$0xf0]  ;;  %v3515_v45 = vperm.slane %v6944_v50, 0  ;;  %v6088_v44 = vld [vmem:[#allocation5 + $0x42c] sm:$0xf] }
 0x1f8   :  { %3440 = vmatpush.bf16.msrb.mxu3 %v4992_v30  ;;  %v3173_v30 = vpop.f32.mrf.mxu1  ;;  %v5373_v26 = vld [vmem:[#allocation5 + $0x558] sm:$0xf0]  ;;  %v6120_v33 = vld [vmem:[#allocation5 + $0x52c] sm:$0xf] }
 0x1f9   :  { %3428 = vmatpush.bf16.msrb.mxu2 %v4848_v43  ;;  %v5565_v43 = vld [vmem:[#allocation5 + $0x6d8] sm:$0xf0]  ;;  %v5376_v25 = vor.u32 %v6124_v37, %v5373_v26  ;;  %v6084_v63 = vld [vmem:[#allocation5 + $0x40c] sm:$0xf] }
 0x1fa   :  { %3415 = vmatpush.bf16.msra.mxu1 %v4720_v40  ;;  %3453 = vmatpush.bf16.msra.mxu0 %v5120_v61  ;;  %v6172_v40 = vld [vmem:[#allocation5 + $0x6cc] sm:$0xf]  ;;  %v6937_v61 = vadd.f32 %v3197_v27, %v3185_v38  ;;  %v5248_v27 = vor.u32 %v6092_v8, %v5245_v0  ;;  %v5229_v38 = vld [vmem:[#allocation5 + $0x438] sm:$0xf0] }
 0x1fb   :  { %v5357_v30 = vld [vmem:[#allocation5 + $0x538] sm:$0xf0]  ;;  %v5232_v3 = vor.u32 %v6088_v44, %v5229_v38 }
 0x1fc   :  { %3441 = vmatpush.bf16.msrb.mxu3 %v4976_v52  ;;  %v6196_v52 = vld [vmem:[#allocation5 + $0x78c] sm:$0xf]  ;;  %v5360_v5 = vor.u32 %v6120_v33, %v5357_v30  ;;  %v3523_v62 = vadd.f32 %v3515_v45, %v6937_v61 }
 0x1fd   :  { %3429 = vmatpush.bf16.msrb.mxu2 %v4832_v6 }
 0x1fe   :  { %3416 = vmatpush.bf16.msra.mxu1 %v4704_v15  ;;  %3454 = vmatpush.bf16.msra.mxu0 %v5104_v11  ;;  %v3186_v15 = vpop.f32.mrf.mxu2  ;;  %v3199_v6 = vpop.f32.mrf.mxu3  ;;  %v5389_v11 = vld [vmem:[#allocation5 + $0x578] sm:$0xf0] }
 0x1ff   :  { %v5392_v21 = vor.u32 %v6128_v17, %v5389_v11  ;;  %v6180_v6 = vld [vmem:[#allocation5 + $0x70c] sm:$0xf]  ;;  %v6949_v17 = vmax.f32 %v3523_v62, 0.0 }
 0x200   :  { %3430 = vmatmul.bf16.vlgmr.msrb.gmra.mxu2 %v6869_v55  ;;  %3442 = vmatpush.bf16.msrb.mxu3 %v4960_v24  ;;  %v5568_v55 = vor.u32 %v6172_v40, %v5565_v43  ;;  %v3223_v2 = vpop.f32.mrf.mxu0  ;;  %v6156_v43 = vld [vmem:[#allocation5 + $0x64c] sm:$0xf] }
 0x201   :  { %3474 = vmatpush.bf16.msra.mxu2 %v5456_v53  ;;  %3417 = vmatmul.bf16.vlgmr.msra.gmra.mxu1 %v6867_v54  ;;  %v5424_v54 = vor.u32 %v6136_v31, %v5421_v39  ;;  %v5264_v53 = vor.u32 %v6096_v19, %v5261_v7  ;;  %v5597_v19 = vld [vmem:[#allocation5 + $0x718] sm:$0xf0] }
 0x202   :  { %3461 = vmatpush.bf16.msrb.mxu1 %v5328_v47  ;;  %3455 = vmatpush.bf16.msra.mxu0 %v5088_v23  ;;  %v6164_v47 = vld [vmem:[#allocation5 + $0x68c] sm:$0xf] }
 0x203   :  { %3443 = vmatmul.bf16.vlgmr.msrb.gmra.mxu3 %v6871_v58  ;;  %v5664_v58 = vor.u32 %v6196_v52, %v5661_v10  ;;  %v3236_v20 = vpop.f32.mrf.mxu1  ;;  %v5536_v60 = vor.u32 %v6164_v47, %v5533_v32  ;;  %v6160_v23 = vld [vmem:[#allocation5 + $0x66c] sm:$0xf]  ;;  %v5213_v52 = vld [vmem:[#allocation5 + $0x418] sm:$0xf0]  ;;  %v5600_v47 = vor.u32 %v6180_v6, %v5597_v19 }
 0x204   :  { %3487 = vmatpush.bf16.msra.mxu3 %v5584_v29  ;;  %v5629_v29 = vld [vmem:[#allocation5 + $0x758] sm:$0xf0]  ;;  %v6116_v10 = vld [vmem:[#allocation5 + $0x50c] sm:$0xf]  ;;  %v5216_v7 = vor.u32 %v6084_v63, %v5213_v52 }
 0x205   :  { %3475 = vmatpush.bf16.msra.mxu2 %v5440_v28  ;;  %3456 = vmatmul.bf16.vlgmr.msra.gmra.mxu0 %v6873_v4  ;;  %v5645_v4 = vld [vmem:[#allocation5 + $0x778] sm:$0xf0]  ;;  %v6188_v28 = vld [vmem:[#allocation5 + $0x74c] sm:$0xf] }
 0x206   :  { %3462 = vmatpush.bf16.msrb.mxu1 %v5312_v18  ;;  %3501 = vmatpush.bf16.msrb.mxu0 %v3095_v41  ;;  %v5648_v24 = vor.u32 %v6192_v51, %v5645_v4  ;;  %v5517_v18 = vld [vmem:[#allocation5 + $0x678] sm:$0xf0]  ;;  %v5632_v39 = vor.u32 %v6188_v28, %v5629_v29  ;;  %v3210_v40 = vpop.f32.mrf.mxu3  ;;  %v6148_v51 = vld [vmem:[#allocation5 + $0x60c] sm:$0xf] }
 0x207   :  { %v5520_v31 = vor.u32 %v6160_v23, %v5517_v18  ;;  %v5501_v41 = vld [vmem:[#allocation5 + $0x658] sm:$0xf0]  ;;  %v3211_v46 = vadd.f32 %v3210_v40, %v6913_v22 }
 0x208   :  { %3488 = vmatpush.bf16.msra.mxu3 %v5568_v55  ;;  %v3225_v55 = vpop.f32.mrf.mxu0  ;;  %v5504_v35 = vor.u32 %v6156_v43, %v5501_v41  ;;  %v5341_v22 = vld [vmem:[#allocation5 + $0x518] sm:$0xf0] }
 0x209   :  { %3476 = vmatpush.bf16.msra.mxu2 %v5424_v54  ;;  %v3249_v48 = vpop.f32.mrf.mxu2  ;;  %v5613_v54 = vld [vmem:[#allocation5 + $0x738] sm:$0xf0] }
 0x20a   :  { %3463 = vmatpush.bf16.msrb.mxu1 %v5296_v34  ;;  %3502 = vmatpush.bf16.msrb.mxu0 %v5680_v49  ;;  %v6184_v34 = vld [vmem:[#allocation5 + $0x72c] sm:$0xf]  ;;  %v3224_v49 = vadd.f32 %v3223_v2, %v3211_v46  ;;  %v5469_v4 = vld [vmem:[#allocation5 + $0x618] sm:$0xf0] }
 0x20b   :  { %v3238_v9 = vpop.f32.mrf.mxu1 }
 0x20c   :  { %3489 = vmatpush.bf16.msra.mxu3 %v5552_v14  ;;  %v5485_v14 = vld [vmem:[#allocation5 + $0x638] sm:$0xf0]  ;;  %v3237_v15 = vadd.f32 %v3236_v20, %v3224_v49  ;;  %v3562_v20 = vmul.f32 %v6949_v17, %v6949_v17 }
 0x20d   :  { %3477 = vmatpush.bf16.msra.mxu2 %v5408_v12  ;;  %v6152_v12 = vld [vmem:[#allocation5 + $0x62c] sm:$0xf] }
 0x20e   :  { %3464 = vmatpush.bf16.msrb.mxu1 %v5280_v13  ;;  %3503 = vmatpush.bf16.msrb.mxu0 %v5664_v58  ;;  %v5616_v13 = vor.u32 %v6184_v34, %v5613_v54  ;;  %v3250_v61 = vadd.f32 %v3249_v48, %v3237_v15  ;;  %v5344_v58 = vor.u32 %v6116_v10, %v5341_v22  ;;  %v3212_v32 = vpop.f32.mrf.mxu3  ;;  %v3566_v8 = vrot.slane %v3562_v20, 4 }
 0x20f   :  { %v5488_v11 = vor.u32 %v6152_v12, %v5485_v14 }
 0x210   :  { %3490 = vmatpush.bf16.msra.mxu3 %v5536_v60  ;;  %v3567_v37 = vadd.f32 %v3566_v8, %v3562_v20 }
 0x211   :  { %3478 = vmatpush.bf16.msra.mxu2 %v5392_v21  ;;  %v3251_v2 = vpop.f32.mrf.mxu2  ;;  %v5472_v21 = vor.u32 %v6148_v51, %v5469_v4 }
 0x212   :  { %3465 = vmatpush.bf16.msrb.mxu1 %v5264_v53  ;;  %3504 = vmatpush.bf16.msrb.mxu0 %v5648_v24  ;;  %v3533_v53 = vrot.slane %v6949_v17, 4  ;;  %v3568_v26 = vrot.slane %v3567_v37, 2 }
 0x214   :  { %3491 = vmatpush.bf16.msra.mxu3 %v5520_v31  ;;  %v3534_v60 = vadd.f32 %v3533_v53, %v6949_v17 }
 0x215   :  { %3479 = vmatpush.bf16.msra.mxu2 %v5376_v25 }
 0x216   :  { %3466 = vmatpush.bf16.msrb.mxu1 %v5248_v27  ;;  %3505 = vmatpush.bf16.msrb.mxu0 %v5632_v39  ;;  %v3535_v0 = vrot.slane %v3534_v60, 2  ;;  %v3516_v39 = vperm.slane %v6944_v50, 1 }
 0x218   :  { %3492 = vmatpush.bf16.msra.mxu3 %v5504_v35  ;;  %v3536_v24 = vadd.f32 %v3535_v0, %v3534_v60 }
 0x219   :  { %3480 = vmatpush.bf16.msra.mxu2 %v5360_v5 }
 0x21a   :  { %3467 = vmatpush.bf16.msrb.mxu1 %v5232_v3  ;;  %3506 = vmatpush.bf16.msrb.mxu0 %v5616_v13  ;;  %v3537_v29 = vrot.slane %v3536_v24, 1 }
 0x21c   :  { %3493 = vmatpush.bf16.msra.mxu3 %v5488_v11 }
 0x21d   :  { %3481 = vmatpush.bf16.msra.mxu2 %v5344_v58 }
 0x21e   :  { %3468 = vmatpush.bf16.msrb.mxu1 %v5216_v7  ;;  %3507 = vmatpush.bf16.msrb.mxu0 %v5600_v47 }
 0x220   :  { %3482 = vmatmul.bf16.vlgmr.msra.gmra.mxu2 %v6885_v36  ;;  %3494 = vmatpush.bf16.msra.mxu3 %v5472_v21  ;;  %v3538_v36 = vadd.f32 %v3537_v29, %v3536_v24 }
 0x221   :  { %3469 = vmatmul.bf16.vlgmr.msrb.gmra.mxu1 %v6881_v42  ;;  %5684 = vmatmul.msk.bf16.vlgmr.msrb.gmra.mxu0 %vm1149_vm5, %v6889_v56  ;;  %v3275_v23 = vpop.f32.mrf.mxu0  ;;  %v3569_v42 = vadd.f32 %v3568_v26, %v3567_v37 }
 0x222   :  { %v6961_v33 = vmul.f32 %v3538_v36, %v6526_v57 }
 0x223   :  { %3495 = vmatmul.bf16.vlgmr.msra.gmra.mxu3 %v6893_v1  ;;  %v3301_v28 = vpop.f32.mrf.mxu2  ;;  %v3570_v27 = vrot.slane %v3569_v42, 1 }
 0x224   :  { %v3288_v18 = vpop.f32.mrf.mxu1  ;;  %v3595_v46 = vmul.f32 %v6961_v33, %v6961_v33 }
 0x225   :  { %v3571_v1 = vadd.f32 %v3570_v27, %v3569_v42 }
 0x226   :  { %v3262_v45 = vpop.f32.mrf.mxu3 }
 0x227   :  { %v3263_v44 = vadd.f32 %v3262_v45, %v3250_v61  ;;  %v3591_v41 = vmul.f32 %v3571_v1, %v6526_v57 }
 0x229   :  { %v3277_v25 = vpop.f32.mrf.mxu0  ;;  %v3276_v31 = vadd.f32 %v3275_v23, %v3263_v44  ;;  %v3599_v54 = vsub.f32 %v3591_v41, %v3595_v46 }
 0x22b   :  { %v3303_v56 = vpop.f32.mrf.mxu2  ;;  %v3289_v30 = vadd.f32 %v3288_v18, %v3276_v31  ;;  %v3603_v49 = vmax.f32 %v3599_v54, 0.0 }
 0x22c   :  { %v3290_v38 = vpop.f32.mrf.mxu1 }
 0x22d   :  { %v3302_v40 = vadd.f32 %v3301_v28, %v3289_v30  ;;  %v3607_v10 = vadd.f32 1e-05, %v3603_v49  ;;  %v3517_v49 = vperm.slane %v6944_v50, 2 }
 0x22e   :  { %v3264_v43 = vpop.f32.mrf.mxu3 }
 0x22f   :  { %v3524_v48 = vadd.f32 %v3516_v39, %v3302_v40  ;;  %6276 = vrsqrt.f32 %v3607_v10  ;;  %vm3617_vm2 = vweird.f32 %v3607_v10 }
 0x231   :  { %v6967_v34 = vmax.f32 %v3524_v48, 0.0 }
 0x233   :  { %v3539_v55 = vrot.slane %v6967_v34, 4  ;;  %v3563_v3 = vmul.f32 %v6967_v34, %v6967_v34 }
 0x235   :  { %v3540_v5 = vadd.f32 %v3539_v55, %v6967_v34  ;;  %v3572_v62 = vrot.slane %v3563_v3, 4  ;;  %v6277_v4 = vpop.eup %6276 }
 0x236   :  { %v3612_v37 = vmul.f32 %v6277_v4, %v3607_v10  ;;  %vm3618_vm6 = vweird.f32 %v6277_v4 }
 0x237   :  { %v3541_v9 = vrot.slane %v3540_v5, 2  ;;  %v3573_v35 = vadd.f32 %v3572_v62, %v3563_v3  ;;  %vm3619_vm3 = vmor %vm3617_vm2, %vm3618_vm6 }
 0x238   :  { %v3613_v26 = vmul.f32 %v6277_v4, %v3612_v37 }
 0x239   :  { %v3542_v63 = vadd.f32 %v3541_v9, %v3540_v5  ;;  %v3574_v52 = vrot.slane %v3573_v35, 2 }
 0x23a   :  { %v3614_v28 = vmul.f32 0.5, %v3613_v26 }
 0x23b   :  { %v3543_v13 = vrot.slane %v3542_v63, 1  ;;  %v3575_v22 = vadd.f32 %v3574_v52, %v3573_v35 }
 0x23c   :  { %v3615_v45 = vsub.f32 1.5, %v3614_v28 }
 0x23d   :  { %v3544_v12 = vadd.f32 %v3543_v13, %v3542_v63  ;;  %v3576_v14 = vrot.slane %v3575_v22, 1 }
 0x23e   :  { %v3616_v44 = vmul.f32 %v6277_v4, %v3615_v45 }
 0x23f   :  { %v6974_v6 = vmul.f32 %v3544_v12, %v6526_v57  ;;  %v3577_v19 = vadd.f32 %v3576_v14, %v3575_v22 }
 0x240   :  { %v3620_v1 = vsel %vm3619_vm3, %v6277_v4, %v3616_v44 }
 0x241   :  { %v3340_v15 = vpop.f32.mrf.mxu0  ;;  %v3592_v58 = vmul.f32 %v3577_v19, %v6526_v57  ;;  %v3596_v11 = vmul.f32 %v6974_v6, %v6974_v6 }
 0x243   :  { %v3314_v61 = vpop.f32.mrf.mxu2  ;;  %v3600_v47 = vsub.f32 %v3592_v58, %v3596_v11 }
 0x244   :  { %v3353_v7 = vpop.f32.mrf.mxu1  ;;  %v3315_v32 = vadd.f32 %v3314_v61, %v6915_v59 }
 0x245   :  { %v3604_v2 = vmax.f32 %v3600_v47, 0.0 }
 0x246   :  { %v3327_v51 = vpop.f32.mrf.mxu3 }
 0x247   :  { %v3328_v53 = vadd.f32 %v3327_v51, %v3315_v32  ;;  %v3608_v21 = vadd.f32 1e-05, %v3604_v2 }
 0x249   :  { %v3342_v20 = vpop.f32.mrf.mxu0  ;;  %v3341_v60 = vadd.f32 %v3340_v15, %v3328_v53  ;;  %6278 = vrsqrt.f32 %v3608_v21  ;;  %vm3627_vm13 = vweird.f32 %v3608_v21 }
 0x24b   :  { %v3316_v0 = vpop.f32.mrf.mxu2  ;;  %v3354_v24 = vadd.f32 %v3353_v7, %v3341_v60 }
 0x24c   :  { %v3355_v8 = vpop.f32.mrf.mxu1 }
 0x24e   :  { %v3329_v23 = vpop.f32.mrf.mxu3 }
 0x24f   :  { %v6279_v18 = vpop.eup %6278 }
 0x250   :  { %v3622_v29 = vmul.f32 %v6279_v18, %v3608_v21  ;;  %vm3628_vm5 = vweird.f32 %v6279_v18 }
 0x251   :  { %vm3629_vm14 = vmor %vm3627_vm13, %vm3628_vm5  ;;  %vm4145_vm5 = vcmask 121856  }
 0x252   :  { %v3623_v42 = vmul.f32 %v6279_v18, %v3622_v29 }
 0x254   :  { %v3624_v59 = vmul.f32 0.5, %v3623_v42 }
 0x256   :  { %v3625_v36 = vsub.f32 1.5, %v3624_v59  ;;  %v3518_v59 = vperm.slane %v6944_v50, 3  ;;  %v6218_v50 = vld [vmem:[%s7187_s11 + $0x38] sm:$0xff] }
 0x257   :  { %3971 = vmatpush.bf16.msra.mxu0 %v6218_v50  ;;  %v6211_v50 = vld [vmem:[%s7187_s11] sm:$0xff] }
 0x258   :  { %v3626_v25 = vmul.f32 %v6279_v18, %v3625_v36 }
 0x25a   :  { %v3630_v31 = vsel %vm3629_vm14, %v6279_v18, %v3626_v25 }
 0x25b   :  { %v3655_v38 = vrot.slane %v3630_v31, 7  ;;  %v3771_v31 = vld [vmem:[%s7187_s11 + $0xf8] sm:$0x3] }
 0x25d   :  { %v6981_v39 = vsel %vm1364_vm9, %v3620_v1, %v3655_v38 }
 0x25e   :  { %v3405_v27 = vpop.f32.mrf.mxu1 }
 0x262   :  { %v3392_v56 = vpop.f32.mrf.mxu0 }
 0x263   :  { %v3366_v30 = vpop.f32.mrf.mxu2 }
 0x264   :  { %v3367_v40 = vadd.f32 %v3366_v30, %v3354_v24 }
 0x266   :  { %v3407_v43 = vpop.f32.mrf.mxu1  ;;  %v3379_v41 = vpop.f32.mrf.mxu3 }
 0x267   :  { %v3380_v46 = vadd.f32 %v3379_v41, %v3367_v40  ;;  %v6226_v41 = vld [vmem:[%s7187_s11 + $0x78] sm:$0xff] }
 0x268   :  { %3984 = vmatpush.bf16.msra.mxu1 %v6226_v41  ;;  %v6219_v41 = vld [vmem:[%s7187_s11 + $0x40] sm:$0xff] }
 0x269   :  { %v3393_v48 = vadd.f32 %v3392_v56, %v3380_v46  ;;  %v3901_v56 = vunpack.c.l.b16 %v3771_v31  ;;  %v6234_v46 = vld [vmem:[%s7187_s11 + $0xb8] sm:$0xff] }
 0x26a   :  { %v3394_v54 = vpop.f32.mrf.mxu0  ;;  %3997 = vmatpush.bf16.msrb.mxu2 %v6234_v46  ;;  %v6227_v46 = vld [vmem:[%s7187_s11 + $0x80] sm:$0xff] }
 0x26b   :  { %v3368_v55 = vpop.f32.mrf.mxu2  ;;  %v3406_v3 = vadd.f32 %v3405_v27, %v3393_v48  ;;  %v3933_v40 = vpack.c.b16 %v3901_v56, %v3901_v56  ;;  %v6220_v56 = vld [vmem:[%s7187_s11 + $0x48] sm:$0xff] }
 0x26d   :  { %v3525_v35 = vadd.f32 %v3517_v49, %v3406_v3  ;;  %v3969_v55 = vsel %vm864_vm0, %v3933_v40, 0  ;;  %v6236_v40 = vld [vmem:[%s7187_s11 + $0xc8] sm:$0xff] }
 0x26e   :  { %v3381_v5 = vpop.f32.mrf.mxu3  ;;  %4010 = vmatpush.bf16.msrb.mxu3 %v3969_v55 }
 0x26f   :  { %v6984_v10 = vmax.f32 %v3525_v35, 0.0  ;;  %v6217_v35 = vld [vmem:[%s7187_s11 + $0x30] sm:$0xff] }
 0x270   :  { %3972 = vmatpush.bf16.msra.mxu0 %v6217_v35 }
 0x271   :  { %v3545_v12 = vrot.slane %v6984_v10, 4  ;;  %v3564_v14 = vmul.f32 %v6984_v10, %v6984_v10 }
 0x273   :  { %v3546_v19 = vadd.f32 %v3545_v12, %v6984_v10  ;;  %v3578_v7 = vrot.slane %v3564_v14, 4 }
 0x275   :  { %v3547_v58 = vrot.slane %v3546_v19, 2  ;;  %v3579_v11 = vadd.f32 %v3578_v7, %v3564_v14  ;;  %v6216_v7 = vld [vmem:[%s7187_s11 + $0x28] sm:$0xff] }
 0x276   :  { %3973 = vmatpush.bf16.msra.mxu0 %v6216_v7 }
 0x277   :  { %v3548_v47 = vadd.f32 %v3547_v58, %v3546_v19  ;;  %v3580_v32 = vrot.slane %v3579_v11, 2  ;;  %v6232_v58 = vld [vmem:[%s7187_s11 + $0xa8] sm:$0xff] }
 0x279   :  { %v3549_v53 = vrot.slane %v3548_v47, 1  ;;  %v3581_v20 = vadd.f32 %v3580_v32, %v3579_v11  ;;  %v6240_v11 = vld [vmem:[%s7187_s11 + $0xe8] sm:$0xff] }
 0x27b   :  { %v3550_v8 = vadd.f32 %v3549_v53, %v3548_v47  ;;  %v3582_v0 = vrot.slane %v3581_v20, 1  ;;  %v6223_v53 = vld [vmem:[%s7187_s11 + $0x60] sm:$0xff] }
 0x27d   :  { %v6992_v18 = vmul.f32 %v3550_v8, %v6526_v57  ;;  %v3583_v28 = vadd.f32 %v3582_v0, %v3581_v20  ;;  %v6231_v20 = vld [vmem:[%s7187_s11 + $0xa0] sm:$0xff] }
 0x27e   :  { %v3418_v62 = vpop.f32.mrf.mxu1 }
 0x27f   :  { %v3419_v51 = vadd.f32 %v3418_v62, %v6917_v16  ;;  %v3593_v36 = vmul.f32 %v3583_v28, %v6526_v57  ;;  %v3597_v27 = vmul.f32 %v6992_v18, %v6992_v18  ;;  %v6230_v28 = vld [vmem:[%s7187_s11 + $0x98] sm:$0xff] }
 0x281   :  { %v3601_v1 = vsub.f32 %v3593_v36, %v3597_v27  ;;  %v6221_v36 = vld [vmem:[%s7187_s11 + $0x50] sm:$0xff] }
 0x282   :  { %v3457_v9 = vpop.f32.mrf.mxu0  ;;  %v6229_v27 = vld [vmem:[%s7187_s11 + $0x90] sm:$0xff] }
 0x283   :  { %v3431_v63 = vpop.f32.mrf.mxu2  ;;  %v3605_v3 = vmax.f32 %v3601_v1, 0.0  ;;  %v6228_v1 = vld [vmem:[%s7187_s11 + $0x88] sm:$0xff] }
 0x284   :  { %v3432_v4 = vadd.f32 %v3431_v63, %v3419_v51  ;;  %v6225_v63 = vld [vmem:[%s7187_s11 + $0x70] sm:$0xff] }
 0x285   :  { %3985 = vmatpush.bf16.msra.mxu1 %v6225_v63 }
 0x286   :  { %v3420_v52 = vpop.f32.mrf.mxu1  ;;  %v3444_v13 = vpop.f32.mrf.mxu3 }
 0x287   :  { %v3445_v21 = vadd.f32 %v3444_v13, %v3432_v4  ;;  %v6233_v52 = vld [vmem:[%s7187_s11 + $0xb0] sm:$0xff] }
 0x288   :  { %v6241_v13 = vld [vmem:[%s7187_s11 + $0xf0] sm:$0xff]  ;;  %3998 = vmatpush.bf16.msrb.mxu2 %v6233_v52 }
 0x289   :  { %v3458_v37 = vadd.f32 %v3457_v9, %v3445_v21  ;;  %4011 = vmatpush.bf16.msrb.mxu3 %v6241_v13  ;;  %v6239_v21 = vld [vmem:[%s7187_s11 + $0xe0] sm:$0xff] }
 0x28a   :  { %v3459_v22 = vpop.f32.mrf.mxu0 }
 0x28b   :  { %v3433_v15 = vpop.f32.mrf.mxu2  ;;  %v7030_v22 = vadd.f32 1e-05, %v3605_v3 }
 0x28c   :  { %3999 = vmatpush.bf16.msrb.mxu2 %v6232_v58 }
 0x28d   :  { %6280 = vrsqrt.f32 %v7030_v22  ;;  %4012 = vmatpush.bf16.msrb.mxu3 %v6240_v11  ;;  %vm3637_vm7 = vweird.f32 %v7030_v22 }
 0x28e   :  { %v3446_v61 = vpop.f32.mrf.mxu3 }
 0x28f   :  { %v6224_v61 = vld [vmem:[%s7187_s11 + $0x68] sm:$0xff] }
 0x290   :  { %3986 = vmatpush.bf16.msra.mxu1 %v6224_v61  ;;  %4000 = vmatpush.bf16.msrb.mxu2 %v6231_v20 }
 0x291   :  { %4013 = vmatpush.bf16.msrb.mxu3 %v6239_v21 }
 0x293   :  { %v6281_v0 = vpop.eup %6280 }
 0x294   :  { %3987 = vmatpush.bf16.msra.mxu1 %v6223_v53  ;;  %4001 = vmatpush.bf16.msrb.mxu2 %v6230_v28  ;;  %vm3638_vm4 = vweird.f32 %v6281_v0 }
 0x295   :  { %vm3639_vm11 = vmor %vm3637_vm7, %vm3638_vm4 }
 0x298   :  { %4002 = vmatpush.bf16.msrb.mxu2 %v6229_v27 }
 0x29c   :  { %4003 = vmatpush.bf16.msrb.mxu2 %v6228_v1 }
 0x29e   :  { %v3470_v2 = vpop.f32.mrf.mxu1  ;;  %v3509_v60 = vpop.f32.mrf.mxu0 }
 0x29f   :  { %v3471_v26 = vadd.f32 %v3470_v2, %v3458_v37  ;;  %v6215_v2 = vld [vmem:[%s7187_s11 + $0x20] sm:$0xff] }
 0x2a0   :  { %3974 = vmatpush.bf16.msra.mxu0 %v6215_v2  ;;  %4004 = vmatpush.bf16.msrb.mxu2 %v6227_v46 }
 0x2a3   :  { %v3483_v24 = vpop.f32.mrf.mxu2 }
 0x2a4   :  { %v3484_v29 = vadd.f32 %v3483_v24, %v3471_v26  ;;  %v6214_v26 = vld [vmem:[%s7187_s11 + $0x18] sm:$0xff] }
 0x2a5   :  { %3975 = vmatpush.bf16.msra.mxu0 %v6214_v26 }
 0x2a6   :  { %v3472_v23 = vpop.f32.mrf.mxu1  ;;  %v3511_v42 = vpop.f32.mrf.mxu0 }
 0x2a7   :  { %v3496_v45 = vpop.f32.mrf.mxu3  ;;  %v6222_v23 = vld [vmem:[%s7187_s11 + $0x58] sm:$0xff] }
 0x2a8   :  { %v3497_v16 = vadd.f32 %v3496_v45, %v3484_v29  ;;  %v6238_v29 = vld [vmem:[%s7187_s11 + $0xd8] sm:$0xff]  ;;  %3988 = vmatpush.bf16.msra.mxu1 %v6222_v23  ;;  %v3632_v45 = vmul.f32 %v6281_v0, %v7030_v22 }
 0x2a9   :  { %4014 = vmatpush.bf16.msrb.mxu3 %v6238_v29 }
 0x2aa   :  { %v3510_v44 = vadd.f32 %v3509_v60, %v3497_v16  ;;  %v3633_v31 = vmul.f32 %v6281_v0, %v3632_v45 }
 0x2ab   :  { %v3485_v25 = vpop.f32.mrf.mxu2 }
 0x2ac   :  { %v3526_v38 = vadd.f32 %v3518_v59, %v3510_v44  ;;  %v6213_v59 = vld [vmem:[%s7187_s11 + $0x10] sm:$0xff]  ;;  %3989 = vmatpush.bf16.msra.mxu1 %v6221_v36 }
 0x2ad   :  { %v6237_v44 = vld [vmem:[%s7187_s11 + $0xd0] sm:$0xff]  ;;  %3976 = vmatpush.bf16.msra.mxu0 %v6213_v59 }
 0x2ae   :  { %v7001_v30 = vmax.f32 %v3526_v38, 0.0  ;;  %4015 = vmatpush.bf16.msrb.mxu3 %v6237_v44  ;;  %v6212_v38 = vld [vmem:[%s7187_s11 + $0x8] sm:$0xff] }
 0x2af   :  { %v3498_v43 = vpop.f32.mrf.mxu3 }
 0x2b0   :  { %v3551_v48 = vsel %vm860_vm1, %v7001_v30, 0.0  ;;  %v3565_v54 = vmul.f32 %v7001_v30, %v7001_v30  ;;  %3990 = vmatpush.bf16.msra.mxu1 %v6220_v56  ;;  %v3634_v43 = vmul.f32 0.5, %v3633_v31 }
 0x2b1   :  { %v3552_v5 = vrot.slane %v3551_v48, 4  ;;  %3977 = vmatpush.bf16.msra.mxu0 %v6212_v38 }
 0x2b2   :  { %v3584_v62 = vsel %vm860_vm1, %v3565_v54, 0.0  ;;  %4016 = vmatpush.bf16.msrb.mxu3 %v6236_v40  ;;  %v3635_v55 = vsub.f32 1.5, %v3634_v43 }
 0x2b3   :  { %v3553_v49 = vadd.f32 %v3552_v5, %v3551_v48  ;;  %v3585_v9 = vrot.slane %v3584_v62, 4  ;;  %v6235_v48 = vld [vmem:[%s7187_s11 + $0xc0] sm:$0xff] }
 0x2b4   :  { %3991 = vmatpush.bf16.msra.mxu1 %v6219_v41 }
 0x2b5   :  { %v3554_v12 = vrot.slane %v3553_v49, 2  ;;  %v3586_v14 = vadd.f32 %v3585_v9, %v3584_v62  ;;  %3978 = vmatpush.bf16.msra.mxu0 %v6211_v50  ;;  %v3636_v62 = vmul.f32 %v6281_v0, %v3635_v55 }
 0x2b6   :  { %4017 = vmatpush.bf16.msrb.mxu3 %v6235_v48 }
 0x2b7   :  { %v3555_v15 = vadd.f32 %v3554_v12, %v3553_v49  ;;  %v3587_v19 = vrot.slane %v3586_v14, 2  ;;  %v3640_v35 = vsel %vm3639_vm11, %v6281_v0, %v3636_v62  ;;  %v3532_v0 = vld [vmem:[%s7186_s10] sm:$0xf] }
 0x2b8   :  { %v3656_v13 = vrot.slane %v3640_v35, 6  ;;  %v6246_v62 = vld [vmem:[%s7191_s15 + $0x20] sm:$0xff] }
 0x2b9   :  { %v3556_v47 = vrot.slane %v3555_v15, 1  ;;  %v3588_v32 = vadd.f32 %v3587_v19, %v3586_v14  ;;  %v3531_v14 = vld [vmem:[%s7185_s9] sm:$0xf]  ;;  %s4154_s9 = sshll.u32 %s7193_s17, 4  ;;  %s4155_s9 = int_to_ptr.hbm [resolvable:$true] %s4154_s9 }
 0x2bb   :  { %v3557_v51 = vadd.f32 %v3556_v47, %v3555_v15  ;;  %v3589_v4 = vrot.slane %v3588_v32, 1 }
 0x2bd   :  { %v7058_v60 = vmul.f32 %v3557_v51, %v6526_v57  ;;  %v3590_v8 = vadd.f32 %v3589_v4, %v3588_v32 }
 0x2bf   :  { %v3594_v37 = vmul.f32 %v3590_v8, %v6526_v57  ;;  %v3598_v24 = vmul.f32 %v7058_v60, %v7058_v60 }
 0x2c1   :  { %v3602_v42 = vsub.f32 %v3594_v37, %v3598_v24 }
 0x2c3   :  { %v3606_v16 = vmax.f32 %v3602_v42, 0.0 }
 0x2c5   :  { %v3610_v25 = vadd.f32 1e-05, %v3606_v16 }
 0x2c7   :  { %6282 = vrsqrt.f32 %v3610_v25  ;;  %vm3647_vm12 = vweird.f32 %v3610_v25 }
 0x2cd   :  { %v6283_v54 = vpop.eup %6282 }
 0x2ce   :  { %v3642_v3 = vmul.f32 %v6283_v54, %v3610_v25  ;;  %vm3648_vm8 = vweird.f32 %v6283_v54  ;;  %v4082_v25 = vld [vmem:[%s7191_s15 + $0x30] sm:$0x3] }
 0x2cf   :  { %vm3649_vm10 = vmor %vm3647_vm12, %vm3648_vm8  ;;  %v4112_v31 = vunpack.c.l.b16 %v4082_v25 }
 0x2d0   :  { %v3643_v5 = vmul.f32 %v6283_v54, %v3642_v3 }
 0x2d1   :  { %v4119_v38 = vpack.c.b16 %v4112_v31, %v4112_v31 }
 0x2d2   :  { %v3644_v49 = vmul.f32 0.5, %v3643_v5 }
 0x2d3   :  { %v4130_v43 = vsel %vm864_vm0, %v4119_v38, 0 }
 0x2d4   :  { %v3645_v9 = vsub.f32 1.5, %v3644_v49  ;;  %4133 = vmatpush.bf16.msrb.mxu0 %v4130_v43 }
 0x2d6   :  { %v3646_v63 = vmul.f32 %v6283_v54, %v3645_v9 }
 0x2d8   :  { %v3650_v52 = vsel %vm3649_vm10, %v6283_v54, %v3646_v63  ;;  %v6247_v54 = vld [vmem:[%s7191_s15 + $0x28] sm:$0xff] }
 0x2d9   :  { %v3657_v12 = vrot.slane %v3650_v52, 5  ;;  %4134 = vmatpush.bf16.msrb.mxu0 %v6247_v54 }
 0x2db   :  { %v3659_v15 = vsel %vm1366_vm15, %v3656_v13, %v3657_v12  ;;  %v6245_v12 = vld [vmem:[%s7191_s15 + $0x18] sm:$0xff] }
 0x2dc   :  { %v3660_v19 = vsel %vm864_vm0, %v6981_v39, %v3659_v15 }
 0x2dd   :  { %v3662_v22 = vmul.f32 %v3660_v19, %v3531_v14  ;;  %4135 = vmatpush.bf16.msrb.mxu0 %v6246_v62 }
 0x2df   :  { %v3664_v7 = vperm.slane %v3662_v22, 0  ;;  %v3665_v61 = vperm.slane %v3662_v22, 1  ;;  %v3666_v58 = vperm.slane %v3662_v22, 2  ;;  %v3667_v11 = vperm.slane %v3662_v22, 3 }
 0x2e1   :  { %v3672_v47 = vmul.f32 %v3664_v7, %v6961_v33  ;;  %v3673_v32 = vmul.f32 %v3665_v61, %v6974_v6  ;;  %v3674_v51 = vmul.f32 %v3666_v58, %v6992_v18  ;;  %v3675_v4 = vmul.f32 %v3667_v11, %v7058_v60  ;;  %4136 = vmatpush.bf16.msrb.mxu0 %v6245_v12 }
 0x2e2   :  { %v3688_v2 = vmul.f32 %v3664_v7, %v6949_v17  ;;  %v3689_v53 = vmul.f32 %v3665_v61, %v6967_v34  ;;  %v3690_v20 = vmul.f32 %v3666_v58, %v6984_v10  ;;  %v3691_v17 = vmul.f32 %v3667_v11, %v7001_v30  ;;  %v6256_v30 = vld [vmem:[%s7188_s12] ss:$0 sm:$0xff]  ;;  %v6244_v7 = vld [vmem:[%s7191_s15 + $0x10] sm:$0xff] }
 0x2e3   :  { %v3680_v39 = vrot.slane %v3673_v32, 7  ;;  %v3681_v21 = vrot.slane %v3674_v51, 6  ;;  %v3682_v8 = vrot.slane %v3675_v4, 5  ;;  %v6243_v32 = vld [vmem:[%s7191_s15 + $0x8] sm:$0xff] }
 0x2e5   :  { %v3683_v33 = vsel %vm1364_vm9, %v3672_v47, %v3680_v39  ;;  %v3684_v6 = vsel %vm1366_vm15, %v3681_v21, %v3682_v8  ;;  %4137 = vmatpush.bf16.msrb.mxu0 %v6244_v7 }
 0x2e6   :  { %v3685_v18 = vsel %vm864_vm0, %v3683_v33, %v3684_v6 }
 0x2e7   :  { %v3687_v60 = vsub.f32 %v3532_v0, %v3685_v18 }
 0x2e9   :  { %v3696_v37 = vperm.slane %v3687_v60, 3  ;;  %v3693_v34 = vperm.slane %v3687_v60, 0  ;;  %v3694_v24 = vperm.slane %v3687_v60, 1  ;;  %v3695_v10 = vperm.slane %v3687_v60, 2  ;;  %4138 = vmatpush.bf16.msrb.mxu0 %v6243_v32 }
 0x2eb   :  { %v3704_v26 = vadd.f32 %v3696_v37, %v3691_v17  ;;  %v3701_v23 = vadd.f32 %v3693_v34, %v3688_v2  ;;  %v3702_v28 = vadd.f32 %v3694_v24, %v3689_v53  ;;  %v3703_v29 = vadd.f32 %v3695_v10, %v3690_v20  ;;  %v6242_v20 = vld [vmem:[%s7191_s15] sm:$0xff] }
 0x2ec   :  { %v4025_v24 = vld [vmem:[%s7190_s14] sm:$0x1] }
 0x2ed   :  { %v3708_v42 = vpack.c.bf16 %v3704_v26, %v3704_v26  ;;  %v3705_v45 = vpack.c.bf16 %v3701_v23, %v3701_v23  ;;  %v3706_v16 = vpack.c.bf16 %v3702_v28, %v3702_v28  ;;  %v3707_v59 = vpack.c.bf16 %v3703_v29, %v3703_v29  ;;  %4139 = vmatpush.bf16.msrb.mxu0 %v6242_v20 }
 0x2ef   :  { %3979 = vmatmul.bf16.vlgmr.msra.gmra.mxu0 %v3705_v45  ;;  %3992 = vmatmul.bf16.vlgmr.msra.gmra.mxu1 %v3706_v16  ;;  %v6257_v16 = vld [vmem:[%s7192_s16] ss:$0 sm:$0xff] }
 0x2f0   :  { %4005 = vmatmul.bf16.vlgmr.msrb.gmra.mxu2 %v3707_v59  ;;  %5809 = vmatmul.msk.bf16.vlgmr.msrb.gmra.mxu3 %vm860_vm1, %v3708_v42  ;;  %vm4026_vm1 = vcmask 818176  }
 0x36c   :  { %v3980_v36 = vpop.f32.mrf.mxu0  ;;  %v3993_v27 = vpop.f32.mrf.mxu1 }
 0x36d   :  { %v3981_v44 = vadd.f32 %v6256_v30, %v3980_v36 }
 0x36f   :  { %v3994_v56 = vadd.f32 %v3993_v27, %v3981_v44 }
 0x373   :  { %v4006_v1 = vpop.f32.mrf.mxu2  ;;  %v4019_v40 = vpop.f32.mrf.mxu3 }
 0x374   :  { %v4007_v50 = vadd.f32 %v4006_v1, %v3994_v56  ;;  %v3982_v41 = vpop.f32.mrf.mxu0  ;;  %v3995_v46 = vpop.f32.mrf.mxu1 }
 0x376   :  { %v4020_v48 = vadd.f32 %v4019_v40, %v4007_v50 }
 0x378   :  { %v4023_v55 = vmax.f32 %v4020_v48, 0.0 }
 0x37a   :  { %v4027_v3 = vsel %vm4026_vm1, %v4023_v55, 0.0  ;;  %v4035_v5 = vmul.f32 %v4023_v55, %v4023_v55 }
 0x37b   :  { %v4028_v49 = vrot.slane %v4027_v3, 4  ;;  %v4008_v9 = vpop.f32.mrf.mxu2  ;;  %v4021_v35 = vpop.f32.mrf.mxu3 }
 0x37c   :  { %v4036_v63 = vsel %vm4026_vm1, %v4035_v5, 0.0 }
 0x37d   :  { %v4029_v52 = vadd.f32 %v4028_v49, %v4027_v3  ;;  %v4037_v13 = vrot.slane %v4036_v63, 4 }
 0x37f   :  { %v4030_v14 = vrot.slane %v4029_v52, 2  ;;  %v4038_v15 = vadd.f32 %v4037_v13, %v4036_v63 }
 0x381   :  { %v4031_v19 = vadd.f32 %v4030_v14, %v4029_v52  ;;  %v4039_v22 = vrot.slane %v4038_v15, 2 }
 0x383   :  { %v4032_v61 = vrot.slane %v4031_v19, 1  ;;  %v4040_v58 = vadd.f32 %v4039_v22, %v4038_v15 }
 0x385   :  { %v4033_v11 = vadd.f32 %v4032_v61, %v4031_v19  ;;  %v4041_v47 = vrot.slane %v4040_v58, 1 }
 0x387   :  { %v4034_v51 = vmul.f32 %v4033_v11, %v6526_v57  ;;  %v4042_v4 = vadd.f32 %v4041_v47, %v4040_v58 }
 0x389   :  { %v4043_v2 = vmul.f32 %v4042_v4, %v6526_v57  ;;  %v4044_v53 = vmul.f32 %v4034_v51, %v4034_v51  ;;  %v4024_v57 = vld [vmem:[%s7189_s13] sm:$0x1] }
 0x38b   :  { %v4045_v39 = vsub.f32 %v4043_v2, %v4044_v53 }
 0x38d   :  { %v4046_v21 = vmax.f32 %v4045_v39, 0.0 }
 0x38f   :  { %v4047_v8 = vadd.f32 1e-05, %v4046_v21 }
 0x391   :  { %6284 = vrsqrt.f32 %v4047_v8  ;;  %vm4054_vm9 = vweird.f32 %v4047_v8 }
 0x397   :  { %v6285_v0 = vpop.eup %6284 }
 0x398   :  { %v4049_v33 = vmul.f32 %v6285_v0, %v4047_v8  ;;  %vm4055_vm0 = vweird.f32 %v6285_v0 }
 0x399   :  { %vm4056_vm15 = vmor %vm4054_vm9, %vm4055_vm0 }
 0x39a   :  { %v4050_v6 = vmul.f32 %v6285_v0, %v4049_v33 }
 0x39c   :  { %v4051_v18 = vmul.f32 0.5, %v4050_v6 }
 0x39e   :  { %v4052_v60 = vsub.f32 1.5, %v4051_v18 }
 0x3a0   :  { %v4053_v17 = vmul.f32 %v6285_v0, %v4052_v60 }
 0x3a2   :  { %v4057_v37 = vsel %vm4056_vm15, %v6285_v0, %v4053_v17 }
 0x3a3   :  { %v4058_v34 = vmul.f32 %v4057_v37, %v4024_v57 }
 0x3a5   :  { %v4059_v10 = vmul.f32 %v4058_v34, %v4034_v51  ;;  %v4062_v26 = vperm.slane %v4058_v34, 0 }
 0x3a7   :  { %v4060_v23 = vsub.f32 %v4025_v24, %v4059_v10  ;;  %v4064_v28 = vmul.f32 %v4062_v26, %v4023_v55 }
 0x3a9   :  { %v4066_v29 = vperm.slane %v4060_v23, 0 }
 0x3ab   :  { %v4068_v42 = vadd.f32 %v4066_v29, %v4064_v28 }
 0x3ad   :  { %v4069_v45 = vpack.c.bf16 %v4068_v42, %v4068_v42 }
 0x3af   :  { %5834 = vmatmul.msk.bf16.vlgmr.msrb.gmra.mxu0 %vm4026_vm1, %v4069_v45 }
 0x42c   :  { %v4141_v59 = vpop.f32.mrf.mxu0 }
 0x42d   :  { %v4142_v30 = vadd.f32 %v6257_v16, %v4141_v59 }
 0x42f   :  { %4146 = vst.msk [vmem:[#allocation7] sm:$0xff] %vm4145_vm5, %v4142_v30 }
 0x430   :  { %4157 = dma.vmem_to_hbm [thread:$0]  %s4153_s3, 128, %s4155_s9, [#allocation4]  }
 0x434   :  { %v4143_v36 = vpop.f32.mrf.mxu0 }
 0x435   :  { %6362 = dma.done.wait [#allocation4], 128  }
 0x436   :  { %6363 = vsyncadd [#allocation4], 4294967168 }
 0x437   :  { %4162 = vsyncpa [#allocation3], 1 }
 0x438   :  { %4163 = vsyncpa [#allocation6], 1 }
 0x439   :  { %4164 = vsyncpa [#allocation4], 1 }

</bundles_post_ra>
